<compile_context>
chip_gen: v7x
topology: tpu7x:2x2x1
jax: 0.10.0
libtpu: 0.0.40
codegen_flags: <defaults>
</compile_context>

<pallas_src>
import jax
import jax.numpy as jnp
from jax import lax
from jax.experimental import pallas as pl
from jax.experimental.pallas import tpu as pltpu

# ---------------- small synthetic config ----------------
IMG = 16          # img_size
PATCH = 8         # patch_size
IN_CH = 3         # in_chans
EMBED = 32        # embed_dim
DEPTH = 2         # depth
HEADS = 4         # num_heads
MLP_RATIO = 4.0
NUM_CLASSES = 10
FRAMES = 2        # num_frames (T)
BATCH = 2
LN_EPS = 1e-5

HD = EMBED // HEADS
SCALE = HD ** (-0.5)                  # qk_scale = head_dim ** -0.5
MLP_HIDDEN = int(EMBED * MLP_RATIO)
NUM_PATCHES = (IMG // PATCH) ** 2
SEQ = NUM_PATCHES + 1                 # cls token + patches
PATCH_DIM = IN_CH * PATCH * PATCH
OUT_PAD = 128                         # logits padded to one full lane tile
BF16 = jnp.bfloat16


# ---------------- in-kernel helpers ----------------
def _gelu(x):
    # tanh-approximate GELU (EUP tanh); torch nn.GELU uses exact erf (~1e-3 max delta).
    # TODO(synk): switch to exact erf if bit-closeness to torch is required.
    c = 0.7978845608028654  # sqrt(2/pi)
    return 0.5 * x * (1.0 + jnp.tanh(c * (x + 0.044715 * (x * x * x))))


def _layernorm(x, w, b):
    mu = jnp.mean(x, axis=-1, keepdims=True)
    var = jnp.mean((x - mu) ** 2, axis=-1, keepdims=True)
    return (x - mu) * lax.rsqrt(var + LN_EPS) * w + b


# ---------------- fused ViT kernel (one step == whole batch) ----------------
def _vit_kernel(patches_ref, patch_w_ref, bias_ref, mask_ref, cls_pool_ref,
                ln1w_ref, ln1b_ref, qkvw_ref, projw_ref, projb_ref,
                ln2w_ref, ln2b_ref, fc1w_ref, fc1b_ref, fc2w_ref, fc2b_ref,
                normw_ref, normb_ref, headw_ref, headb_ref, out_ref):
    # Token embeddings: one bf16 matmul over all M = B*T*SEQ rows (cls rows are
    # zero patches); bias_ref already contains patch_b + pos_embed (patch rows)
    # and cls_token + pos[0] (cls rows).
    x = jnp.dot(patches_ref[...], patch_w_ref[...],
                preferred_element_type=jnp.float32) + bias_ref[...]        # (M, D) f32

    # (M, M) additive mask: 0 within a (batch, frame) block, -1e30 across blocks.
    mask = mask_ref[...]

    # TODO(synk): for large DEPTH/EMBED make depth a grid axis with streamed
    #             per-layer weight BlockSpecs instead of this resident unroll.
    for l in range(DEPTH):
        # ---- attention branch ----
        xn = _layernorm(x, ln1w_ref[l], ln1b_ref[l]).astype(BF16)
        # fused QKV: one (M, D) x (D, 3D) matmul, heads split by static lane slices
        qkv = jnp.dot(xn, qkvw_ref[l],
                      preferred_element_type=jnp.float32).astype(BF16)     # (M, 3D)
        o_heads = []
        for h in range(HEADS):
            q_h = qkv[:, h * HD:(h + 1) * HD]
            k_h = qkv[:, EMBED + h * HD:EMBED + (h + 1) * HD]
            v_h = qkv[:, 2 * EMBED + h * HD:2 * EMBED + (h + 1) * HD]
            s = lax.dot_general(q_h, k_h, (((1,), (1,)), ((), ())),
                                preferred_element_type=jnp.float32) * SCALE + mask
            s = s - jnp.max(s, axis=-1, keepdims=True)
            e = jnp.exp(s)
            p = (e * pl.reciprocal(jnp.sum(e, axis=-1, keepdims=True),
                                   approx=True)).astype(BF16)
            o_heads.append(jnp.dot(p, v_h, preferred_element_type=jnp.float32))
        # head concat along lanes -> single full-width output projection
        o = jnp.concatenate(o_heads, axis=-1).astype(BF16)                 # (M, D)
        x = x + jnp.dot(o, projw_ref[l],
                        preferred_element_type=jnp.float32) + projb_ref[l]

        # ---- MLP branch ----
        xn2 = _layernorm(x, ln2w_ref[l], ln2b_ref[l]).astype(BF16)
        h1 = _gelu(jnp.dot(xn2, fc1w_ref[l],
                           preferred_element_type=jnp.float32) + fc1b_ref[l]).astype(BF16)
        x = x + jnp.dot(h1, fc2w_ref[l],
                        preferred_element_type=jnp.float32) + fc2b_ref[l]

    # ---- temporal mean of cls tokens (one pooling matmul) -> final LN -> head ----
    cls_mean = jnp.dot(cls_pool_ref[...], x, preferred_element_type=jnp.float32)  # (B, D)
    cn = _layernorm(cls_mean, normw_ref[...], normb_ref[...]).astype(BF16)
    logits = jnp.dot(cn, headw_ref[...],
                     preferred_element_type=jnp.float32) + headb_ref[...]          # (B, 128)
    out_ref[...] = logits.astype(out_ref.dtype)


# ---------------- parameters (deterministic synthetic init, torch-like layout) ----------------
def init_params(key):
    keys = jax.random.split(key, 4 + DEPTH)

    def tn(k, shape, std=0.02):  # trunc_normal_(std=0.02)
        return jax.random.truncated_normal(k, -2.0, 2.0, shape, jnp.float32) * std

    params = {
        # PatchEmbed Conv2d(kernel=stride=patch) == matmul over (C,P,P)-flattened patches
        'patch_w': tn(keys[0], (PATCH_DIM, EMBED)),
        'patch_b': jnp.zeros((EMBED,), jnp.float32),
        'cls_token': tn(keys[1], (1, 1, EMBED)),
        'pos_embed': tn(keys[2], (1, SEQ, EMBED)),
        'norm_w': jnp.ones((EMBED,), jnp.float32),
        'norm_b': jnp.zeros((EMBED,), jnp.float32),
        'head_w': tn(keys[3], (EMBED, NUM_CLASSES)),
        'head_b': jnp.zeros((NUM_CLASSES,), jnp.float32),
        'blocks': [],
    }
    for i in range(DEPTH):
        bk = jax.random.split(keys[4 + i], 4)
        params['blocks'].append({
            'ln1_w': jnp.ones((EMBED,), jnp.float32), 'ln1_b': jnp.zeros((EMBED,), jnp.float32),
            'qkv_w': tn(bk[0], (EMBED, 3 * EMBED)),          # qkv_bias=False; cols = (q,k,v) x head-major
            'proj_w': tn(bk[1], (EMBED, EMBED)),
            'proj_b': jnp.zeros((EMBED,), jnp.float32),
            'ln2_w': jnp.ones((EMBED,), jnp.float32), 'ln2_b': jnp.zeros((EMBED,), jnp.float32),
            'fc1_w': tn(bk[2], (EMBED, MLP_HIDDEN)),
            'fc1_b': jnp.zeros((MLP_HIDDEN,), jnp.float32),
            'fc2_w': tn(bk[3], (MLP_HIDDEN, EMBED)),
            'fc2_b': jnp.zeros((EMBED,), jnp.float32),
        })
    return params


def pack_params(p):
    """Pack torch-like params into the kernel layout (depth-stacked, bf16 matmul weights)."""
    bf = lambda a: a.astype(BF16)
    stk = lambda name: jnp.stack([b[name] for b in p['blocks']])
    r2 = lambda name: stk(name).reshape(DEPTH, 1, -1)                # row-vector biases/LN (f32)

    # per-token additive term for one frame: cls row gets cls_token + pos[0];
    # patch rows get patch_b + pos[1+i]
    pos = p['pos_embed'][0]                                          # (SEQ, D)
    cls_row = p['cls_token'][0, 0] + pos[0]                          # (D,)
    patch_rows = pos[1:] + p['patch_b'][None, :]                     # (NP, D)
    frame_bias = jnp.concatenate([cls_row[None, :], patch_rows], axis=0)   # (SEQ, D)

    # classifier head padded to a full 128-lane tile (lane-dense store)
    head_w = jnp.zeros((EMBED, OUT_PAD), jnp.float32).at[:, :NUM_CLASSES].set(p['head_w'])
    head_b = jnp.zeros((1, OUT_PAD), jnp.float32).at[0, :NUM_CLASSES].set(p['head_b'])

    return {
        'patch_w': bf(p['patch_w']),
        'frame_bias': frame_bias,
        'ln1_w': r2('ln1_w'), 'ln1_b': r2('ln1_b'),
        'qkv_w': bf(stk('qkv_w')),
        'proj_w': bf(stk('proj_w')), 'proj_b': r2('proj_b'),
        'ln2_w': r2('ln2_w'), 'ln2_b': r2('ln2_b'),
        'fc1_w': bf(stk('fc1_w')), 'fc1_b': r2('fc1_b'),
        'fc2_w': bf(stk('fc2_w')), 'fc2_b': r2('fc2_b'),
        'norm_w': p['norm_w'][None, :], 'norm_b': p['norm_b'][None, :],
        'head_w': bf(head_w), 'head_b': head_b,
    }


# ---------------- forward (space_only) ----------------
def vit_forward(x, p):
    # x is (B, C, T, H, W) -- identical to the PyTorch module input
    B, C, T, H, W = x.shape
    nH, nW = H // PATCH, W // PATCH
    M = B * T * SEQ                                                   # all token rows, one slab

    # Plain-JAX layout glue: 'b c t h w -> (b t) c h w', flatten (C,P,P) patches, and
    # insert one zero row per frame at the cls position so the kernel's single patch
    # matmul covers every token row.  Cast to bf16 (halves input DMA).
    xt = jnp.transpose(x, (0, 2, 1, 3, 4))                                     # (B,T,C,H,W)
    xt = xt.reshape(B, T, C, nH, PATCH, nW, PATCH)
    xt = jnp.transpose(xt, (0, 1, 3, 5, 2, 4, 6)).reshape(B, T, nH * nW, PATCH_DIM)
    zeros = jnp.zeros((B, T, 1, PATCH_DIM), x.dtype)
    patches = jnp.concatenate([zeros, xt], axis=2).reshape(M, PATCH_DIM).astype(BF16)

    # per-row additive term (pos embed / cls token / patch bias), tiled over (B*T) frames
    bias = jnp.tile(p['frame_bias'], (B * T, 1))                               # (M, D) f32

    # block-diagonal mask: attention stays within each (batch, frame) SEQ-token block
    fid = jnp.arange(M) // SEQ
    mask = jnp.where(fid[:, None] == fid[None, :], 0.0, -1e30).astype(jnp.float32)

    # temporal cls pooling matrix: cls_pool[b, r] = 1/T iff row r is the cls row of batch b
    rows = jnp.arange(M)
    cls_pool = jnp.where((rows[None, :] % SEQ == 0) &
                         (rows[None, :] // (T * SEQ) == jnp.arange(B)[:, None]),
                         1.0 / T, 0.0).astype(jnp.float32)                     # (B, M)

    weights = [p['patch_w'], bias, mask, cls_pool,
               p['ln1_w'], p['ln1_b'], p['qkv_w'], p['proj_w'], p['proj_b'],
               p['ln2_w'], p['ln2_b'], p['fc1_w'], p['fc1_b'], p['fc2_w'], p['fc2_b'],
               p['norm_w'], p['norm_b'], p['head_w'], p['head_b']]

    def full(a):
        z = (0,) * a.ndim
        return pl.BlockSpec(a.shape, lambda i, z=z: z)   # whole array resident, fetched once

    out = pl.pallas_call(
        _vit_kernel,
        out_shape=jax.ShapeDtypeStruct((B, OUT_PAD), jnp.float32),
        grid=(1,),                                       # single step: whole batch at once
        in_specs=[full(patches)] + [full(w) for w in weights],
        out_specs=pl.BlockSpec((B, OUT_PAD), lambda i: (0, 0)),
        compiler_params=pltpu.CompilerParams(
            dimension_semantics=("arbitrary",),
            vmem_limit_bytes=32 * 1024 * 1024),
    )(patches, *weights)
    return out[:, :NUM_CLASSES]


if __name__ == "__main__":
    key = jax.random.PRNGKey(0)
    kx, kp = jax.random.split(key)
    x = jax.random.normal(kx, (BATCH, IN_CH, FRAMES, IMG, IMG), jnp.float32)
    params = pack_params(init_params(kp))
    out = jax.jit(vit_forward)(x, params)
    jax.block_until_ready(out)
    assert out.shape == (BATCH, NUM_CLASSES) and out.dtype == jnp.float32
    print("KERNEL_OK")
</pallas_src>

<mosaic_0001>
module attributes {stable_mosaic.version = 11 : i64} {
  func.func @_vit_kernel(%arg0: i32, %arg1: memref<20x192xbf16, #tpu.memory_space<vmem>>, %arg2: memref<192x32xbf16, #tpu.memory_space<vmem>>, %arg3: memref<20x32xf32, #tpu.memory_space<vmem>>, %arg4: memref<20x20xf32, #tpu.memory_space<vmem>>, %arg5: memref<2x20xf32, #tpu.memory_space<vmem>>, %arg6: memref<2x1x32xf32, #tpu.memory_space<vmem>>, %arg7: memref<2x1x32xf32, #tpu.memory_space<vmem>>, %arg8: memref<2x32x96xbf16, #tpu.memory_space<vmem>>, %arg9: memref<2x32x32xbf16, #tpu.memory_space<vmem>>, %arg10: memref<2x1x32xf32, #tpu.memory_space<vmem>>, %arg11: memref<2x1x32xf32, #tpu.memory_space<vmem>>, %arg12: memref<2x1x32xf32, #tpu.memory_space<vmem>>, %arg13: memref<2x32x128xbf16, #tpu.memory_space<vmem>>, %arg14: memref<2x1x128xf32, #tpu.memory_space<vmem>>, %arg15: memref<2x128x32xbf16, #tpu.memory_space<vmem>>, %arg16: memref<2x1x32xf32, #tpu.memory_space<vmem>>, %arg17: memref<1x32xf32, #tpu.memory_space<vmem>>, %arg18: memref<1x32xf32, #tpu.memory_space<vmem>>, %arg19: memref<32x128xbf16, #tpu.memory_space<vmem>>, %arg20: memref<1x128xf32, #tpu.memory_space<vmem>>, %arg21: memref<2x128xf32, #tpu.memory_space<vmem>>) attributes {dimension_semantics = [#tpu.dimension_semantics<arbitrary>], iteration_bounds = array<i64: 1>, scalar_prefetch = 0 : i64, scratch_operands = 0 : i64, tpu.core_type = #tpu.core_type<tc>, window_params = [{pipeline_mode = #tpu.pipeline_mode<synchronous>, transform_indices = @transform_0, window_bounds = array<i64: 20, 192>}, {pipeline_mode = #tpu.pipeline_mode<synchronous>, transform_indices = @transform_1, window_bounds = array<i64: 192, 32>}, {pipeline_mode = #tpu.pipeline_mode<synchronous>, transform_indices = @transform_2, window_bounds = array<i64: 20, 32>}, {pipeline_mode = #tpu.pipeline_mode<synchronous>, transform_indices = @transform_3, window_bounds = array<i64: 20, 20>}, {pipeline_mode = #tpu.pipeline_mode<synchronous>, transform_indices = @transform_4, window_bounds = array<i64: 2, 20>}, {pipeline_mode = #tpu.pipeline_mode<synchronous>, transform_indices = @transform_5, window_bounds = array<i64: 2, 1, 32>}, {pipeline_mode = #tpu.pipeline_mode<synchronous>, transform_indices = @transform_6, window_bounds = array<i64: 2, 1, 32>}, {pipeline_mode = #tpu.pipeline_mode<synchronous>, transform_indices = @transform_7, window_bounds = array<i64: 2, 32, 96>}, {pipeline_mode = #tpu.pipeline_mode<synchronous>, transform_indices = @transform_8, window_bounds = array<i64: 2, 32, 32>}, {pipeline_mode = #tpu.pipeline_mode<synchronous>, transform_indices = @transform_9, window_bounds = array<i64: 2, 1, 32>}, {pipeline_mode = #tpu.pipeline_mode<synchronous>, transform_indices = @transform_10, window_bounds = array<i64: 2, 1, 32>}, {pipeline_mode = #tpu.pipeline_mode<synchronous>, transform_indices = @transform_11, window_bounds = array<i64: 2, 1, 32>}, {pipeline_mode = #tpu.pipeline_mode<synchronous>, transform_indices = @transform_12, window_bounds = array<i64: 2, 32, 128>}, {pipeline_mode = #tpu.pipeline_mode<synchronous>, transform_indices = @transform_13, window_bounds = array<i64: 2, 1, 128>}, {pipeline_mode = #tpu.pipeline_mode<synchronous>, transform_indices = @transform_14, window_bounds = array<i64: 2, 128, 32>}, {pipeline_mode = #tpu.pipeline_mode<synchronous>, transform_indices = @transform_15, window_bounds = array<i64: 2, 1, 32>}, {pipeline_mode = #tpu.pipeline_mode<synchronous>, transform_indices = @transform_16, window_bounds = array<i64: 1, 32>}, {pipeline_mode = #tpu.pipeline_mode<synchronous>, transform_indices = @transform_17, window_bounds = array<i64: 1, 32>}, {pipeline_mode = #tpu.pipeline_mode<synchronous>, transform_indices = @transform_18, window_bounds = array<i64: 32, 128>}, {pipeline_mode = #tpu.pipeline_mode<synchronous>, transform_indices = @transform_19, window_bounds = array<i64: 1, 128>}, {pipeline_mode = #tpu.pipeline_mode<synchronous>, transform_indices = @transform_20, window_bounds = array<i64: 2, 128>}]} {
    %c0 = arith.constant 0 : index
    %c0_0 = arith.constant 0 : index
    %0 = vector.load %arg1[%c0, %c0_0] : memref<20x192xbf16, #tpu.memory_space<vmem>>, vector<20x192xbf16>
    %c0_1 = arith.constant 0 : index
    %c0_2 = arith.constant 0 : index
    %1 = vector.load %arg2[%c0_1, %c0_2] : memref<192x32xbf16, #tpu.memory_space<vmem>>, vector<192x32xbf16>
    %cst = arith.constant dense<0.000000e+00> : vector<20x32xf32>
    %2 = tpu.matmul %0, %1, %cst {dimension_numbers = #tpu.dot_dimension_numbers<[1], [0], [0], [1], [0, 0, 1, 1], [], []>} : vector<20x192xbf16>, vector<192x32xbf16>, vector<20x32xf32> -> vector<20x32xf32>
    %c0_3 = arith.constant 0 : index
    %c0_4 = arith.constant 0 : index
    %3 = vector.load %arg3[%c0_3, %c0_4] : memref<20x32xf32, #tpu.memory_space<vmem>>, vector<20x32xf32>
    %4 = arith.addf %2, %3 : vector<20x32xf32>
    %c0_5 = arith.constant 0 : index
    %c0_6 = arith.constant 0 : index
    %5 = vector.load %arg4[%c0_5, %c0_6] : memref<20x20xf32, #tpu.memory_space<vmem>>, vector<20x20xf32>
    %c0_7 = arith.constant 0 : index
    %c0_8 = arith.constant 0 : index
    %c0_9 = arith.constant 0 : index
    %6 = vector.load %arg6[%c0_7, %c0_8, %c0_9] : memref<2x1x32xf32, #tpu.memory_space<vmem>>, vector<1x1x32xf32>
    %7 = vector.shape_cast %6 : vector<1x1x32xf32> to vector<1x32xf32>
    %c0_10 = arith.constant 0 : index
    %c0_11 = arith.constant 0 : index
    %c0_12 = arith.constant 0 : index
    %8 = vector.load %arg7[%c0_10, %c0_11, %c0_12] : memref<2x1x32xf32, #tpu.memory_space<vmem>>, vector<1x1x32xf32>
    %9 = vector.shape_cast %8 : vector<1x1x32xf32> to vector<1x32xf32>
    %cst_13 = arith.constant dense<0.000000e+00> : vector<20xf32>
    %10 = vector.multi_reduction <add>, %4, %cst_13 [1] : vector<20x32xf32> to vector<20xf32>
    %11 = vector.shape_cast %10 : vector<20xf32> to vector<20x1xf32>
    %cst_14 = arith.constant 3.200000e+01 : f32
    %12 = vector.broadcast %cst_14 : f32 to vector<20x1xf32>
    %13 = arith.divf %11, %12 : vector<20x1xf32>
    %14 = vector.broadcast %13 : vector<20x1xf32> to vector<20x32xf32>
    %15 = arith.subf %4, %14 : vector<20x32xf32>
    %16 = arith.mulf %15, %15 : vector<20x32xf32>
    %cst_15 = arith.constant dense<0.000000e+00> : vector<20xf32>
    %17 = vector.multi_reduction <add>, %16, %cst_15 [1] : vector<20x32xf32> to vector<20xf32>
    %18 = vector.shape_cast %17 : vector<20xf32> to vector<20x1xf32>
    %cst_16 = arith.constant 3.200000e+01 : f32
    %19 = vector.broadcast %cst_16 : f32 to vector<20x1xf32>
    %20 = arith.divf %18, %19 : vector<20x1xf32>
    %21 = vector.broadcast %13 : vector<20x1xf32> to vector<20x32xf32>
    %22 = arith.subf %4, %21 : vector<20x32xf32>
    %cst_17 = arith.constant 9.99999974E-6 : f32
    %23 = vector.broadcast %cst_17 : f32 to vector<20x1xf32>
    %24 = arith.addf %20, %23 : vector<20x1xf32>
    %25 = math.rsqrt %24 : vector<20x1xf32>
    %26 = vector.broadcast %25 : vector<20x1xf32> to vector<20x32xf32>
    %27 = arith.mulf %22, %26 : vector<20x32xf32>
    %28 = vector.broadcast %7 : vector<1x32xf32> to vector<20x32xf32>
    %29 = arith.mulf %27, %28 : vector<20x32xf32>
    %30 = vector.broadcast %9 : vector<1x32xf32> to vector<20x32xf32>
    %31 = arith.addf %29, %30 : vector<20x32xf32>
    %32 = arith.truncf %31 : vector<20x32xf32> to vector<20x32xbf16>
    %c0_18 = arith.constant 0 : index
    %c0_19 = arith.constant 0 : index
    %c0_20 = arith.constant 0 : index
    %33 = vector.load %arg8[%c0_18, %c0_19, %c0_20] : memref<2x32x96xbf16, #tpu.memory_space<vmem>>, vector<1x32x96xbf16>
    %34 = vector.shape_cast %33 : vector<1x32x96xbf16> to vector<32x96xbf16>
    %cst_21 = arith.constant dense<0.000000e+00> : vector<20x96xf32>
    %35 = tpu.matmul %32, %34, %cst_21 {dimension_numbers = #tpu.dot_dimension_numbers<[1], [0], [0], [1], [0, 0, 1, 1], [], []>} : vector<20x32xbf16>, vector<32x96xbf16>, vector<20x96xf32> -> vector<20x96xf32>
    %36 = arith.truncf %35 : vector<20x96xf32> to vector<20x96xbf16>
    %37 = vector.extract_strided_slice %36 {offsets = [0, 0], sizes = [20, 8], strides = [1, 1]} : vector<20x96xbf16> to vector<20x8xbf16>
    %38 = vector.extract_strided_slice %36 {offsets = [0, 32], sizes = [20, 8], strides = [1, 1]} : vector<20x96xbf16> to vector<20x8xbf16>
    %39 = vector.extract_strided_slice %36 {offsets = [0, 64], sizes = [20, 8], strides = [1, 1]} : vector<20x96xbf16> to vector<20x8xbf16>
    %cst_22 = arith.constant dense<0.000000e+00> : vector<20x20xf32>
    %40 = tpu.matmul %37, %38, %cst_22 {dimension_numbers = #tpu.dot_dimension_numbers<[1], [1], [0], [0], [0, 0, 1, 0], [], []>} : vector<20x8xbf16>, vector<20x8xbf16>, vector<20x20xf32> -> vector<20x20xf32>
    %cst_23 = arith.constant 0.353553385 : f32
    %41 = vector.broadcast %cst_23 : f32 to vector<20x20xf32>
    %42 = arith.mulf %40, %41 : vector<20x20xf32>
    %43 = arith.addf %42, %5 : vector<20x20xf32>
    %cst_24 = arith.constant dense<0xFF800000> : vector<20xf32>
    %44 = vector.multi_reduction <maximumf>, %43, %cst_24 [1] : vector<20x20xf32> to vector<20xf32>
    %45 = vector.shape_cast %44 : vector<20xf32> to vector<20x1xf32>
    %46 = vector.broadcast %45 : vector<20x1xf32> to vector<20x20xf32>
    %47 = arith.subf %43, %46 : vector<20x20xf32>
    %48 = math.exp %47 : vector<20x20xf32>
    %cst_25 = arith.constant dense<0.000000e+00> : vector<20xf32>
    %49 = vector.multi_reduction <add>, %48, %cst_25 [1] : vector<20x20xf32> to vector<20xf32>
    %50 = vector.shape_cast %49 : vector<20xf32> to vector<20x1xf32>
    %51 = tpu.reciprocal %50 {approx = true} : vector<20x1xf32> -> vector<20x1xf32>
    %52 = vector.broadcast %51 : vector<20x1xf32> to vector<20x20xf32>
    %53 = arith.mulf %48, %52 : vector<20x20xf32>
    %54 = arith.truncf %53 : vector<20x20xf32> to vector<20x20xbf16>
    %cst_26 = arith.constant dense<0.000000e+00> : vector<20x8xf32>
    %55 = tpu.matmul %54, %39, %cst_26 {dimension_numbers = #tpu.dot_dimension_numbers<[1], [0], [0], [1], [0, 0, 1, 1], [], []>} : vector<20x20xbf16>, vector<20x8xbf16>, vector<20x8xf32> -> vector<20x8xf32>
    %56 = vector.extract_strided_slice %36 {offsets = [0, 8], sizes = [20, 8], strides = [1, 1]} : vector<20x96xbf16> to vector<20x8xbf16>
    %57 = vector.extract_strided_slice %36 {offsets = [0, 40], sizes = [20, 8], strides = [1, 1]} : vector<20x96xbf16> to vector<20x8xbf16>
    %58 = vector.extract_strided_slice %36 {offsets = [0, 72], sizes = [20, 8], strides = [1, 1]} : vector<20x96xbf16> to vector<20x8xbf16>
    %cst_27 = arith.constant dense<0.000000e+00> : vector<20x20xf32>
    %59 = tpu.matmul %56, %57, %cst_27 {dimension_numbers = #tpu.dot_dimension_numbers<[1], [1], [0], [0], [0, 0, 1, 0], [], []>} : vector<20x8xbf16>, vector<20x8xbf16>, vector<20x20xf32> -> vector<20x20xf32>
    %cst_28 = arith.constant 0.353553385 : f32
    %60 = vector.broadcast %cst_28 : f32 to vector<20x20xf32>
    %61 = arith.mulf %59, %60 : vector<20x20xf32>
    %62 = arith.addf %61, %5 : vector<20x20xf32>
    %cst_29 = arith.constant dense<0xFF800000> : vector<20xf32>
    %63 = vector.multi_reduction <maximumf>, %62, %cst_29 [1] : vector<20x20xf32> to vector<20xf32>
    %64 = vector.shape_cast %63 : vector<20xf32> to vector<20x1xf32>
    %65 = vector.broadcast %64 : vector<20x1xf32> to vector<20x20xf32>
    %66 = arith.subf %62, %65 : vector<20x20xf32>
    %67 = math.exp %66 : vector<20x20xf32>
    %cst_30 = arith.constant dense<0.000000e+00> : vector<20xf32>
    %68 = vector.multi_reduction <add>, %67, %cst_30 [1] : vector<20x20xf32> to vector<20xf32>
    %69 = vector.shape_cast %68 : vector<20xf32> to vector<20x1xf32>
    %70 = tpu.reciprocal %69 {approx = true} : vector<20x1xf32> -> vector<20x1xf32>
    %71 = vector.broadcast %70 : vector<20x1xf32> to vector<20x20xf32>
    %72 = arith.mulf %67, %71 : vector<20x20xf32>
    %73 = arith.truncf %72 : vector<20x20xf32> to vector<20x20xbf16>
    %cst_31 = arith.constant dense<0.000000e+00> : vector<20x8xf32>
    %74 = tpu.matmul %73, %58, %cst_31 {dimension_numbers = #tpu.dot_dimension_numbers<[1], [0], [0], [1], [0, 0, 1, 1], [], []>} : vector<20x20xbf16>, vector<20x8xbf16>, vector<20x8xf32> -> vector<20x8xf32>
    %75 = vector.extract_strided_slice %36 {offsets = [0, 16], sizes = [20, 8], strides = [1, 1]} : vector<20x96xbf16> to vector<20x8xbf16>
    %76 = vector.extract_strided_slice %36 {offsets = [0, 48], sizes = [20, 8], strides = [1, 1]} : vector<20x96xbf16> to vector<20x8xbf16>
    %77 = vector.extract_strided_slice %36 {offsets = [0, 80], sizes = [20, 8], strides = [1, 1]} : vector<20x96xbf16> to vector<20x8xbf16>
    %cst_32 = arith.constant dense<0.000000e+00> : vector<20x20xf32>
    %78 = tpu.matmul %75, %76, %cst_32 {dimension_numbers = #tpu.dot_dimension_numbers<[1], [1], [0], [0], [0, 0, 1, 0], [], []>} : vector<20x8xbf16>, vector<20x8xbf16>, vector<20x20xf32> -> vector<20x20xf32>
    %cst_33 = arith.constant 0.353553385 : f32
    %79 = vector.broadcast %cst_33 : f32 to vector<20x20xf32>
    %80 = arith.mulf %78, %79 : vector<20x20xf32>
    %81 = arith.addf %80, %5 : vector<20x20xf32>
    %cst_34 = arith.constant dense<0xFF800000> : vector<20xf32>
    %82 = vector.multi_reduction <maximumf>, %81, %cst_34 [1] : vector<20x20xf32> to vector<20xf32>
    %83 = vector.shape_cast %82 : vector<20xf32> to vector<20x1xf32>
    %84 = vector.broadcast %83 : vector<20x1xf32> to vector<20x20xf32>
    %85 = arith.subf %81, %84 : vector<20x20xf32>
    %86 = math.exp %85 : vector<20x20xf32>
    %cst_35 = arith.constant dense<0.000000e+00> : vector<20xf32>
    %87 = vector.multi_reduction <add>, %86, %cst_35 [1] : vector<20x20xf32> to vector<20xf32>
    %88 = vector.shape_cast %87 : vector<20xf32> to vector<20x1xf32>
    %89 = tpu.reciprocal %88 {approx = true} : vector<20x1xf32> -> vector<20x1xf32>
    %90 = vector.broadcast %89 : vector<20x1xf32> to vector<20x20xf32>
    %91 = arith.mulf %86, %90 : vector<20x20xf32>
    %92 = arith.truncf %91 : vector<20x20xf32> to vector<20x20xbf16>
    %cst_36 = arith.constant dense<0.000000e+00> : vector<20x8xf32>
    %93 = tpu.matmul %92, %77, %cst_36 {dimension_numbers = #tpu.dot_dimension_numbers<[1], [0], [0], [1], [0, 0, 1, 1], [], []>} : vector<20x20xbf16>, vector<20x8xbf16>, vector<20x8xf32> -> vector<20x8xf32>
    %94 = vector.extract_strided_slice %36 {offsets = [0, 24], sizes = [20, 8], strides = [1, 1]} : vector<20x96xbf16> to vector<20x8xbf16>
    %95 = vector.extract_strided_slice %36 {offsets = [0, 56], sizes = [20, 8], strides = [1, 1]} : vector<20x96xbf16> to vector<20x8xbf16>
    %96 = vector.extract_strided_slice %36 {offsets = [0, 88], sizes = [20, 8], strides = [1, 1]} : vector<20x96xbf16> to vector<20x8xbf16>
    %cst_37 = arith.constant dense<0.000000e+00> : vector<20x20xf32>
    %97 = tpu.matmul %94, %95, %cst_37 {dimension_numbers = #tpu.dot_dimension_numbers<[1], [1], [0], [0], [0, 0, 1, 0], [], []>} : vector<20x8xbf16>, vector<20x8xbf16>, vector<20x20xf32> -> vector<20x20xf32>
    %cst_38 = arith.constant 0.353553385 : f32
    %98 = vector.broadcast %cst_38 : f32 to vector<20x20xf32>
    %99 = arith.mulf %97, %98 : vector<20x20xf32>
    %100 = arith.addf %99, %5 : vector<20x20xf32>
    %cst_39 = arith.constant dense<0xFF800000> : vector<20xf32>
    %101 = vector.multi_reduction <maximumf>, %100, %cst_39 [1] : vector<20x20xf32> to vector<20xf32>
    %102 = vector.shape_cast %101 : vector<20xf32> to vector<20x1xf32>
    %103 = vector.broadcast %102 : vector<20x1xf32> to vector<20x20xf32>
    %104 = arith.subf %100, %103 : vector<20x20xf32>
    %105 = math.exp %104 : vector<20x20xf32>
    %cst_40 = arith.constant dense<0.000000e+00> : vector<20xf32>
    %106 = vector.multi_reduction <add>, %105, %cst_40 [1] : vector<20x20xf32> to vector<20xf32>
    %107 = vector.shape_cast %106 : vector<20xf32> to vector<20x1xf32>
    %108 = tpu.reciprocal %107 {approx = true} : vector<20x1xf32> -> vector<20x1xf32>
    %109 = vector.broadcast %108 : vector<20x1xf32> to vector<20x20xf32>
    %110 = arith.mulf %105, %109 : vector<20x20xf32>
    %111 = arith.truncf %110 : vector<20x20xf32> to vector<20x20xbf16>
    %cst_41 = arith.constant dense<0.000000e+00> : vector<20x8xf32>
    %112 = tpu.matmul %111, %96, %cst_41 {dimension_numbers = #tpu.dot_dimension_numbers<[1], [0], [0], [1], [0, 0, 1, 1], [], []>} : vector<20x20xbf16>, vector<20x8xbf16>, vector<20x8xf32> -> vector<20x8xf32>
    %113 = tpu.concatenate %55, %74, %93, %112 in 1 : vector<20x8xf32>, vector<20x8xf32>, vector<20x8xf32>, vector<20x8xf32> -> vector<20x32xf32>
    %114 = arith.truncf %113 : vector<20x32xf32> to vector<20x32xbf16>
    %c0_42 = arith.constant 0 : index
    %c0_43 = arith.constant 0 : index
    %c0_44 = arith.constant 0 : index
    %115 = vector.load %arg9[%c0_42, %c0_43, %c0_44] : memref<2x32x32xbf16, #tpu.memory_space<vmem>>, vector<1x32x32xbf16>
    %116 = vector.shape_cast %115 : vector<1x32x32xbf16> to vector<32x32xbf16>
    %cst_45 = arith.constant dense<0.000000e+00> : vector<20x32xf32>
    %117 = tpu.matmul %114, %116, %cst_45 {dimension_numbers = #tpu.dot_dimension_numbers<[1], [0], [0], [1], [0, 0, 1, 1], [], []>} : vector<20x32xbf16>, vector<32x32xbf16>, vector<20x32xf32> -> vector<20x32xf32>
    %118 = arith.addf %4, %117 : vector<20x32xf32>
    %c0_46 = arith.constant 0 : index
    %c0_47 = arith.constant 0 : index
    %c0_48 = arith.constant 0 : index
    %119 = vector.load %arg10[%c0_46, %c0_47, %c0_48] : memref<2x1x32xf32, #tpu.memory_space<vmem>>, vector<1x1x32xf32>
    %120 = vector.shape_cast %119 : vector<1x1x32xf32> to vector<1x32xf32>
    %121 = vector.broadcast %120 : vector<1x32xf32> to vector<20x32xf32>
    %122 = arith.addf %118, %121 : vector<20x32xf32>
    %c0_49 = arith.constant 0 : index
    %c0_50 = arith.constant 0 : index
    %c0_51 = arith.constant 0 : index
    %123 = vector.load %arg11[%c0_49, %c0_50, %c0_51] : memref<2x1x32xf32, #tpu.memory_space<vmem>>, vector<1x1x32xf32>
    %124 = vector.shape_cast %123 : vector<1x1x32xf32> to vector<1x32xf32>
    %c0_52 = arith.constant 0 : index
    %c0_53 = arith.constant 0 : index
    %c0_54 = arith.constant 0 : index
    %125 = vector.load %arg12[%c0_52, %c0_53, %c0_54] : memref<2x1x32xf32, #tpu.memory_space<vmem>>, vector<1x1x32xf32>
    %126 = vector.shape_cast %125 : vector<1x1x32xf32> to vector<1x32xf32>
    %cst_55 = arith.constant dense<0.000000e+00> : vector<20xf32>
    %127 = vector.multi_reduction <add>, %122, %cst_55 [1] : vector<20x32xf32> to vector<20xf32>
    %128 = vector.shape_cast %127 : vector<20xf32> to vector<20x1xf32>
    %cst_56 = arith.constant 3.200000e+01 : f32
    %129 = vector.broadcast %cst_56 : f32 to vector<20x1xf32>
    %130 = arith.divf %128, %129 : vector<20x1xf32>
    %131 = vector.broadcast %130 : vector<20x1xf32> to vector<20x32xf32>
    %132 = arith.subf %122, %131 : vector<20x32xf32>
    %133 = arith.mulf %132, %132 : vector<20x32xf32>
    %cst_57 = arith.constant dense<0.000000e+00> : vector<20xf32>
    %134 = vector.multi_reduction <add>, %133, %cst_57 [1] : vector<20x32xf32> to vector<20xf32>
    %135 = vector.shape_cast %134 : vector<20xf32> to vector<20x1xf32>
    %cst_58 = arith.constant 3.200000e+01 : f32
    %136 = vector.broadcast %cst_58 : f32 to vector<20x1xf32>
    %137 = arith.divf %135, %136 : vector<20x1xf32>
    %138 = vector.broadcast %130 : vector<20x1xf32> to vector<20x32xf32>
    %139 = arith.subf %122, %138 : vector<20x32xf32>
    %cst_59 = arith.constant 9.99999974E-6 : f32
    %140 = vector.broadcast %cst_59 : f32 to vector<20x1xf32>
    %141 = arith.addf %137, %140 : vector<20x1xf32>
    %142 = math.rsqrt %141 : vector<20x1xf32>
    %143 = vector.broadcast %142 : vector<20x1xf32> to vector<20x32xf32>
    %144 = arith.mulf %139, %143 : vector<20x32xf32>
    %145 = vector.broadcast %124 : vector<1x32xf32> to vector<20x32xf32>
    %146 = arith.mulf %144, %145 : vector<20x32xf32>
    %147 = vector.broadcast %126 : vector<1x32xf32> to vector<20x32xf32>
    %148 = arith.addf %146, %147 : vector<20x32xf32>
    %149 = arith.truncf %148 : vector<20x32xf32> to vector<20x32xbf16>
    %c0_60 = arith.constant 0 : index
    %c0_61 = arith.constant 0 : index
    %c0_62 = arith.constant 0 : index
    %150 = vector.load %arg13[%c0_60, %c0_61, %c0_62] : memref<2x32x128xbf16, #tpu.memory_space<vmem>>, vector<1x32x128xbf16>
    %151 = vector.shape_cast %150 : vector<1x32x128xbf16> to vector<32x128xbf16>
    %cst_63 = arith.constant dense<0.000000e+00> : vector<20x128xf32>
    %152 = tpu.matmul %149, %151, %cst_63 {dimension_numbers = #tpu.dot_dimension_numbers<[1], [0], [0], [1], [0, 0, 1, 1], [], []>} : vector<20x32xbf16>, vector<32x128xbf16>, vector<20x128xf32> -> vector<20x128xf32>
    %c0_64 = arith.constant 0 : index
    %c0_65 = arith.constant 0 : index
    %c0_66 = arith.constant 0 : index
    %153 = vector.load %arg14[%c0_64, %c0_65, %c0_66] : memref<2x1x128xf32, #tpu.memory_space<vmem>>, vector<1x1x128xf32>
    %154 = vector.shape_cast %153 : vector<1x1x128xf32> to vector<1x128xf32>
    %155 = vector.broadcast %154 : vector<1x128xf32> to vector<20x128xf32>
    %156 = arith.addf %152, %155 : vector<20x128xf32>
    %cst_67 = arith.constant 5.000000e-01 : f32
    %157 = vector.broadcast %cst_67 : f32 to vector<20x128xf32>
    %158 = arith.mulf %157, %156 : vector<20x128xf32>
    %159 = arith.mulf %156, %156 : vector<20x128xf32>
    %160 = arith.mulf %159, %156 : vector<20x128xf32>
    %cst_68 = arith.constant 4.471500e-02 : f32
    %161 = vector.broadcast %cst_68 : f32 to vector<20x128xf32>
    %162 = arith.mulf %161, %160 : vector<20x128xf32>
    %163 = arith.addf %156, %162 : vector<20x128xf32>
    %cst_69 = arith.constant 0.797884583 : f32
    %164 = vector.broadcast %cst_69 : f32 to vector<20x128xf32>
    %165 = arith.mulf %164, %163 : vector<20x128xf32>
    %166 = math.tanh %165 : vector<20x128xf32>
    %cst_70 = arith.constant 1.000000e+00 : f32
    %167 = vector.broadcast %cst_70 : f32 to vector<20x128xf32>
    %168 = arith.addf %167, %166 : vector<20x128xf32>
    %169 = arith.mulf %158, %168 : vector<20x128xf32>
    %170 = arith.truncf %169 : vector<20x128xf32> to vector<20x128xbf16>
    %c0_71 = arith.constant 0 : index
    %c0_72 = arith.constant 0 : index
    %c0_73 = arith.constant 0 : index
    %171 = vector.load %arg15[%c0_71, %c0_72, %c0_73] : memref<2x128x32xbf16, #tpu.memory_space<vmem>>, vector<1x128x32xbf16>
    %172 = vector.shape_cast %171 : vector<1x128x32xbf16> to vector<128x32xbf16>
    %cst_74 = arith.constant dense<0.000000e+00> : vector<20x32xf32>
    %173 = tpu.matmul %170, %172, %cst_74 {dimension_numbers = #tpu.dot_dimension_numbers<[1], [0], [0], [1], [0, 0, 1, 1], [], []>} : vector<20x128xbf16>, vector<128x32xbf16>, vector<20x32xf32> -> vector<20x32xf32>
    %174 = arith.addf %122, %173 : vector<20x32xf32>
    %c0_75 = arith.constant 0 : index
    %c0_76 = arith.constant 0 : index
    %c0_77 = arith.constant 0 : index
    %175 = vector.load %arg16[%c0_75, %c0_76, %c0_77] : memref<2x1x32xf32, #tpu.memory_space<vmem>>, vector<1x1x32xf32>
    %176 = vector.shape_cast %175 : vector<1x1x32xf32> to vector<1x32xf32>
    %177 = vector.broadcast %176 : vector<1x32xf32> to vector<20x32xf32>
    %178 = arith.addf %174, %177 : vector<20x32xf32>
    %c1 = arith.constant 1 : index
    %c0_78 = arith.constant 0 : index
    %c0_79 = arith.constant 0 : index
    %179 = vector.load %arg6[%c1, %c0_78, %c0_79] : memref<2x1x32xf32, #tpu.memory_space<vmem>>, vector<1x1x32xf32>
    %180 = vector.shape_cast %179 : vector<1x1x32xf32> to vector<1x32xf32>
    %c1_80 = arith.constant 1 : index
    %c0_81 = arith.constant 0 : index
    %c0_82 = arith.constant 0 : index
    %181 = vector.load %arg7[%c1_80, %c0_81, %c0_82] : memref<2x1x32xf32, #tpu.memory_space<vmem>>, vector<1x1x32xf32>
    %182 = vector.shape_cast %181 : vector<1x1x32xf32> to vector<1x32xf32>
    %cst_83 = arith.constant dense<0.000000e+00> : vector<20xf32>
    %183 = vector.multi_reduction <add>, %178, %cst_83 [1] : vector<20x32xf32> to vector<20xf32>
    %184 = vector.shape_cast %183 : vector<20xf32> to vector<20x1xf32>
    %cst_84 = arith.constant 3.200000e+01 : f32
    %185 = vector.broadcast %cst_84 : f32 to vector<20x1xf32>
    %186 = arith.divf %184, %185 : vector<20x1xf32>
    %187 = vector.broadcast %186 : vector<20x1xf32> to vector<20x32xf32>
    %188 = arith.subf %178, %187 : vector<20x32xf32>
    %189 = arith.mulf %188, %188 : vector<20x32xf32>
    %cst_85 = arith.constant dense<0.000000e+00> : vector<20xf32>
    %190 = vector.multi_reduction <add>, %189, %cst_85 [1] : vector<20x32xf32> to vector<20xf32>
    %191 = vector.shape_cast %190 : vector<20xf32> to vector<20x1xf32>
    %cst_86 = arith.constant 3.200000e+01 : f32
    %192 = vector.broadcast %cst_86 : f32 to vector<20x1xf32>
    %193 = arith.divf %191, %192 : vector<20x1xf32>
    %194 = vector.broadcast %186 : vector<20x1xf32> to vector<20x32xf32>
    %195 = arith.subf %178, %194 : vector<20x32xf32>
    %cst_87 = arith.constant 9.99999974E-6 : f32
    %196 = vector.broadcast %cst_87 : f32 to vector<20x1xf32>
    %197 = arith.addf %193, %196 : vector<20x1xf32>
    %198 = math.rsqrt %197 : vector<20x1xf32>
    %199 = vector.broadcast %198 : vector<20x1xf32> to vector<20x32xf32>
    %200 = arith.mulf %195, %199 : vector<20x32xf32>
    %201 = vector.broadcast %180 : vector<1x32xf32> to vector<20x32xf32>
    %202 = arith.mulf %200, %201 : vector<20x32xf32>
    %203 = vector.broadcast %182 : vector<1x32xf32> to vector<20x32xf32>
    %204 = arith.addf %202, %203 : vector<20x32xf32>
    %205 = arith.truncf %204 : vector<20x32xf32> to vector<20x32xbf16>
    %c1_88 = arith.constant 1 : index
    %c0_89 = arith.constant 0 : index
    %c0_90 = arith.constant 0 : index
    %206 = vector.load %arg8[%c1_88, %c0_89, %c0_90] : memref<2x32x96xbf16, #tpu.memory_space<vmem>>, vector<1x32x96xbf16>
    %207 = vector.shape_cast %206 : vector<1x32x96xbf16> to vector<32x96xbf16>
    %cst_91 = arith.constant dense<0.000000e+00> : vector<20x96xf32>
    %208 = tpu.matmul %205, %207, %cst_91 {dimension_numbers = #tpu.dot_dimension_numbers<[1], [0], [0], [1], [0, 0, 1, 1], [], []>} : vector<20x32xbf16>, vector<32x96xbf16>, vector<20x96xf32> -> vector<20x96xf32>
    %209 = arith.truncf %208 : vector<20x96xf32> to vector<20x96xbf16>
    %210 = vector.extract_strided_slice %209 {offsets = [0, 0], sizes = [20, 8], strides = [1, 1]} : vector<20x96xbf16> to vector<20x8xbf16>
    %211 = vector.extract_strided_slice %209 {offsets = [0, 32], sizes = [20, 8], strides = [1, 1]} : vector<20x96xbf16> to vector<20x8xbf16>
    %212 = vector.extract_strided_slice %209 {offsets = [0, 64], sizes = [20, 8], strides = [1, 1]} : vector<20x96xbf16> to vector<20x8xbf16>
    %cst_92 = arith.constant dense<0.000000e+00> : vector<20x20xf32>
    %213 = tpu.matmul %210, %211, %cst_92 {dimension_numbers = #tpu.dot_dimension_numbers<[1], [1], [0], [0], [0, 0, 1, 0], [], []>} : vector<20x8xbf16>, vector<20x8xbf16>, vector<20x20xf32> -> vector<20x20xf32>
    %cst_93 = arith.constant 0.353553385 : f32
    %214 = vector.broadcast %cst_93 : f32 to vector<20x20xf32>
    %215 = arith.mulf %213, %214 : vector<20x20xf32>
    %216 = arith.addf %215, %5 : vector<20x20xf32>
    %cst_94 = arith.constant dense<0xFF800000> : vector<20xf32>
    %217 = vector.multi_reduction <maximumf>, %216, %cst_94 [1] : vector<20x20xf32> to vector<20xf32>
    %218 = vector.shape_cast %217 : vector<20xf32> to vector<20x1xf32>
    %219 = vector.broadcast %218 : vector<20x1xf32> to vector<20x20xf32>
    %220 = arith.subf %216, %219 : vector<20x20xf32>
    %221 = math.exp %220 : vector<20x20xf32>
    %cst_95 = arith.constant dense<0.000000e+00> : vector<20xf32>
    %222 = vector.multi_reduction <add>, %221, %cst_95 [1] : vector<20x20xf32> to vector<20xf32>
    %223 = vector.shape_cast %222 : vector<20xf32> to vector<20x1xf32>
    %224 = tpu.reciprocal %223 {approx = true} : vector<20x1xf32> -> vector<20x1xf32>
    %225 = vector.broadcast %224 : vector<20x1xf32> to vector<20x20xf32>
    %226 = arith.mulf %221, %225 : vector<20x20xf32>
    %227 = arith.truncf %226 : vector<20x20xf32> to vector<20x20xbf16>
    %cst_96 = arith.constant dense<0.000000e+00> : vector<20x8xf32>
    %228 = tpu.matmul %227, %212, %cst_96 {dimension_numbers = #tpu.dot_dimension_numbers<[1], [0], [0], [1], [0, 0, 1, 1], [], []>} : vector<20x20xbf16>, vector<20x8xbf16>, vector<20x8xf32> -> vector<20x8xf32>
    %229 = vector.extract_strided_slice %209 {offsets = [0, 8], sizes = [20, 8], strides = [1, 1]} : vector<20x96xbf16> to vector<20x8xbf16>
    %230 = vector.extract_strided_slice %209 {offsets = [0, 40], sizes = [20, 8], strides = [1, 1]} : vector<20x96xbf16> to vector<20x8xbf16>
    %231 = vector.extract_strided_slice %209 {offsets = [0, 72], sizes = [20, 8], strides = [1, 1]} : vector<20x96xbf16> to vector<20x8xbf16>
    %cst_97 = arith.constant dense<0.000000e+00> : vector<20x20xf32>
    %232 = tpu.matmul %229, %230, %cst_97 {dimension_numbers = #tpu.dot_dimension_numbers<[1], [1], [0], [0], [0, 0, 1, 0], [], []>} : vector<20x8xbf16>, vector<20x8xbf16>, vector<20x20xf32> -> vector<20x20xf32>
    %cst_98 = arith.constant 0.353553385 : f32
    %233 = vector.broadcast %cst_98 : f32 to vector<20x20xf32>
    %234 = arith.mulf %232, %233 : vector<20x20xf32>
    %235 = arith.addf %234, %5 : vector<20x20xf32>
    %cst_99 = arith.constant dense<0xFF800000> : vector<20xf32>
    %236 = vector.multi_reduction <maximumf>, %235, %cst_99 [1] : vector<20x20xf32> to vector<20xf32>
    %237 = vector.shape_cast %236 : vector<20xf32> to vector<20x1xf32>
    %238 = vector.broadcast %237 : vector<20x1xf32> to vector<20x20xf32>
    %239 = arith.subf %235, %238 : vector<20x20xf32>
    %240 = math.exp %239 : vector<20x20xf32>
    %cst_100 = arith.constant dense<0.000000e+00> : vector<20xf32>
    %241 = vector.multi_reduction <add>, %240, %cst_100 [1] : vector<20x20xf32> to vector<20xf32>
    %242 = vector.shape_cast %241 : vector<20xf32> to vector<20x1xf32>
    %243 = tpu.reciprocal %242 {approx = true} : vector<20x1xf32> -> vector<20x1xf32>
    %244 = vector.broadcast %243 : vector<20x1xf32> to vector<20x20xf32>
    %245 = arith.mulf %240, %244 : vector<20x20xf32>
    %246 = arith.truncf %245 : vector<20x20xf32> to vector<20x20xbf16>
    %cst_101 = arith.constant dense<0.000000e+00> : vector<20x8xf32>
    %247 = tpu.matmul %246, %231, %cst_101 {dimension_numbers = #tpu.dot_dimension_numbers<[1], [0], [0], [1], [0, 0, 1, 1], [], []>} : vector<20x20xbf16>, vector<20x8xbf16>, vector<20x8xf32> -> vector<20x8xf32>
    %248 = vector.extract_strided_slice %209 {offsets = [0, 16], sizes = [20, 8], strides = [1, 1]} : vector<20x96xbf16> to vector<20x8xbf16>
    %249 = vector.extract_strided_slice %209 {offsets = [0, 48], sizes = [20, 8], strides = [1, 1]} : vector<20x96xbf16> to vector<20x8xbf16>
    %250 = vector.extract_strided_slice %209 {offsets = [0, 80], sizes = [20, 8], strides = [1, 1]} : vector<20x96xbf16> to vector<20x8xbf16>
    %cst_102 = arith.constant dense<0.000000e+00> : vector<20x20xf32>
    %251 = tpu.matmul %248, %249, %cst_102 {dimension_numbers = #tpu.dot_dimension_numbers<[1], [1], [0], [0], [0, 0, 1, 0], [], []>} : vector<20x8xbf16>, vector<20x8xbf16>, vector<20x20xf32> -> vector<20x20xf32>
    %cst_103 = arith.constant 0.353553385 : f32
    %252 = vector.broadcast %cst_103 : f32 to vector<20x20xf32>
    %253 = arith.mulf %251, %252 : vector<20x20xf32>
    %254 = arith.addf %253, %5 : vector<20x20xf32>
    %cst_104 = arith.constant dense<0xFF800000> : vector<20xf32>
    %255 = vector.multi_reduction <maximumf>, %254, %cst_104 [1] : vector<20x20xf32> to vector<20xf32>
    %256 = vector.shape_cast %255 : vector<20xf32> to vector<20x1xf32>
    %257 = vector.broadcast %256 : vector<20x1xf32> to vector<20x20xf32>
    %258 = arith.subf %254, %257 : vector<20x20xf32>
    %259 = math.exp %258 : vector<20x20xf32>
    %cst_105 = arith.constant dense<0.000000e+00> : vector<20xf32>
    %260 = vector.multi_reduction <add>, %259, %cst_105 [1] : vector<20x20xf32> to vector<20xf32>
    %261 = vector.shape_cast %260 : vector<20xf32> to vector<20x1xf32>
    %262 = tpu.reciprocal %261 {approx = true} : vector<20x1xf32> -> vector<20x1xf32>
    %263 = vector.broadcast %262 : vector<20x1xf32> to vector<20x20xf32>
    %264 = arith.mulf %259, %263 : vector<20x20xf32>
    %265 = arith.truncf %264 : vector<20x20xf32> to vector<20x20xbf16>
    %cst_106 = arith.constant dense<0.000000e+00> : vector<20x8xf32>
    %266 = tpu.matmul %265, %250, %cst_106 {dimension_numbers = #tpu.dot_dimension_numbers<[1], [0], [0], [1], [0, 0, 1, 1], [], []>} : vector<20x20xbf16>, vector<20x8xbf16>, vector<20x8xf32> -> vector<20x8xf32>
    %267 = vector.extract_strided_slice %209 {offsets = [0, 24], sizes = [20, 8], strides = [1, 1]} : vector<20x96xbf16> to vector<20x8xbf16>
    %268 = vector.extract_strided_slice %209 {offsets = [0, 56], sizes = [20, 8], strides = [1, 1]} : vector<20x96xbf16> to vector<20x8xbf16>
    %269 = vector.extract_strided_slice %209 {offsets = [0, 88], sizes = [20, 8], strides = [1, 1]} : vector<20x96xbf16> to vector<20x8xbf16>
    %cst_107 = arith.constant dense<0.000000e+00> : vector<20x20xf32>
    %270 = tpu.matmul %267, %268, %cst_107 {dimension_numbers = #tpu.dot_dimension_numbers<[1], [1], [0], [0], [0, 0, 1, 0], [], []>} : vector<20x8xbf16>, vector<20x8xbf16>, vector<20x20xf32> -> vector<20x20xf32>
    %cst_108 = arith.constant 0.353553385 : f32
    %271 = vector.broadcast %cst_108 : f32 to vector<20x20xf32>
    %272 = arith.mulf %270, %271 : vector<20x20xf32>
    %273 = arith.addf %272, %5 : vector<20x20xf32>
    %cst_109 = arith.constant dense<0xFF800000> : vector<20xf32>
    %274 = vector.multi_reduction <maximumf>, %273, %cst_109 [1] : vector<20x20xf32> to vector<20xf32>
    %275 = vector.shape_cast %274 : vector<20xf32> to vector<20x1xf32>
    %276 = vector.broadcast %275 : vector<20x1xf32> to vector<20x20xf32>
    %277 = arith.subf %273, %276 : vector<20x20xf32>
    %278 = math.exp %277 : vector<20x20xf32>
    %cst_110 = arith.constant dense<0.000000e+00> : vector<20xf32>
    %279 = vector.multi_reduction <add>, %278, %cst_110 [1] : vector<20x20xf32> to vector<20xf32>
    %280 = vector.shape_cast %279 : vector<20xf32> to vector<20x1xf32>
    %281 = tpu.reciprocal %280 {approx = true} : vector<20x1xf32> -> vector<20x1xf32>
    %282 = vector.broadcast %281 : vector<20x1xf32> to vector<20x20xf32>
    %283 = arith.mulf %278, %282 : vector<20x20xf32>
    %284 = arith.truncf %283 : vector<20x20xf32> to vector<20x20xbf16>
    %cst_111 = arith.constant dense<0.000000e+00> : vector<20x8xf32>
    %285 = tpu.matmul %284, %269, %cst_111 {dimension_numbers = #tpu.dot_dimension_numbers<[1], [0], [0], [1], [0, 0, 1, 1], [], []>} : vector<20x20xbf16>, vector<20x8xbf16>, vector<20x8xf32> -> vector<20x8xf32>
    %286 = tpu.concatenate %228, %247, %266, %285 in 1 : vector<20x8xf32>, vector<20x8xf32>, vector<20x8xf32>, vector<20x8xf32> -> vector<20x32xf32>
    %287 = arith.truncf %286 : vector<20x32xf32> to vector<20x32xbf16>
    %c1_112 = arith.constant 1 : index
    %c0_113 = arith.constant 0 : index
    %c0_114 = arith.constant 0 : index
    %288 = vector.load %arg9[%c1_112, %c0_113, %c0_114] : memref<2x32x32xbf16, #tpu.memory_space<vmem>>, vector<1x32x32xbf16>
    %289 = vector.shape_cast %288 : vector<1x32x32xbf16> to vector<32x32xbf16>
    %cst_115 = arith.constant dense<0.000000e+00> : vector<20x32xf32>
    %290 = tpu.matmul %287, %289, %cst_115 {dimension_numbers = #tpu.dot_dimension_numbers<[1], [0], [0], [1], [0, 0, 1, 1], [], []>} : vector<20x32xbf16>, vector<32x32xbf16>, vector<20x32xf32> -> vector<20x32xf32>
    %291 = arith.addf %178, %290 : vector<20x32xf32>
    %c1_116 = arith.constant 1 : index
    %c0_117 = arith.constant 0 : index
    %c0_118 = arith.constant 0 : index
    %292 = vector.load %arg10[%c1_116, %c0_117, %c0_118] : memref<2x1x32xf32, #tpu.memory_space<vmem>>, vector<1x1x32xf32>
    %293 = vector.shape_cast %292 : vector<1x1x32xf32> to vector<1x32xf32>
    %294 = vector.broadcast %293 : vector<1x32xf32> to vector<20x32xf32>
    %295 = arith.addf %291, %294 : vector<20x32xf32>
    %c1_119 = arith.constant 1 : index
    %c0_120 = arith.constant 0 : index
    %c0_121 = arith.constant 0 : index
    %296 = vector.load %arg11[%c1_119, %c0_120, %c0_121] : memref<2x1x32xf32, #tpu.memory_space<vmem>>, vector<1x1x32xf32>
    %297 = vector.shape_cast %296 : vector<1x1x32xf32> to vector<1x32xf32>
    %c1_122 = arith.constant 1 : index
    %c0_123 = arith.constant 0 : index
    %c0_124 = arith.constant 0 : index
    %298 = vector.load %arg12[%c1_122, %c0_123, %c0_124] : memref<2x1x32xf32, #tpu.memory_space<vmem>>, vector<1x1x32xf32>
    %299 = vector.shape_cast %298 : vector<1x1x32xf32> to vector<1x32xf32>
    %cst_125 = arith.constant dense<0.000000e+00> : vector<20xf32>
    %300 = vector.multi_reduction <add>, %295, %cst_125 [1] : vector<20x32xf32> to vector<20xf32>
    %301 = vector.shape_cast %300 : vector<20xf32> to vector<20x1xf32>
    %cst_126 = arith.constant 3.200000e+01 : f32
    %302 = vector.broadcast %cst_126 : f32 to vector<20x1xf32>
    %303 = arith.divf %301, %302 : vector<20x1xf32>
    %304 = vector.broadcast %303 : vector<20x1xf32> to vector<20x32xf32>
    %305 = arith.subf %295, %304 : vector<20x32xf32>
    %306 = arith.mulf %305, %305 : vector<20x32xf32>
    %cst_127 = arith.constant dense<0.000000e+00> : vector<20xf32>
    %307 = vector.multi_reduction <add>, %306, %cst_127 [1] : vector<20x32xf32> to vector<20xf32>
    %308 = vector.shape_cast %307 : vector<20xf32> to vector<20x1xf32>
    %cst_128 = arith.constant 3.200000e+01 : f32
    %309 = vector.broadcast %cst_128 : f32 to vector<20x1xf32>
    %310 = arith.divf %308, %309 : vector<20x1xf32>
    %311 = vector.broadcast %303 : vector<20x1xf32> to vector<20x32xf32>
    %312 = arith.subf %295, %311 : vector<20x32xf32>
    %cst_129 = arith.constant 9.99999974E-6 : f32
    %313 = vector.broadcast %cst_129 : f32 to vector<20x1xf32>
    %314 = arith.addf %310, %313 : vector<20x1xf32>
    %315 = math.rsqrt %314 : vector<20x1xf32>
    %316 = vector.broadcast %315 : vector<20x1xf32> to vector<20x32xf32>
    %317 = arith.mulf %312, %316 : vector<20x32xf32>
    %318 = vector.broadcast %297 : vector<1x32xf32> to vector<20x32xf32>
    %319 = arith.mulf %317, %318 : vector<20x32xf32>
    %320 = vector.broadcast %299 : vector<1x32xf32> to vector<20x32xf32>
    %321 = arith.addf %319, %320 : vector<20x32xf32>
    %322 = arith.truncf %321 : vector<20x32xf32> to vector<20x32xbf16>
    %c1_130 = arith.constant 1 : index
    %c0_131 = arith.constant 0 : index
    %c0_132 = arith.constant 0 : index
    %323 = vector.load %arg13[%c1_130, %c0_131, %c0_132] : memref<2x32x128xbf16, #tpu.memory_space<vmem>>, vector<1x32x128xbf16>
    %324 = vector.shape_cast %323 : vector<1x32x128xbf16> to vector<32x128xbf16>
    %cst_133 = arith.constant dense<0.000000e+00> : vector<20x128xf32>
    %325 = tpu.matmul %322, %324, %cst_133 {dimension_numbers = #tpu.dot_dimension_numbers<[1], [0], [0], [1], [0, 0, 1, 1], [], []>} : vector<20x32xbf16>, vector<32x128xbf16>, vector<20x128xf32> -> vector<20x128xf32>
    %c1_134 = arith.constant 1 : index
    %c0_135 = arith.constant 0 : index
    %c0_136 = arith.constant 0 : index
    %326 = vector.load %arg14[%c1_134, %c0_135, %c0_136] : memref<2x1x128xf32, #tpu.memory_space<vmem>>, vector<1x1x128xf32>
    %327 = vector.shape_cast %326 : vector<1x1x128xf32> to vector<1x128xf32>
    %328 = vector.broadcast %327 : vector<1x128xf32> to vector<20x128xf32>
    %329 = arith.addf %325, %328 : vector<20x128xf32>
    %cst_137 = arith.constant 5.000000e-01 : f32
    %330 = vector.broadcast %cst_137 : f32 to vector<20x128xf32>
    %331 = arith.mulf %330, %329 : vector<20x128xf32>
    %332 = arith.mulf %329, %329 : vector<20x128xf32>
    %333 = arith.mulf %332, %329 : vector<20x128xf32>
    %cst_138 = arith.constant 4.471500e-02 : f32
    %334 = vector.broadcast %cst_138 : f32 to vector<20x128xf32>
    %335 = arith.mulf %334, %333 : vector<20x128xf32>
    %336 = arith.addf %329, %335 : vector<20x128xf32>
    %cst_139 = arith.constant 0.797884583 : f32
    %337 = vector.broadcast %cst_139 : f32 to vector<20x128xf32>
    %338 = arith.mulf %337, %336 : vector<20x128xf32>
    %339 = math.tanh %338 : vector<20x128xf32>
    %cst_140 = arith.constant 1.000000e+00 : f32
    %340 = vector.broadcast %cst_140 : f32 to vector<20x128xf32>
    %341 = arith.addf %340, %339 : vector<20x128xf32>
    %342 = arith.mulf %331, %341 : vector<20x128xf32>
    %343 = arith.truncf %342 : vector<20x128xf32> to vector<20x128xbf16>
    %c1_141 = arith.constant 1 : index
    %c0_142 = arith.constant 0 : index
    %c0_143 = arith.constant 0 : index
    %344 = vector.load %arg15[%c1_141, %c0_142, %c0_143] : memref<2x128x32xbf16, #tpu.memory_space<vmem>>, vector<1x128x32xbf16>
    %345 = vector.shape_cast %344 : vector<1x128x32xbf16> to vector<128x32xbf16>
    %cst_144 = arith.constant dense<0.000000e+00> : vector<20x32xf32>
    %346 = tpu.matmul %343, %345, %cst_144 {dimension_numbers = #tpu.dot_dimension_numbers<[1], [0], [0], [1], [0, 0, 1, 1], [], []>} : vector<20x128xbf16>, vector<128x32xbf16>, vector<20x32xf32> -> vector<20x32xf32>
    %347 = arith.addf %295, %346 : vector<20x32xf32>
    %c1_145 = arith.constant 1 : index
    %c0_146 = arith.constant 0 : index
    %c0_147 = arith.constant 0 : index
    %348 = vector.load %arg16[%c1_145, %c0_146, %c0_147] : memref<2x1x32xf32, #tpu.memory_space<vmem>>, vector<1x1x32xf32>
    %349 = vector.shape_cast %348 : vector<1x1x32xf32> to vector<1x32xf32>
    %350 = vector.broadcast %349 : vector<1x32xf32> to vector<20x32xf32>
    %351 = arith.addf %347, %350 : vector<20x32xf32>
    %c0_148 = arith.constant 0 : index
    %c0_149 = arith.constant 0 : index
    %352 = vector.load %arg5[%c0_148, %c0_149] : memref<2x20xf32, #tpu.memory_space<vmem>>, vector<2x20xf32>
    %cst_150 = arith.constant dense<0.000000e+00> : vector<2x32xf32>
    %353 = tpu.matmul %352, %351, %cst_150 {dimension_numbers = #tpu.dot_dimension_numbers<[1], [0], [0], [1], [0, 0, 1, 1], [], []>} : vector<2x20xf32>, vector<20x32xf32>, vector<2x32xf32> -> vector<2x32xf32>
    %c0_151 = arith.constant 0 : index
    %c0_152 = arith.constant 0 : index
    %354 = vector.load %arg17[%c0_151, %c0_152] : memref<1x32xf32, #tpu.memory_space<vmem>>, vector<1x32xf32>
    %c0_153 = arith.constant 0 : index
    %c0_154 = arith.constant 0 : index
    %355 = vector.load %arg18[%c0_153, %c0_154] : memref<1x32xf32, #tpu.memory_space<vmem>>, vector<1x32xf32>
    %cst_155 = arith.constant dense<0.000000e+00> : vector<2xf32>
    %356 = vector.multi_reduction <add>, %353, %cst_155 [1] : vector<2x32xf32> to vector<2xf32>
    %357 = vector.shape_cast %356 : vector<2xf32> to vector<2x1xf32>
    %cst_156 = arith.constant 3.200000e+01 : f32
    %358 = vector.broadcast %cst_156 : f32 to vector<2x1xf32>
    %359 = arith.divf %357, %358 : vector<2x1xf32>
    %360 = vector.broadcast %359 : vector<2x1xf32> to vector<2x32xf32>
    %361 = arith.subf %353, %360 : vector<2x32xf32>
    %362 = arith.mulf %361, %361 : vector<2x32xf32>
    %cst_157 = arith.constant dense<0.000000e+00> : vector<2xf32>
    %363 = vector.multi_reduction <add>, %362, %cst_157 [1] : vector<2x32xf32> to vector<2xf32>
    %364 = vector.shape_cast %363 : vector<2xf32> to vector<2x1xf32>
    %cst_158 = arith.constant 3.200000e+01 : f32
    %365 = vector.broadcast %cst_158 : f32 to vector<2x1xf32>
    %366 = arith.divf %364, %365 : vector<2x1xf32>
    %367 = vector.broadcast %359 : vector<2x1xf32> to vector<2x32xf32>
    %368 = arith.subf %353, %367 : vector<2x32xf32>
    %cst_159 = arith.constant 9.99999974E-6 : f32
    %369 = vector.broadcast %cst_159 : f32 to vector<2x1xf32>
    %370 = arith.addf %366, %369 : vector<2x1xf32>
    %371 = math.rsqrt %370 : vector<2x1xf32>
    %372 = vector.broadcast %371 : vector<2x1xf32> to vector<2x32xf32>
    %373 = arith.mulf %368, %372 : vector<2x32xf32>
    %374 = vector.broadcast %354 : vector<1x32xf32> to vector<2x32xf32>
    %375 = arith.mulf %373, %374 : vector<2x32xf32>
    %376 = vector.broadcast %355 : vector<1x32xf32> to vector<2x32xf32>
    %377 = arith.addf %375, %376 : vector<2x32xf32>
    %378 = arith.truncf %377 : vector<2x32xf32> to vector<2x32xbf16>
    %c0_160 = arith.constant 0 : index
    %c0_161 = arith.constant 0 : index
    %379 = vector.load %arg19[%c0_160, %c0_161] : memref<32x128xbf16, #tpu.memory_space<vmem>>, vector<32x128xbf16>
    %cst_162 = arith.constant dense<0.000000e+00> : vector<2x128xf32>
    %380 = tpu.matmul %378, %379, %cst_162 {dimension_numbers = #tpu.dot_dimension_numbers<[1], [0], [0], [1], [0, 0, 1, 1], [], []>} : vector<2x32xbf16>, vector<32x128xbf16>, vector<2x128xf32> -> vector<2x128xf32>
    %c0_163 = arith.constant 0 : index
    %c0_164 = arith.constant 0 : index
    %381 = vector.load %arg20[%c0_163, %c0_164] : memref<1x128xf32, #tpu.memory_space<vmem>>, vector<1x128xf32>
    %382 = vector.broadcast %381 : vector<1x128xf32> to vector<2x128xf32>
    %383 = arith.addf %380, %382 : vector<2x128xf32>
    %c0_165 = arith.constant 0 : index
    %c0_166 = arith.constant 0 : index
    %384 = vector.load %arg21[%c0_165, %c0_166] : memref<2x128xf32, #tpu.memory_space<vmem>>, vector<2x128xf32>
    tpu.vector_store %arg21[%c0_165, %c0_166], %383 {strides = array<i32>} : memref<2x128xf32, #tpu.memory_space<vmem>>, vector<2x128xf32>,
    return
  }
  func.func @transform_0(%arg0: i32) -> (i32, i32) {
    %c0_i32 = arith.constant 0 : i32
    %c0_i32_0 = arith.constant 0 : i32
    %c0_i32_1 = arith.constant 0 : i32
    return %c0_i32, %c0_i32_0 : i32, i32
  }
  func.func @transform_1(%arg0: i32) -> (i32, i32) {
    %c0_i32 = arith.constant 0 : i32
    %c0_i32_0 = arith.constant 0 : i32
    %c0_i32_1 = arith.constant 0 : i32
    return %c0_i32, %c0_i32_0 : i32, i32
  }
  func.func @transform_2(%arg0: i32) -> (i32, i32) {
    %c0_i32 = arith.constant 0 : i32
    %c0_i32_0 = arith.constant 0 : i32
    %c0_i32_1 = arith.constant 0 : i32
    return %c0_i32, %c0_i32_0 : i32, i32
  }
  func.func @transform_3(%arg0: i32) -> (i32, i32) {
    %c0_i32 = arith.constant 0 : i32
    %c0_i32_0 = arith.constant 0 : i32
    %c0_i32_1 = arith.constant 0 : i32
    return %c0_i32, %c0_i32_0 : i32, i32
  }
  func.func @transform_4(%arg0: i32) -> (i32, i32) {
    %c0_i32 = arith.constant 0 : i32
    %c0_i32_0 = arith.constant 0 : i32
    %c0_i32_1 = arith.constant 0 : i32
    return %c0_i32, %c0_i32_0 : i32, i32
  }
  func.func @transform_5(%arg0: i32) -> (i32, i32, i32) {
    %c0_i32 = arith.constant 0 : i32
    %c0_i32_0 = arith.constant 0 : i32
    %c0_i32_1 = arith.constant 0 : i32
    %c0_i32_2 = arith.constant 0 : i32
    return %c0_i32, %c0_i32_0, %c0_i32_1 : i32, i32, i32
  }
  func.func @transform_6(%arg0: i32) -> (i32, i32, i32) {
    %c0_i32 = arith.constant 0 : i32
    %c0_i32_0 = arith.constant 0 : i32
    %c0_i32_1 = arith.constant 0 : i32
    %c0_i32_2 = arith.constant 0 : i32
    return %c0_i32, %c0_i32_0, %c0_i32_1 : i32, i32, i32
  }
  func.func @transform_7(%arg0: i32) -> (i32, i32, i32) {
    %c0_i32 = arith.constant 0 : i32
    %c0_i32_0 = arith.constant 0 : i32
    %c0_i32_1 = arith.constant 0 : i32
    %c0_i32_2 = arith.constant 0 : i32
    return %c0_i32, %c0_i32_0, %c0_i32_1 : i32, i32, i32
  }
  func.func @transform_8(%arg0: i32) -> (i32, i32, i32) {
    %c0_i32 = arith.constant 0 : i32
    %c0_i32_0 = arith.constant 0 : i32
    %c0_i32_1 = arith.constant 0 : i32
    %c0_i32_2 = arith.constant 0 : i32
    return %c0_i32, %c0_i32_0, %c0_i32_1 : i32, i32, i32
  }
  func.func @transform_9(%arg0: i32) -> (i32, i32, i32) {
    %c0_i32 = arith.constant 0 : i32
    %c0_i32_0 = arith.constant 0 : i32
    %c0_i32_1 = arith.constant 0 : i32
    %c0_i32_2 = arith.constant 0 : i32
    return %c0_i32, %c0_i32_0, %c0_i32_1 : i32, i32, i32
  }
  func.func @transform_10(%arg0: i32) -> (i32, i32, i32) {
    %c0_i32 = arith.constant 0 : i32
    %c0_i32_0 = arith.constant 0 : i32
    %c0_i32_1 = arith.constant 0 : i32
    %c0_i32_2 = arith.constant 0 : i32
    return %c0_i32, %c0_i32_0, %c0_i32_1 : i32, i32, i32
  }
  func.func @transform_11(%arg0: i32) -> (i32, i32, i32) {
    %c0_i32 = arith.constant 0 : i32
    %c0_i32_0 = arith.constant 0 : i32
    %c0_i32_1 = arith.constant 0 : i32
    %c0_i32_2 = arith.constant 0 : i32
    return %c0_i32, %c0_i32_0, %c0_i32_1 : i32, i32, i32
  }
  func.func @transform_12(%arg0: i32) -> (i32, i32, i32) {
    %c0_i32 = arith.constant 0 : i32
    %c0_i32_0 = arith.constant 0 : i32
    %c0_i32_1 = arith.constant 0 : i32
    %c0_i32_2 = arith.constant 0 : i32
    return %c0_i32, %c0_i32_0, %c0_i32_1 : i32, i32, i32
  }
  func.func @transform_13(%arg0: i32) -> (i32, i32, i32) {
    %c0_i32 = arith.constant 0 : i32
    %c0_i32_0 = arith.constant 0 : i32
    %c0_i32_1 = arith.constant 0 : i32
    %c0_i32_2 = arith.constant 0 : i32
    return %c0_i32, %c0_i32_0, %c0_i32_1 : i32, i32, i32
  }
  func.func @transform_14(%arg0: i32) -> (i32, i32, i32) {
    %c0_i32 = arith.constant 0 : i32
    %c0_i32_0 = arith.constant 0 : i32
    %c0_i32_1 = arith.constant 0 : i32
    %c0_i32_2 = arith.constant 0 : i32
    return %c0_i32, %c0_i32_0, %c0_i32_1 : i32, i32, i32
  }
  func.func @transform_15(%arg0: i32) -> (i32, i32, i32) {
    %c0_i32 = arith.constant 0 : i32
    %c0_i32_0 = arith.constant 0 : i32
    %c0_i32_1 = arith.constant 0 : i32
    %c0_i32_2 = arith.constant 0 : i32
    return %c0_i32, %c0_i32_0, %c0_i32_1 : i32, i32, i32
  }
  func.func @transform_16(%arg0: i32) -> (i32, i32) {
    %c0_i32 = arith.constant 0 : i32
    %c0_i32_0 = arith.constant 0 : i32
    %c0_i32_1 = arith.constant 0 : i32
    return %c0_i32, %c0_i32_0 : i32, i32
  }
  func.func @transform_17(%arg0: i32) -> (i32, i32) {
    %c0_i32 = arith.constant 0 : i32
    %c0_i32_0 = arith.constant 0 : i32
    %c0_i32_1 = arith.constant 0 : i32
    return %c0_i32, %c0_i32_0 : i32, i32
  }
  func.func @transform_18(%arg0: i32) -> (i32, i32) {
    %c0_i32 = arith.constant 0 : i32
    %c0_i32_0 = arith.constant 0 : i32
    %c0_i32_1 = arith.constant 0 : i32
    return %c0_i32, %c0_i32_0 : i32, i32
  }
  func.func @transform_19(%arg0: i32) -> (i32, i32) {
    %c0_i32 = arith.constant 0 : i32
    %c0_i32_0 = arith.constant 0 : i32
    %c0_i32_1 = arith.constant 0 : i32
    return %c0_i32, %c0_i32_0 : i32, i32
  }
  func.func @transform_20(%arg0: i32) -> (i32, i32) {
    %c0_i32 = arith.constant 0 : i32
    %c0_i32_0 = arith.constant 0 : i32
    %c0_i32_1 = arith.constant 0 : i32
    return %c0_i32, %c0_i32_0 : i32, i32
  }
}

</mosaic_0001>

<bundles_post_ra>
// kernel: tile.9
= control target key start
LH: loop header
LB: loop body
LE: loop exit
PB: predicated region body
PF: predicated region fallthrough
CT: control target
= control target key end

     0   :  { %vm3_vm0 = vcmask 261120   ;;  %s60_s0 = inlined_call_operand.vmem [shape: f32[4,5,32], index: 0, kind: input, shape index: {}]   ;;  %s61_s1 = inlined_call_operand.vmem [shape: f32[20,32], index: 1, kind: output, shape index: {}]  }
   0x1   :  { %v2_v0 = vld [vmem:[%s60_s0] sm:$0x1f]   ;;  %v20_v1 = vld [vmem:[%s60_s0 + $0x8] sm:$0x1f]   ;;  %v22_v2 = vld [vmem:[%s60_s0 + $0x10] sm:$0x1f]  }
   0x2   :  { %4 = vst.msk [vmem:[%s61_s1] sm:$0x1f] %vm3_vm0, %v2_v0   ;;  %21 = vst.msk [vmem:[%s61_s1 + $0x5] sm:$0x1f] %vm3_vm0, %v20_v1   ;;  %v24_v3 = vld [vmem:[%s60_s0 + $0x18] sm:$0x1f]  }
   0x3   :  { %23 = vst.msk [vmem:[%s61_s1 + $0xa] sm:$0x1f] %vm3_vm0, %v22_v2   ;;  %25 = vst.msk [vmem:[%s61_s1 + $0xf] sm:$0x1f] %vm3_vm0, %v24_v3  }

// kernel: vit_forward.1
= control target key start
LH: loop header
LB: loop body
LE: loop exit
PB: predicated region body
PF: predicated region fallthrough
CT: control target
= control target key end

     0   :  { %s4527_s0 = inlined_call_operand.vmem [shape: bf16[20,192], index: 0, kind: input, shape index: {}]   ;;  %s4528_s1 = inlined_call_operand.vmem [shape: bf16[192,32], index: 1, kind: input, shape index: {}]   ;;  %s4529_s2 = inlined_call_operand.vmem [shape: f32[20,32], index: 2, kind: input, shape index: {}]   ;;  %s4530_s3 = inlined_call_operand.vmem [shape: f32[20,20], index: 3, kind: input, shape index: {}]   ;;  %s4531_s4 = inlined_call_operand.vmem [shape: f32[2,20], index: 4, kind: input, shape index: {}]   ;;  %s4532_s5 = inlined_call_operand.vmem [shape: f32[2,1,32], index: 5, kind: input, shape index: {}]   ;;  %s4533_s6 = inlined_call_operand.vmem [shape: f32[2,1,32], index: 6, kind: input, shape index: {}]   ;;  %s4534_s7 = inlined_call_operand.vmem [shape: bf16[2,32,96], index: 7, kind: input, shape index: {}]   ;;  %s4535_s8 = inlined_call_operand.vmem [shape: bf16[2,32,32], index: 8, kind: input, shape index: {}]   ;;  %s4536_s9 = inlined_call_operand.vmem [shape: f32[2,1,32], index: 9, kind: input, shape index: {}]   ;;  %s4537_s10 = inlined_call_operand.vmem [shape: f32[2,1,32], index: 10, kind: input, shape index: {}]   ;;  %s4538_s11 = inlined_call_operand.vmem [shape: f32[2,1,32], index: 11, kind: input, shape index: {}]   ;;  %s4539_s12 = inlined_call_operand.vmem [shape: bf16[2,32,128], index: 12, kind: input, shape index: {}]   ;;  %s4540_s13 = inlined_call_operand.vmem [shape: f32[2,1,128], index: 13, kind: input, shape index: {}]   ;;  %s4541_s14 = inlined_call_operand.vmem [shape: bf16[2,128,32], index: 14, kind: input, shape index: {}]   ;;  %s4542_s15 = inlined_call_operand.vmem [shape: f32[2,1,32], index: 15, kind: input, shape index: {}]   ;;  %s4543_s16 = inlined_call_operand.vmem [shape: f32[1,32], index: 16, kind: input, shape index: {}]   ;;  %s4544_s17 = inlined_call_operand.vmem [shape: f32[1,32], index: 17, kind: input, shape index: {}]   ;;  %s4545_s18 = inlined_call_operand.vmem [shape: bf16[32,128], index: 18, kind: input, shape index: {}]   ;;  %s4546_s19 = inlined_call_operand.vmem [shape: f32[1,128], index: 19, kind: input, shape index: {}]   ;;  %s4547_s20 = inlined_call_operand.hbm [shape: f32[2,128], index: 20, kind: output, shape index: {}]  }
   0x1   :  { %4568 = sst [smem:[#allocation5_spill]] %s4527_s0 }
   0x2   :  { %4569 = sst [smem:[#allocation6_spill]] %s4528_s1 }
   0x3   :  { %4570 = sst [smem:[#allocation7_spill]] %s4529_s2 }
   0x4   :  { %4571 = sst [smem:[#allocation8_spill]] %s4530_s3 }
   0x5   :  { %4572 = sst [smem:[#allocation9_spill]] %s4531_s4 }
   0x6   :  { %s4573_s23 = sld [smem:[#allocation6_spill]]  ;;  %v3705_v1 = vmov 0   ;;  %vm184_vm0 = vcmask 523264   ;;  %s4574_s0 = sld [smem:[#allocation5_spill]] }
   0x7   :  { %191 = vmatprep.subr.bf16.mxu0 %v3705_v1 }
   0xc   :  { %v3497_v0 = vld [vmem:[%s4573_s23] sm:$0xff]   ;;  %v3498_v2 = vld [vmem:[%s4573_s23 + $0x8] sm:$0xff]   ;;  %v3499_v3 = vld [vmem:[%s4573_s23 + $0x10] sm:$0xff]  }
   0xd   :  { %192 = vmatpush1.bf16.msra.mxu0 %v3497_v0  ;;  %v3500_v4 = vld [vmem:[%s4573_s23 + $0x18] sm:$0xff]   ;;  %v3501_v5 = vld [vmem:[%s4573_s23 + $0x20] sm:$0xff]   ;;  %v3502_v7 = vld [vmem:[%s4573_s23 + $0x28] sm:$0xff]  }
   0xe   :  { %193 = vmatprep.subr.bf16.mxu0 %v3705_v1  ;;  %v3511_v6 = vld [vmem:[%s4574_s0 + $0x4] ss:$8 sps:$4 sm:$0xff]   ;;  %v3503_v8 = vld [vmem:[%s4573_s23 + $0x30] sm:$0xff]   ;;  %v3504_v9 = vld [vmem:[%s4573_s23 + $0x38] sm:$0xff]  }
   0xf   :  { %2942 = vmatprep.mubr.msk.bf16.mxu0 %vm184_vm0, %v3511_v6  ;;  %v3505_v10 = vld [vmem:[%s4573_s23 + $0x40] sm:$0xff]   ;;  %v3506_v11 = vld [vmem:[%s4573_s23 + $0x48] sm:$0xff]  }
  0x11   :  { %194 = vmatpush1.bf16.msra.mxu0 %v3498_v2 }
  0x12   :  { %195 = vmatprep.subr.bf16.mxu0 %v3705_v1 }
  0x15   :  { %196 = vmatpush1.bf16.msra.mxu0 %v3499_v3 }
  0x16   :  { %197 = vmatprep.subr.bf16.mxu0 %v3705_v1 }
  0x19   :  { %198 = vmatpush1.bf16.msra.mxu0 %v3500_v4 }
  0x1a   :  { %199 = vmatprep.subr.bf16.mxu0 %v3705_v1 }
  0x1d   :  { %200 = vmatpush1.bf16.msra.mxu0 %v3501_v5 }
  0x1e   :  { %201 = vmatprep.subr.bf16.mxu0 %v3705_v1 }
  0x21   :  { %202 = vmatpush1.bf16.msra.mxu0 %v3502_v7 }
  0x22   :  { %203 = vmatprep.subr.bf16.mxu0 %v3705_v1 }
  0x25   :  { %204 = vmatpush1.bf16.msra.mxu0 %v3503_v8 }
  0x26   :  { %205 = vmatprep.subr.bf16.mxu0 %v3705_v1 }
  0x29   :  { %206 = vmatpush1.bf16.msra.mxu0 %v3504_v9 }
  0x2a   :  { %207 = vmatprep.subr.bf16.mxu0 %v3705_v1 }
  0x2d   :  { %208 = vmatpush1.bf16.msra.mxu0 %v3505_v10 }
  0x2e   :  { %25 = vsyncpa [#allocation3], 0  ;;  %209 = vmatprep.subr.bf16.mxu0 %v3705_v1  ;;  %v3507_v12 = vld [vmem:[%s4573_s23 + $0x50] sm:$0xff]   ;;  %v3508_v13 = vld [vmem:[%s4573_s23 + $0x58] sm:$0xff]   ;;  %s4575_s26 = sld [smem:[#allocation7_spill]]  ;;  %vm244_vm1 = vcmask 261120  }
  0x2f   :  { %v69_v14 = vld [vmem:[%s4574_s0 + $0x10] sm:$0x33]  ;;  %v3509_v15 = vld [vmem:[%s4574_s0] ss:$8 sps:$4 sm:$0xff]   ;;  %vm251_vm2 = vcmask 257024   ;;  %s3706_s25 = smov 96  }
  0x30   :  { %v2929_v16 = vcombine.high %v69_v14, %v69_v14  ;;  %v2928_v17 = vcombine.low %v69_v14, %v69_v14  ;;  %v3514_v50 = vld [vmem:[%s4534_s7] sm:$0xff]   ;;  %v3515_v51 = vld [vmem:[%s4534_s7 + $0x8] sm:$0xff]   ;;  %vm384_vm3 = vcmask 64512   ;;  %s4576_s23 = sld [smem:[#allocation8_spill]]  ;;  %vm451_vm4 = vcmask 162816   ;;  %s3707_s29 = smov 64  }
  0x31   :  { %210 = vmatpush1.bf16.msra.mxu0 %v3506_v11  ;;  %3188 = vmatprep.subr.bf16.mxu1 %v3514_v50  ;;  %v2944_v63 = vld [vmem:[%s4532_s5] ss:$0 sm:$0xff]  ;;  %vm458_vm5 = vcmask 158720   ;;  %s3708_s30 = smov 88   ;;  %s3709_s21 = smov 120   ;;  %vm499_vm6 = vcmask 1041408  }
  0x32   :  { %211 = vmatprep.subr.bf16.mxu0 %v3705_v1  ;;  %3189 = vmatpush3.bf16.msra.mxu1 %v3514_v50  ;;  %v2945_v3 = vld [vmem:[%s4533_s6] ss:$0 sm:$0xff]  ;;  %s3710_s1 = smov 80   ;;  %s4566_s22 = smov 112   ;;  %vm1103_vm7 = vcmask 130048   ;;  %vm1107_vm8 = vcmask 195584  }
  0x33   :  { %3190 = vmatprep.subr.bf16.mxu1 %v3515_v51  ;;  %s4554_s24 = smov 104   ;;  %s4556_s2 = smov 72   ;;  %vm3721_vm9 = vmmov 0   ;;  %vm2740_vm10 = vcmask 1043456   ;;  %vm2816_vm11 = vcmask 254976  }
  0x34   :  { %v94_v18 = vld [vmem:[%s4575_s26] sm:$0xff]  ;;  %v95_v20 = vld [vmem:[%s4575_s26 + $0x8] sm:$0xff]  ;;  %v96_v27 = vld [vmem:[%s4575_s26 + $0x10] sm:$0xf]  ;;  %s3714_s3 = smov 56   ;;  %s4552_s26 = smov 40  }
  0x35   :  { %212 = vmatpush1.bf16.msra.mxu0 %v3507_v12  ;;  %s4564_s27 = smov 48   ;;  %s4562_s0 = smov 8  }
  0x36   :  { %213 = vmatprep.subr.bf16.mxu0 %v3705_v1  ;;  %3191 = vmatpush3.bf16.msra.mxu1 %v3515_v51  ;;  %s4558_s28 = smov 24  }
  0x39   :  { %214 = vmatpush1.bf16.msra.mxu0 %v3508_v13 }
  0x3c   :  { %224 = vmatmul.mubr.bf16.vlgmr.msra.gmra.mrb[0].mxu0 %v3509_v15 }
  0x3d   :  { %2943 = vmatprep.mubr.msk.bf16.mxu0 %vm184_vm0, %v2929_v16 }
  0x44   :  { %232 = vmatmul.mubr.bf16.gmra.mrb[4].mxu0 %v2928_v17 }
 0x10f   :  { %v225_v19 = vpop.f32.mrb[0].mxu0 }
 0x110   :  { %v3882_v21 = vadd.f32 %v225_v19, %v94_v18  ;;  %v227_v22 = vpop.f32.mrb[1].mxu0 }
 0x111   :  { %v228_v23 = vpop.f32.mrb[2].mxu0 }
 0x112   :  { %v3884_v24 = vadd.f32 %v228_v23, %v95_v20  ;;  %v230_v25 = vpop.f32.mrb[3].mxu0  ;;  %v245_v26 = vsel %vm244_vm1, %v3882_v21, 0.0 }
 0x113   :  { %246 = vadd.xlane.f32.xlu0 %v245_v26 }
 0x114   :  { %v248_v28 = vsel %vm244_vm1, %v3884_v24, 0.0 }
 0x117   :  { %v233_v29 = vpop.f32.mrb[4].mxu0  ;;  %249 = vadd.xlane.f32.xlu0 %v248_v28 }
 0x118   :  { %v3893_v30 = vadd.f32 %v233_v29, %v96_v27  ;;  %v235_v31 = vpop.f32.mrb[5].mxu0  ;;  %v3936_v27 = vld [vmem:[%s4576_s23] sm:$0xff] }
 0x119   :  { %v236_v32 = vpop.f32.mrb[6].mxu0 }
 0x11a   :  { %v237_v33 = vpop.f32.mrb[7].mxu0  ;;  %v252_v34 = vsel %vm251_vm2, %v3893_v30, 0.0  ;;  %v3941_v32 = vld [vmem:[%s4576_s23 + $0x8] sm:$0xff] }
 0x11b   :  { %253 = vadd.xlane.f32.xlu1 %v252_v34 }
 0x1a0   :  { %v247_v35 = vpop.xlane.xlu0 %246 }
 0x1a1   :  { %v256_v36 = vmul.f32 0.03125, %v247_v35 }
 0x1a3   :  { %v259_v37 = vsub.f32 %v3882_v21, %v256_v36  ;;  %v3947_v36 = vld [vmem:[%s4576_s23 + $0x10] sm:$0xf] }
 0x1a4   :  { %v250_v38 = vpop.xlane.xlu0 %249 }
 0x1a5   :  { %v257_v39 = vmul.f32 0.03125, %v250_v38  ;;  %v262_v40 = vmul.f32 %v259_v37, %v259_v37 }
 0x1a7   :  { %v260_v41 = vsub.f32 %v3884_v24, %v257_v39  ;;  %v265_v42 = vsel %vm244_vm1, %v262_v40, 0.0 }
 0x1a8   :  { %v254_v43 = vpop.xlane.xlu1 %253  ;;  %266 = vadd.xlane.f32.xlu1 %v265_v42 }
 0x1a9   :  { %v258_v44 = vmul.f32 0.03125, %v254_v43  ;;  %v263_v45 = vmul.f32 %v260_v41, %v260_v41 }
 0x1ab   :  { %v261_v46 = vsub.f32 %v3893_v30, %v258_v44  ;;  %v268_v47 = vsel %vm244_vm1, %v263_v45, 0.0 }
 0x1ac   :  { %269 = vadd.xlane.f32.xlu0 %v268_v47 }
 0x1ad   :  { %v264_v48 = vmul.f32 %v261_v46, %v261_v46 }
 0x1af   :  { %v271_v49 = vsel %vm251_vm2, %v264_v48, 0.0 }
 0x1b0   :  { %272 = vadd.xlane.f32.xlu1 %v271_v49 }
 0x235   :  { %v267_v52 = vpop.xlane.xlu1 %266 }
 0x236   :  { %v274_v53 = vmul.f32 0.03125, %v267_v52 }
 0x238   :  { %v277_v54 = vadd.f32 1e-05, %v274_v53 }
 0x239   :  { %v270_v55 = vpop.xlane.xlu0 %269 }
 0x23a   :  { %3544 = vrsqrt.f32 %v277_v54  ;;  %v275_v56 = vmul.f32 0.03125, %v270_v55 }
 0x23c   :  { %v278_v57 = vadd.f32 1e-05, %v275_v56 }
 0x23d   :  { %v273_v58 = vpop.xlane.xlu1 %272 }
 0x23e   :  { %3546 = vrsqrt.f32 %v278_v57  ;;  %v276_v59 = vmul.f32 0.03125, %v273_v58 }
 0x240   :  { %v279_v60 = vadd.f32 1e-05, %v276_v59 }
 0x242   :  { %3548 = vrsqrt.f32 %v279_v60 }
 0x244   :  { %v3545_v61 = vpop.eup %3544 }
 0x245   :  { %v283_v62 = vmul.f32 %v3545_v61, %v259_v37 }
 0x247   :  { %v292_v2 = vmul.f32 %v2944_v63, %v283_v62 }
 0x248   :  { %v3547_v0 = vpop.eup %3546 }
 0x249   :  { %v284_v1 = vmul.f32 %v3547_v0, %v260_v41  ;;  %v301_v6 = vadd.f32 %v2945_v3, %v292_v2 }
 0x24b   :  { %v293_v4 = vmul.f32 %v2944_v63, %v284_v1 }
 0x24c   :  { %v3549_v5 = vpop.eup %3548 }
 0x24d   :  { %v302_v7 = vadd.f32 %v2945_v3, %v293_v4  ;;  %v285_v8 = vmul.f32 %v3549_v5, %v261_v46 }
 0x24f   :  { %v304_v9 = vpack.c.bf16 %v302_v7, %v301_v6  ;;  %v294_v10 = vmul.f32 %v2944_v63, %v285_v8 }
 0x251   :  { %3192 = vmatprep.mubr.msk.bf16.mxu1 %vm244_vm1, %v304_v9  ;;  %v303_v11 = vadd.f32 %v2945_v3, %v294_v10 }
 0x253   :  { %v305_v12 = vpack.c.bf16 %v303_v11, %v303_v11 }
 0x255   :  { %3193 = vmatmul.mubr.msk.bf16.vlgmr.msra.gmra.mrb[0].mxu1 %vm244_vm1, %v305_v12 }
 0x328   :  { %v3194_v13 = vpop.f32.mrb[0].mxu1 }
 0x329   :  { %v3917_v14 = vpack.c.bf16 %v3194_v13, %v3194_v13  ;;  %v362_v15 = vpop.f32.mrb[1].mxu1 }
 0x32a   :  { %v3195_v16 = vpop.f32.mrb[2].mxu1 }
 0x32b   :  { %382 = vrot.lane.b32.xlu1 %v3917_v14, %s3706_s25  ;;  %v365_v17 = vpop.f32.mrb[3].mxu1 }
 0x32c   :  { %v3921_v18 = vpack.c.bf16 %v365_v17, %v362_v15 }
 0x32e   :  { %380 = vrot.lane.b32.xlu0 %v3921_v18, %s3706_s25  ;;  %3200 = vmatprep.mubr.msk.bf16.mxu1 %vm384_vm3, %v3921_v18 }
 0x39d   :  { %v383_v22 = vpop.permute.xlu1 %382 }
 0x39e   :  { %v395_v23 = vsel %vm384_vm3, %v383_v22, 0 }
 0x3a0   :  { %v381_v19 = vpop.permute.xlu0 %380 }
 0x3a1   :  { %3424 = vmatprep.subr.msk.bf16.mxu1 %vm384_vm3, %v381_v19  ;;  %v392_v20 = vsel %vm384_vm3, %v381_v19, 0 }
 0x3a2   :  { %3197 = vmatpush3.bf16.xpose.msra.mxu1 %v392_v20 }
 0x3a3   :  { %3425 = vmatprep.subr.msk.bf16.mxu1 %vm384_vm3, %v383_v22 }
 0x3aa   :  { %3199 = vmatpush3.bf16.xpose.msra.mxu1 %v395_v23 }
 0x3b1   :  { %3201 = vmatmul.mubr.msk.bf16.vlgmr.msra.gmra.mrb[4].mxu1 %vm384_vm3, %v3917_v14 }
 0x484   :  { %v3202_v25 = vpop.f32.mrb[4].mxu1 }
 0x485   :  { %v431_v26 = vpop.f32.mrb[5].mxu1  ;;  %v447_v33 = vmul.f32 0.35355338, %v3202_v25 }
 0x486   :  { %v445_v28 = vmul.f32 0.35355338, %v431_v26  ;;  %v3203_v29 = vpop.f32.mrb[6].mxu1 }
 0x487   :  { %v434_v31 = vpop.f32.mrb[7].mxu1  ;;  %v450_v40 = vadd.f32 %v447_v33, %v3947_v36 }
 0x488   :  { %v446_v34 = vmul.f32 0.35355338, %v434_v31  ;;  %v448_v35 = vadd.f32 %v445_v28, %v3936_v27 }
 0x489   :  { %v459_v41 = vsel %vm458_vm5, %v450_v40, -inf }
 0x48a   :  { %v452_v37 = vsel %vm451_vm4, %v448_v35, -inf  ;;  %v449_v38 = vadd.f32 %v446_v34, %v3941_v32 }
 0x48b   :  { %453 = vmax.xlane.f32.xlu1 %v452_v37 }
 0x48c   :  { %v455_v39 = vsel %vm451_vm4, %v449_v38, -inf }
 0x48d   :  { %456 = vmax.xlane.f32.xlu0 %v455_v39 }
 0x491   :  { %460 = vmax.xlane.f32.xlu0 %v459_v41 }
 0x518   :  { %v454_v42 = vpop.xlane.xlu1 %453 }
 0x519   :  { %v462_v45 = vsub.f32 %v448_v35, %v454_v42 }
 0x51a   :  { %v457_v43 = vpop.xlane.xlu0 %456 }
 0x51b   :  { %v463_v44 = vsub.f32 %v449_v38, %v457_v43  ;;  %v465_v49 = vmul.f32 1.442695, %v462_v45 }
 0x51d   :  { %v467_v46 = vmul.f32 1.442695, %v463_v44 }
 0x51e   :  { %v461_v47 = vpop.xlane.xlu0 %460 }
 0x51f   :  { %3550 = vpow2.f32 %v467_v46  ;;  %v464_v48 = vsub.f32 %v450_v40, %v461_v47 }
 0x521   :  { %v469_v50 = vmul.f32 1.442695, %v464_v48 }
 0x523   :  { %3552 = vpow2.f32 %v469_v50 }
 0x524   :  { %3554 = vpow2.f32 %v465_v49 }
 0x529   :  { %v3551_v51 = vpop.eup %3550 }
 0x52a   :  { %v474_v52 = vsel %vm451_vm4, %v3551_v51, 0.0 }
 0x52b   :  { %475 = vadd.xlane.f32.xlu0 %v474_v52 }
 0x52d   :  { %v3553_v53 = vpop.eup %3552 }
 0x52e   :  { %v477_v54 = vsel %vm458_vm5, %v3553_v53, 0.0  ;;  %v3555_v55 = vpop.eup %3554 }
 0x52f   :  { %478 = vadd.xlane.f32.xlu1 %v477_v54  ;;  %v471_v56 = vsel %vm451_vm4, %v3555_v55, 0.0 }
 0x533   :  { %472 = vadd.xlane.f32.xlu1 %v471_v56 }
 0x541   :  { %488 = vrot.lane.b32.xlu0 %v3921_v18, %s3707_s29 }
 0x544   :  { %490 = vrot.lane.b32.xlu1 %v3917_v14, %s3707_s29 }
 0x545   :  { %557 = vrot.lane.b32.xlu0 %v3917_v14, %s3708_s30 }
 0x548   :  { %555 = vrot.lane.b32.xlu1 %v3921_v18, %s3708_s30 }
 0x549   :  { %551 = vrot.lane.b32.xlu0 %v3921_v18, %s3709_s21 }
 0x54c   :  { %726 = vrot.lane.b32.xlu1 %v3921_v18, %s3710_s1 }
 0x54d   :  { %722 = vrot.lane.b32.xlu0 %v3921_v18, %s4566_s22 }
 0x550   :  { %728 = vrot.lane.b32.xlu1 %v3917_v14, %s3710_s1 }
 0x551   :  { %724 = vrot.lane.b32.xlu0 %v3917_v14, %s4566_s22  ;;  %s4583_s22 = smov 16  }
 0x554   :  { %553 = vrot.lane.b32.xlu1 %v3917_v14, %s3709_s21 }
 0x555   :  { %893 = vrot.lane.b32.xlu0 %v3921_v18, %s4554_s24 }
 0x558   :  { %897 = vrot.lane.b32.xlu1 %v3921_v18, %s4556_s2 }
 0x55c   :  { %899 = vrot.lane.b32.xlu1 %v3917_v14, %s4556_s2  ;;  %s4582_s2 = smov 8  }
 0x560   :  { %895 = vrot.lane.b32.xlu1 %v3917_v14, %s4554_s24 }
 0x5b8   :  { %v476_v57 = vpop.xlane.xlu0 %475 }
 0x5bc   :  { %v479_v58 = vpop.xlane.xlu1 %478  ;;  %v489_v59 = vpop.permute.xlu0 %488 }
 0x5bd   :  { %3204 = vmatprep.subr.bf16.mxu1 %v489_v59  ;;  %3556 = vrcp.f32 %v479_v58 }
 0x5be   :  { %3205 = vmatpush3.bf16.msra.mxu1 %v489_v59  ;;  %3558 = vrcp.f32 %v476_v57 }
 0x5c0   :  { %v473_v60 = vpop.xlane.xlu1 %472  ;;  %v558_v61 = vpop.permute.xlu0 %557 }
 0x5c1   :  { %3560 = vrcp.f32 %v473_v60  ;;  %v569_v22 = vsel %vm384_vm3, %v558_v61, 0 }
 0x5c4   :  { %v491_v62 = vpop.permute.xlu1 %490  ;;  %v552_v63 = vpop.permute.xlu0 %551 }
 0x5c5   :  { %3426 = vmatprep.subr.msk.bf16.mxu1 %vm499_vm6, %v491_v62  ;;  %v501_v0 = vsel %vm499_vm6, %v491_v62, 0 }
 0x5c6   :  { %3207 = vmatpush3.bf16.msra.mxu1 %v501_v0 }
 0x5c7   :  { %v3557_v1 = vpop.eup %3556 }
 0x5c8   :  { %v556_v2 = vpop.permute.xlu1 %555  ;;  %v723_v3 = vpop.permute.xlu0 %722  ;;  %v485_v6 = vmul.f32 %v3557_v1, %v3553_v53 }
 0x5c9   :  { %v3559_v4 = vpop.eup %3558  ;;  %3427 = vmatprep.subr.msk.bf16.mxu1 %vm384_vm3, %v556_v2  ;;  %3232 = vmatprep.mubr.msk.bf16.mxu0 %vm384_vm3, %v723_v3  ;;  %v566_v15 = vsel %vm384_vm3, %v556_v2, 0 }
 0x5ca   :  { %v484_v9 = vmul.f32 %v3559_v4, %v3551_v51  ;;  %v487_v12 = vpack.c.bf16 %v485_v6, %v485_v6 }
 0x5cb   :  { %v3561_v5 = vpop.eup %3560 }
 0x5cc   :  { %v727_v7 = vpop.permute.xlu1 %726  ;;  %v483_v8 = vmul.f32 %v3561_v5, %v3555_v55  ;;  %v725_v19 = vpop.permute.xlu0 %724 }
 0x5cd   :  { %3430 = vmatprep.subr.msk.bf16.mxu0 %vm384_vm3, %v727_v7  ;;  %v737_v10 = vsel %vm384_vm3, %v727_v7, 0 }
 0x5ce   :  { %3229 = vmatpush3.bf16.xpose.msra.mxu0 %v737_v10  ;;  %v486_v11 = vpack.c.bf16 %v484_v9, %v483_v8 }
 0x5d0   :  { %v729_v13 = vpop.permute.xlu1 %728  ;;  %3208 = vmatprep.mubr.msk.bf16.mxu1 %vm451_vm4, %v486_v11  ;;  %v894_v23 = vpop.permute.xlu0 %893 }
 0x5d1   :  { %3209 = vmatmul.mubr.msk.bf16.vlgmr.msra.gmra.mrb[8].mxu1 %vm451_vm4, %v487_v12  ;;  %3431 = vmatprep.subr.msk.bf16.mxu0 %vm384_vm3, %v729_v13  ;;  %v740_v17 = vsel %vm384_vm3, %v729_v13, 0 }
 0x5d2   :  { %3213 = vmatpush3.bf16.xpose.msra.mxu1 %v566_v15  ;;  %3216 = vmatprep.mubr.msk.bf16.mxu1 %vm384_vm3, %v552_v63 }
 0x5d3   :  { %3428 = vmatprep.subr.msk.bf16.mxu1 %vm384_vm3, %v558_v61 }
 0x5d4   :  { %v554_v16 = vpop.permute.xlu1 %553 }
 0x5d6   :  { %3231 = vmatpush3.bf16.xpose.msra.mxu0 %v740_v17 }
 0x5d8   :  { %v898_v20 = vpop.permute.xlu1 %897 }
 0x5d9   :  { %3433 = vmatprep.subr.msk.bf16.mxu0 %vm384_vm3, %v898_v20  ;;  %v908_v25 = vsel %vm384_vm3, %v898_v20, 0 }
 0x5da   :  { %3215 = vmatpush3.bf16.xpose.msra.mxu1 %v569_v22 }
 0x5dc   :  { %v900_v26 = vpop.permute.xlu1 %899 }
 0x5dd   :  { %3233 = vmatmul.mubr.msk.bf16.vlgmr.msra.gmra.mrb[8].mxu0 %vm384_vm3, %v725_v19  ;;  %v911_v28 = vsel %vm384_vm3, %v900_v26, 0 }
 0x5de   :  { %3245 = vmatpush3.bf16.xpose.msra.mxu0 %v908_v25  ;;  %3248 = vmatprep.mubr.msk.bf16.mxu0 %vm384_vm3, %v894_v23 }
 0x5df   :  { %3434 = vmatprep.subr.msk.bf16.mxu0 %vm384_vm3, %v900_v26 }
 0x5e0   :  { %v896_v29 = vpop.permute.xlu1 %895 }
 0x5e1   :  { %3217 = vmatmul.mubr.msk.bf16.vlgmr.msra.gmra.mrb[12].mxu1 %vm384_vm3, %v554_v16 }
 0x5e6   :  { %3247 = vmatpush3.bf16.xpose.msra.mxu0 %v911_v28 }
 0x5ed   :  { %3249 = vmatmul.mubr.msk.bf16.vlgmr.msra.gmra.mrb[12].mxu0 %vm384_vm3, %v896_v29 }
 0x6a4   :  { %v4007_v31 = vpop.f32.mrb[8].mxu1 }
 0x6a5   :  { %v4009_v33 = vpop.f32.mrb[9].mxu1 }
 0x6a6   :  { %v3211_v34 = vpop.f32.mrb[10].mxu1 }
 0x6a7   :  { %v4011_v35 = vpop.f32.mrb[11].mxu1 }
 0x6b0   :  { %v3234_v37 = vpop.f32.mrb[8].mxu0 }
 0x6b1   :  { %v776_v38 = vpop.f32.mrb[9].mxu0  ;;  %v792_v47 = vmul.f32 0.35355338, %v3234_v37 }
 0x6b2   :  { %v3235_v39 = vpop.f32.mrb[10].mxu0  ;;  %v790_v50 = vmul.f32 0.35355338, %v776_v38 }
 0x6b3   :  { %v779_v40 = vpop.f32.mrb[11].mxu0  ;;  %v795_v55 = vadd.f32 %v792_v47, %v3947_v36 }
 0x6b4   :  { %v3218_v41 = vpop.f32.mrb[12].mxu1  ;;  %v791_v56 = vmul.f32 0.35355338, %v779_v40  ;;  %v793_v58 = vadd.f32 %v790_v50, %v3936_v27 }
 0x6b5   :  { %v605_v42 = vpop.f32.mrb[13].mxu1  ;;  %v621_v43 = vmul.f32 0.35355338, %v3218_v41  ;;  %v802_v59 = vsel %vm458_vm5, %v795_v55, -inf }
 0x6b6   :  { %v619_v44 = vmul.f32 0.35355338, %v605_v42  ;;  %v3219_v45 = vpop.f32.mrb[14].mxu1  ;;  %v796_v63 = vsel %vm451_vm4, %v793_v58, -inf  ;;  %v794_v1 = vadd.f32 %v791_v56, %v3941_v32 }
 0x6b7   :  { %v608_v46 = vpop.f32.mrb[15].mxu1  ;;  %v4020_v53 = vadd.f32 %v621_v43, %v3947_v36 }
 0x6b8   :  { %v620_v48 = vmul.f32 0.35355338, %v608_v46  ;;  %v4014_v49 = vadd.f32 %v619_v44, %v3936_v27  ;;  %v799_v5 = vsel %vm451_vm4, %v794_v1, -inf }
 0x6b9   :  { %v631_v57 = vsel %vm458_vm5, %v4020_v53, -inf }
 0x6ba   :  { %v625_v51 = vsel %vm451_vm4, %v4014_v49, -inf  ;;  %v623_v52 = vadd.f32 %v620_v48, %v3941_v32 }
 0x6bb   :  { %626 = vmax.xlane.f32.xlu0 %v625_v51 }
 0x6bc   :  { %v628_v54 = vsel %vm451_vm4, %v623_v52, -inf }
 0x6bd   :  { %629 = vmax.xlane.f32.xlu1 %v628_v54 }
 0x6bf   :  { %632 = vmax.xlane.f32.xlu0 %v631_v57 }
 0x6c0   :  { %v3250_v60 = vpop.f32.mrb[12].mxu0 }
 0x6c1   :  { %803 = vmax.xlane.f32.xlu1 %v802_v59  ;;  %v947_v61 = vpop.f32.mrb[13].mxu0  ;;  %v963_v4 = vmul.f32 0.35355338, %v3250_v60 }
 0x6c2   :  { %v961_v62 = vmul.f32 0.35355338, %v947_v61  ;;  %v3251_v0 = vpop.f32.mrb[14].mxu0 }
 0x6c3   :  { %797 = vmax.xlane.f32.xlu0 %v796_v63  ;;  %v950_v2 = vpop.f32.mrb[15].mxu0  ;;  %v966_v10 = vadd.f32 %v963_v4, %v3947_v36 }
 0x6c4   :  { %v962_v3 = vmul.f32 0.35355338, %v950_v2  ;;  %v964_v7 = vadd.f32 %v961_v62, %v3936_v27 }
 0x6c5   :  { %v973_v11 = vsel %vm458_vm5, %v966_v10, -inf }
 0x6c6   :  { %v965_v6 = vadd.f32 %v962_v3, %v3941_v32  ;;  %v967_v9 = vsel %vm451_vm4, %v964_v7, -inf }
 0x6c7   :  { %800 = vmax.xlane.f32.xlu0 %v799_v5 }
 0x6c8   :  { %v970_v8 = vsel %vm451_vm4, %v965_v6, -inf }
 0x6c9   :  { %971 = vmax.xlane.f32.xlu1 %v970_v8 }
 0x6cb   :  { %968 = vmax.xlane.f32.xlu0 %v967_v9 }
 0x6cf   :  { %974 = vmax.xlane.f32.xlu0 %v973_v11 }
 0x748   :  { %v627_v12 = vpop.xlane.xlu0 %626 }
 0x749   :  { %v634_v44 = vsub.f32 %v4014_v49, %v627_v12 }
 0x74a   :  { %v630_v13 = vpop.xlane.xlu1 %629 }
 0x74b   :  { %v635_v26 = vsub.f32 %v623_v52, %v630_v13  ;;  %v637_v51 = vmul.f32 1.442695, %v634_v44 }
 0x74c   :  { %v633_v15 = vpop.xlane.xlu0 %632 }
 0x74d   :  { %v639_v38 = vmul.f32 1.442695, %v635_v26  ;;  %v636_v39 = vsub.f32 %v4020_v53, %v633_v15 }
 0x74e   :  { %v804_v16 = vpop.xlane.xlu1 %803 }
 0x74f   :  { %v807_v17 = vsub.f32 %v795_v55, %v804_v16  ;;  %v641_v45 = vmul.f32 1.442695, %v636_v39 }
 0x750   :  { %v798_v32 = vpop.xlane.xlu0 %797 }
 0x751   :  { %v805_v19 = vsub.f32 %v793_v58, %v798_v32  ;;  %v812_v27 = vmul.f32 1.442695, %v807_v17 }
 0x753   :  { %v808_v20 = vmul.f32 1.442695, %v805_v19 }
 0x754   :  { %v801_v22 = vpop.xlane.xlu0 %800 }
 0x755   :  { %3562 = vpow2.f32 %v808_v20  ;;  %v806_v23 = vsub.f32 %v794_v1, %v801_v22 }
 0x756   :  { %v972_v25 = vpop.xlane.xlu1 %971  ;;  %3564 = vpow2.f32 %v812_v27 }
 0x757   :  { %v810_v36 = vmul.f32 1.442695, %v806_v23  ;;  %v977_v28 = vsub.f32 %v965_v6, %v972_v25 }
 0x758   :  { %v969_v29 = vpop.xlane.xlu0 %968 }
 0x759   :  { %3566 = vpow2.f32 %v810_v36  ;;  %v981_v34 = vmul.f32 1.442695, %v977_v28  ;;  %v976_v37 = vsub.f32 %v964_v7, %v969_v29 }
 0x75b   :  { %3568 = vpow2.f32 %v981_v34  ;;  %v979_v40 = vmul.f32 1.442695, %v976_v37 }
 0x75c   :  { %v975_v41 = vpop.xlane.xlu0 %974 }
 0x75d   :  { %3570 = vpow2.f32 %v979_v40  ;;  %v978_v42 = vsub.f32 %v966_v10, %v975_v41 }
 0x75e   :  { %3572 = vpow2.f32 %v639_v38 }
 0x75f   :  { %v4038_v43 = vpop.eup %3562  ;;  %v983_v46 = vmul.f32 1.442695, %v978_v42 }
 0x760   :  { %v814_v47 = vsel %vm451_vm4, %v4038_v43, 0.0  ;;  %v4043_v48 = vpop.eup %3564 }
 0x761   :  { %3574 = vpow2.f32 %v983_v46  ;;  %815 = vadd.xlane.f32.xlu0 %v814_v47  ;;  %v820_v52 = vsel %vm458_vm5, %v4043_v48, 0.0 }
 0x762   :  { %3576 = vpow2.f32 %v641_v45 }
 0x763   :  { %v4045_v50 = vpop.eup %3566  ;;  %3578 = vpow2.f32 %v637_v51 }
 0x764   :  { %v817_v49 = vsel %vm451_vm4, %v4045_v50, 0.0 }
 0x765   :  { %v4051_v53 = vpop.eup %3568  ;;  %821 = vadd.xlane.f32.xlu0 %v820_v52  ;;  %818 = vadd.xlane.f32.xlu1 %v817_v49 }
 0x766   :  { %v988_v54 = vsel %vm451_vm4, %v4051_v53, 0.0 }
 0x767   :  { %v4055_v55 = vpop.eup %3570 }
 0x768   :  { %v985_v56 = vsel %vm451_vm4, %v4055_v55, 0.0  ;;  %v3573_v57 = vpop.eup %3572 }
 0x769   :  { %989 = vadd.xlane.f32.xlu0 %v988_v54  ;;  %986 = vadd.xlane.f32.xlu1 %v985_v56  ;;  %v646_v59 = vsel %vm451_vm4, %v3573_v57, 0.0  ;;  %v3516_v54 = vld [vmem:[%s4535_s8] sm:$0xff]  }
 0x76b   :  { %v4059_v58 = vpop.eup %3574 }
 0x76c   :  { %v991_v60 = vsel %vm458_vm5, %v4059_v58, 0.0  ;;  %v3577_v61 = vpop.eup %3576 }
 0x76d   :  { %647 = vadd.xlane.f32.xlu0 %v646_v59  ;;  %992 = vadd.xlane.f32.xlu1 %v991_v60  ;;  %v649_v62 = vsel %vm458_vm5, %v3577_v61, 0.0  ;;  %v3579_v63 = vpop.eup %3578 }
 0x76e   :  { %v643_v0 = vsel %vm451_vm4, %v3579_v63, 0.0 }
 0x771   :  { %650 = vadd.xlane.f32.xlu1 %v649_v62 }
 0x775   :  { %644 = vadd.xlane.f32.xlu1 %v643_v0 }
 0x783   :  { %660 = vrot.lane.b32.xlu0 %v3921_v18, %s3714_s3 }
 0x786   :  { %662 = vrot.lane.b32.xlu1 %v3917_v14, %s3714_s3 }
 0x787   :  { %1002 = vrot.lane.b32.xlu0 %v3921_v18, %s4552_s26 }
 0x78a   :  { %831 = vrot.lane.b32.xlu1 %v3921_v18, %s4564_s27 }
 0x78e   :  { %833 = vrot.lane.b32.xlu1 %v3917_v14, %s4564_s27 }
 0x792   :  { %1004 = vrot.lane.b32.xlu1 %v3917_v14, %s4552_s26  ;;  %s4560_s26 = smov 16  }
 0x7ee   :  { %v816_v1 = vpop.xlane.xlu0 %815 }
 0x7f2   :  { %v819_v2 = vpop.xlane.xlu1 %818  ;;  %v822_v3 = vpop.xlane.xlu0 %821 }
 0x7f3   :  { %3580 = vrcp.f32 %v819_v2 }
 0x7f6   :  { %v987_v4 = vpop.xlane.xlu1 %986  ;;  %v990_v5 = vpop.xlane.xlu0 %989 }
 0x7fa   :  { %v993_v6 = vpop.xlane.xlu1 %992  ;;  %v648_v7 = vpop.xlane.xlu0 %647 }
 0x7fd   :  { %v3581_v11 = vpop.eup %3580 }
 0x7fe   :  { %v651_v8 = vpop.xlane.xlu1 %650  ;;  %v661_v9 = vpop.permute.xlu0 %660  ;;  %v827_v20 = vmul.f32 %v3581_v11, %v4045_v50 }
 0x7ff   :  { %3220 = vmatprep.subr.bf16.mxu1 %v661_v9  ;;  %3582 = vrcp.f32 %v651_v8 }
 0x800   :  { %3221 = vmatpush3.bf16.msra.mxu1 %v661_v9  ;;  %3584 = vrcp.f32 %v648_v7 }
 0x801   :  { %3586 = vrcp.f32 %v816_v1 }
 0x802   :  { %v645_v18 = vpop.xlane.xlu1 %644  ;;  %v1003_v41 = vpop.permute.xlu0 %1002 }
 0x803   :  { %3588 = vrcp.f32 %v645_v18 }
 0x804   :  { %3590 = vrcp.f32 %v822_v3 }
 0x805   :  { %3592 = vrcp.f32 %v987_v4 }
 0x806   :  { %v663_v10 = vpop.permute.xlu1 %662  ;;  %3594 = vrcp.f32 %v990_v5 }
 0x807   :  { %v672_v14 = vsel %vm499_vm6, %v663_v10, 0  ;;  %3429 = vmatprep.subr.msk.bf16.mxu1 %vm499_vm6, %v663_v10  ;;  %3596 = vrcp.f32 %v993_v6 }
 0x808   :  { %3223 = vmatpush3.bf16.msra.mxu1 %v672_v14 }
 0x809   :  { %v3583_v12 = vpop.eup %3582 }
 0x80a   :  { %v832_v13 = vpop.permute.xlu1 %831  ;;  %v3585_v15 = vpop.eup %3584  ;;  %v657_v32 = vmul.f32 %v3583_v12, %v3577_v61 }
 0x80b   :  { %3236 = vmatprep.subr.bf16.mxu1 %v832_v13  ;;  %v3587_v16 = vpop.eup %3586  ;;  %v656_v27 = vmul.f32 %v3585_v15, %v3573_v57 }
 0x80c   :  { %v826_v23 = vmul.f32 %v3587_v16, %v4038_v43  ;;  %v659_v26 = vpack.c.bf16 %v657_v32, %v657_v32 }
 0x80d   :  { %v3589_v17 = vpop.eup %3588 }
 0x80e   :  { %v655_v19 = vmul.f32 %v3589_v17, %v3579_v63  ;;  %v3591_v25 = vpop.eup %3590  ;;  %v829_v28 = vpack.c.bf16 %v827_v20, %v826_v23  ;;  %v834_v34 = vpop.permute.xlu1 %833 }
 0x80f   :  { %v3593_v36 = vpop.eup %3592  ;;  %v828_v37 = vmul.f32 %v3591_v25, %v4043_v48  ;;  %v843_v40 = vsel %vm499_vm6, %v834_v34, 0 }
 0x810   :  { %v658_v22 = vpack.c.bf16 %v656_v27, %v655_v19  ;;  %v3595_v29 = vpop.eup %3594  ;;  %v997_v38 = vmul.f32 %v3593_v36, %v4055_v55 }
 0x811   :  { %v998_v39 = vmul.f32 %v3595_v29, %v4051_v53  ;;  %v830_v42 = vpack.c.bf16 %v828_v37, %v828_v37  ;;  %v3597_v43 = vpop.eup %3596 }
 0x812   :  { %3224 = vmatprep.mubr.msk.bf16.mxu1 %vm451_vm4, %v658_v22  ;;  %v1005_v45 = vpop.permute.xlu1 %1004  ;;  %v999_v46 = vmul.f32 %v3597_v43, %v4059_v58  ;;  %v3517_v58 = vld [vmem:[%s4535_s8 + $0x8] sm:$0xff]   ;;  %v2970_v22 = vld [vmem:[%s4536_s9] ss:$0 sm:$0xff] }
 0x813   :  { %3225 = vmatmul.mubr.msk.bf16.vlgmr.msra.gmra.mrb[16].mxu1 %vm451_vm4, %v659_v26  ;;  %v1000_v44 = vpack.c.bf16 %v998_v39, %v997_v38  ;;  %v1014_v47 = vsel %vm499_vm6, %v1005_v45, 0 }
 0x814   :  { %3237 = vmatpush3.bf16.msra.mxu1 %v832_v13  ;;  %3240 = vmatprep.mubr.msk.bf16.mxu1 %vm451_vm4, %v829_v28  ;;  %v1001_v48 = vpack.c.bf16 %v999_v46, %v999_v46 }
 0x815   :  { %3432 = vmatprep.subr.msk.bf16.mxu1 %vm499_vm6, %v834_v34 }
 0x818   :  { %3239 = vmatpush3.bf16.msra.mxu1 %v843_v40 }
 0x819   :  { %3252 = vmatprep.subr.bf16.mxu1 %v1003_v41 }
 0x81b   :  { %3241 = vmatmul.mubr.msk.bf16.vlgmr.msra.gmra.mrb[20].mxu1 %vm451_vm4, %v830_v42 }
 0x81c   :  { %3253 = vmatpush3.bf16.msra.mxu1 %v1003_v41  ;;  %3256 = vmatprep.mubr.msk.bf16.mxu1 %vm451_vm4, %v1000_v44 }
 0x81d   :  { %3435 = vmatprep.subr.msk.bf16.mxu1 %vm499_vm6, %v1005_v45 }
 0x820   :  { %3255 = vmatpush3.bf16.msra.mxu1 %v1014_v47 }
 0x821   :  { %3260 = vmatprep.subr.bf16.mxu1 %v3516_v54 }
 0x823   :  { %3257 = vmatmul.mubr.msk.bf16.vlgmr.msra.gmra.mrb[24].mxu1 %vm451_vm4, %v1001_v48 }
 0x824   :  { %3261 = vmatpush3.bf16.msra.mxu1 %v3516_v54  ;;  %v3518_v54 = vld [vmem:[%s4539_s12] sm:$0xff]  }
 0x825   :  { %3262 = vmatprep.subr.bf16.mxu1 %v3517_v58 }
 0x828   :  { %3263 = vmatpush3.bf16.msra.mxu1 %v3517_v58 }
 0x829   :  { %3268 = vmatprep.subr.bf16.mxu1 %v3518_v54 }
 0x8e6   :  { %v3226_v50 = vpop.f32.mrb[16].mxu1 }
 0x8e7   :  { %1071 = vrot.lane.b32.xlu1 %v3226_v50, %s4562_s0  ;;  %v708_v51 = vpop.f32.mrb[17].mxu1 }
 0x8e8   :  { %v3227_v52 = vpop.f32.mrb[18].mxu1 }
 0x8e9   :  { %v711_v49 = vpop.f32.mrb[19].mxu1 }
 0x8ea   :  { %v3467_v53 = vpack.i.bf16 %v711_v49, %v708_v51 }
 0x8ec   :  { %3468 = vrot.lane.b32.xlu0 %v3467_v53, %s4562_s0  ;;  %s4581_s0 = smov 40  }
 0x8ee   :  { %v3242_v55 = vpop.f32.mrb[20].mxu1 }
 0x8ef   :  { %1083 = vrot.lane.b32.xlu1 %v3242_v55, %s4560_s26  ;;  %v879_v56 = vpop.f32.mrb[21].mxu1  ;;  %v3519_v55 = vld [vmem:[%s4539_s12 + $0x8] sm:$0xff]  }
 0x8f0   :  { %v3243_v57 = vpop.f32.mrb[22].mxu1 }
 0x8f1   :  { %v882_v59 = vpop.f32.mrb[23].mxu1 }
 0x8f2   :  { %v3472_v60 = vpack.i.bf16 %v882_v59, %v879_v56 }
 0x8f4   :  { %3473 = vrot.lane.b32.xlu0 %v3472_v60, %s4560_s26  ;;  %s4584_s26 = smov 24  }
 0x8f6   :  { %v3258_v61 = vpop.f32.mrb[24].mxu1 }
 0x8f7   :  { %1095 = vrot.lane.b32.xlu1 %v3258_v61, %s4558_s28  ;;  %v1050_v62 = vpop.f32.mrb[25].mxu1 }
 0x8f8   :  { %v3259_v63 = vpop.f32.mrb[26].mxu1 }
 0x8f9   :  { %v1053_v0 = vpop.f32.mrb[27].mxu1 }
 0x8fa   :  { %v3477_v1 = vpack.i.bf16 %v1053_v0, %v1050_v62 }
 0x8fc   :  { %3478 = vrot.lane.b32.xlu0 %v3477_v1, %s4558_s28 }
 0x959   :  { %v1072_v2 = vpop.permute.xlu1 %1071 }
 0x95a   :  { %v1102_v10 = vsel %vm384_vm3, %v4007_v31, %v1072_v2 }
 0x95e   :  { %v3469_v3 = vpop.permute.xlu0 %3468 }
 0x95f   :  { %v3471_v6 = vunpack.i.h.bf16 %v3469_v3  ;;  %v3470_v7 = vunpack.i.l.bf16 %v3469_v3  ;;  %v2971_v3 = vld [vmem:[%s4537_s10] ss:$0 sm:$0xff] }
 0x961   :  { %v1084_v4 = vpop.permute.xlu1 %1083  ;;  %v1101_v14 = vsel %vm384_vm3, %v4011_v35, %v3471_v6  ;;  %v1100_v12 = vsel %vm384_vm3, %v4009_v33, %v3470_v7 }
 0x962   :  { %v1106_v13 = vsel %vm1103_vm7, %v1102_v10, %v1084_v4 }
 0x966   :  { %v3474_v5 = vpop.permute.xlu0 %3473 }
 0x967   :  { %v3476_v8 = vunpack.i.h.bf16 %v3474_v5  ;;  %v3475_v9 = vunpack.i.l.bf16 %v3474_v5 }
 0x969   :  { %v1096_v18 = vpop.permute.xlu1 %1095  ;;  %v1104_v17 = vsel %vm1103_vm7, %v1100_v12, %v3475_v9  ;;  %v1105_v32 = vsel %vm1103_vm7, %v1101_v14, %v3476_v8  ;;  %v2972_v9 = vld [vmem:[%s4538_s11] ss:$0 sm:$0xff] }
 0x96a   :  { %v1110_v19 = vsel %vm1107_vm8, %v1106_v13, %v1096_v18 }
 0x96b   :  { %v1112_v35 = vpack.c.bf16 %v1110_v19, %v1110_v19  ;;  %v3523_v19 = vld [vmem:[%s4541_s14 + $0x18] sm:$0xff]  }
 0x96e   :  { %v3479_v11 = vpop.permute.xlu0 %3478 }
 0x96f   :  { %v3481_v15 = vunpack.i.h.bf16 %v3479_v11  ;;  %v3480_v16 = vunpack.i.l.bf16 %v3479_v11 }
 0x971   :  { %v1108_v27 = vsel %vm1107_vm8, %v1104_v17, %v3480_v16  ;;  %v1109_v31 = vsel %vm1107_vm8, %v1105_v32, %v3481_v15  ;;  %v3520_v16 = vld [vmem:[%s4541_s14] sm:$0xff]   ;;  %v3521_v17 = vld [vmem:[%s4541_s14 + $0x8] sm:$0xff]   ;;  %v3522_v32 = vld [vmem:[%s4541_s14 + $0x10] sm:$0xff]  }
 0x972   :  { %v1111_v20 = vpack.c.bf16 %v1109_v31, %v1108_v27  ;;  %v3524_v27 = vld [vmem:[%s4541_s14 + $0x20] sm:$0xff]   ;;  %v3525_v31 = vld [vmem:[%s4541_s14 + $0x28] sm:$0xff]  }
 0x974   :  { %3264 = vmatprep.mubr.msk.bf16.mxu1 %vm244_vm1, %v1111_v20  ;;  %v3526_v20 = vld [vmem:[%s4541_s14 + $0x30] sm:$0xff]  }
 0x975   :  { %3265 = vmatmul.mubr.msk.bf16.vlgmr.msra.gmra.mrb[28].mxu1 %vm244_vm1, %v1112_v35  ;;  %v3527_v35 = vld [vmem:[%s4541_s14 + $0x38] sm:$0xff]  }
 0x976   :  { %3269 = vmatpush3.bf16.msra.mxu1 %v3518_v54 }
 0x977   :  { %3270 = vmatprep.subr.bf16.mxu1 %v3519_v55 }
 0x97a   :  { %3271 = vmatpush3.bf16.msra.mxu1 %v3519_v55 }
 0x97b   :  { %3276 = vmatprep.subr.bf16.mxu1 %v3520_v16 }
 0xa48   :  { %v3266_v33 = vpop.f32.mrb[28].mxu1 }
 0xa49   :  { %v1169_v23 = vpop.f32.mrb[29].mxu1  ;;  %v1185_v25 = vadd.f32 %v3266_v33, %v3893_v30  ;;  %v2973_v33 = vld [vmem:[%s4540_s13] ss:$0 sm:$0xff] }
 0xa4a   :  { %v1183_v26 = vadd.f32 %v1169_v23, %v3882_v21  ;;  %v3267_v36 = vpop.f32.mrb[30].mxu1 }
 0xa4b   :  { %v1172_v28 = vpop.f32.mrb[31].mxu1  ;;  %v4130_v37 = vadd.f32 %v2970_v22, %v1185_v25 }
 0xa4c   :  { %v4127_v29 = vadd.f32 %v2970_v22, %v1183_v26  ;;  %v1184_v34 = vadd.f32 %v1172_v28, %v3884_v24 }
 0xa4d   :  { %v1204_v21 = vsel %vm251_vm2, %v4130_v37, 0.0 }
 0xa4e   :  { %v4132_v38 = vadd.f32 %v2970_v22, %v1184_v34  ;;  %v1198_v39 = vsel %vm244_vm1, %v4127_v29, 0.0 }
 0xa4f   :  { %1199 = vadd.xlane.f32.xlu0 %v1198_v39 }
 0xa50   :  { %v1201_v40 = vsel %vm244_vm1, %v4132_v38, 0.0 }
 0xa51   :  { %1202 = vadd.xlane.f32.xlu1 %v1201_v40 }
 0xa53   :  { %1205 = vadd.xlane.f32.xlu0 %v1204_v21 }
 0xadc   :  { %v1200_v30 = vpop.xlane.xlu0 %1199 }
 0xadd   :  { %v1207_v41 = vmul.f32 0.03125, %v1200_v30 }
 0xade   :  { %v1203_v42 = vpop.xlane.xlu1 %1202 }
 0xadf   :  { %v1210_v24 = vsub.f32 %v4127_v29, %v1207_v41  ;;  %v1208_v43 = vmul.f32 0.03125, %v1203_v42 }
 0xae0   :  { %v1206_v44 = vpop.xlane.xlu0 %1205 }
 0xae1   :  { %v1211_v45 = vsub.f32 %v4132_v38, %v1208_v43  ;;  %v1209_v46 = vmul.f32 0.03125, %v1206_v44  ;;  %v1213_v47 = vmul.f32 %v1210_v24, %v1210_v24 }
 0xae3   :  { %v1212_v48 = vsub.f32 %v4130_v37, %v1209_v46  ;;  %v1216_v50 = vsel %vm244_vm1, %v1213_v47, 0.0  ;;  %v1214_v51 = vmul.f32 %v1211_v45, %v1211_v45 }
 0xae4   :  { %1217 = vadd.xlane.f32.xlu0 %v1216_v50 }
 0xae5   :  { %v1215_v52 = vmul.f32 %v1212_v48, %v1212_v48  ;;  %v1219_v53 = vsel %vm244_vm1, %v1214_v51, 0.0 }
 0xae7   :  { %v1222_v49 = vsel %vm251_vm2, %v1215_v52, 0.0 }
 0xae8   :  { %1223 = vadd.xlane.f32.xlu1 %v1222_v49  ;;  %1220 = vadd.xlane.f32.xlu0 %v1219_v53 }
 0xb71   :  { %v1218_v56 = vpop.xlane.xlu0 %1217 }
 0xb72   :  { %v1225_v57 = vmul.f32 0.03125, %v1218_v56 }
 0xb74   :  { %v1228_v58 = vadd.f32 1e-05, %v1225_v57 }
 0xb75   :  { %v1221_v59 = vpop.xlane.xlu0 %1220  ;;  %v1224_v60 = vpop.xlane.xlu1 %1223 }
 0xb76   :  { %3598 = vrsqrt.f32 %v1228_v58  ;;  %v1226_v61 = vmul.f32 0.03125, %v1221_v59  ;;  %v1227_v62 = vmul.f32 0.03125, %v1224_v60 }
 0xb78   :  { %v1229_v63 = vadd.f32 1e-05, %v1226_v61  ;;  %v1230_v0 = vadd.f32 1e-05, %v1227_v62 }
 0xb7a   :  { %3600 = vrsqrt.f32 %v1229_v63 }
 0xb7b   :  { %3602 = vrsqrt.f32 %v1230_v0 }
 0xb80   :  { %v3599_v1 = vpop.eup %3598 }
 0xb81   :  { %v1234_v2 = vmul.f32 %v3599_v1, %v1210_v24 }
 0xb83   :  { %v1243_v7 = vmul.f32 %v2971_v3, %v1234_v2  ;;  %v2986_v2 = vld [vmem:[%s4542_s15] ss:$0 sm:$0xff] }
 0xb84   :  { %v3601_v4 = vpop.eup %3600 }
 0xb85   :  { %v3603_v5 = vpop.eup %3602  ;;  %v1235_v6 = vmul.f32 %v3601_v4, %v1211_v45  ;;  %v1252_v14 = vadd.f32 %v2972_v9, %v1243_v7 }
 0xb86   :  { %v1236_v8 = vmul.f32 %v3603_v5, %v1212_v48 }
 0xb87   :  { %v1244_v18 = vmul.f32 %v2971_v3, %v1235_v6 }
 0xb88   :  { %v1245_v10 = vmul.f32 %v2971_v3, %v1236_v8 }
 0xb89   :  { %v1253_v11 = vadd.f32 %v2972_v9, %v1244_v18 }
 0xb8a   :  { %v1254_v12 = vadd.f32 %v2972_v9, %v1245_v10 }
 0xb8b   :  { %v1255_v13 = vpack.c.bf16 %v1253_v11, %v1252_v14 }
 0xb8c   :  { %v1256_v15 = vpack.c.bf16 %v1254_v12, %v1254_v12 }
 0xb8d   :  { %3272 = vmatprep.mubr.msk.bf16.mxu1 %vm244_vm1, %v1255_v13 }
 0xb8e   :  { %3273 = vmatmul.mubr.msk.bf16.vlgmr.msra.gmra.mrb[32].mxu1 %vm244_vm1, %v1256_v15 }
 0xb8f   :  { %3277 = vmatpush3.bf16.msra.mxu1 %v3520_v16 }
 0xb90   :  { %3278 = vmatprep.subr.bf16.mxu1 %v3521_v17 }
 0xb93   :  { %3279 = vmatpush3.bf16.msra.mxu1 %v3521_v17 }
 0xb94   :  { %3280 = vmatprep.subr.bf16.mxu1 %v3522_v32 }
 0xb97   :  { %3281 = vmatpush3.bf16.msra.mxu1 %v3522_v32 }
 0xb98   :  { %3282 = vmatprep.subr.bf16.mxu1 %v3523_v19 }
 0xb9b   :  { %3283 = vmatpush3.bf16.msra.mxu1 %v3523_v19 }
 0xb9c   :  { %3284 = vmatprep.subr.bf16.mxu1 %v3524_v27 }
 0xb9f   :  { %3285 = vmatpush3.bf16.msra.mxu1 %v3524_v27 }
 0xba0   :  { %3286 = vmatprep.subr.bf16.mxu1 %v3525_v31 }
 0xba3   :  { %3287 = vmatpush3.bf16.msra.mxu1 %v3525_v31 }
 0xba4   :  { %3288 = vmatprep.subr.bf16.mxu1 %v3526_v20 }
 0xba7   :  { %3289 = vmatpush3.bf16.msra.mxu1 %v3526_v20 }
 0xba8   :  { %3290 = vmatprep.subr.bf16.mxu1 %v3527_v35 }
 0xbab   :  { %3291 = vmatpush3.bf16.msra.mxu1 %v3527_v35 }
 0xc61   :  { %v3274_v22 = vpop.f32.mrb[32].mxu1 }
 0xc62   :  { %v1329_v23 = vadd.f32 %v3274_v22, %v2973_v33  ;;  %v1320_v25 = vpop.f32.mrb[33].mxu1 }
 0xc63   :  { %v1321_v26 = vadd.f32 %v2973_v33, %v1320_v25  ;;  %v3275_v36 = vpop.f32.mrb[34].mxu1  ;;  %v3529_v25 = vld [vmem:[%s4534_s7 + $0x18] sm:$0xff]  }
 0xc64   :  { %v1339_v28 = vmul.f32 %v1329_v23, %v1329_v23  ;;  %v1323_v34 = vpop.f32.mrb[35].mxu1  ;;  %v1336_v56 = vmul.f32 0.5, %v1329_v23 }
 0xc65   :  { %v1337_v39 = vmul.f32 %v1321_v26, %v1321_v26  ;;  %v1324_v40 = vadd.f32 %v2973_v33, %v1323_v34  ;;  %v1334_v57 = vmul.f32 0.5, %v1321_v26 }
 0xc66   :  { %v1342_v21 = vmul.f32 %v1339_v28, %v1329_v23 }
 0xc67   :  { %v1340_v30 = vmul.f32 %v1337_v39, %v1321_v26  ;;  %v1338_v41 = vmul.f32 %v1324_v40, %v1324_v40  ;;  %v1335_v58 = vmul.f32 0.5, %v1324_v40 }
 0xc68   :  { %v1345_v42 = vmul.f32 0.044715, %v1342_v21 }
 0xc69   :  { %v1343_v24 = vmul.f32 0.044715, %v1340_v30  ;;  %v1341_v43 = vmul.f32 %v1338_v41, %v1324_v40 }
 0xc6a   :  { %v1348_v44 = vadd.f32 %v1345_v42, %v1329_v23  ;;  %v3528_v23 = vld [vmem:[%s4534_s7 + $0x10] sm:$0xff]  }
 0xc6b   :  { %v1346_v45 = vadd.f32 %v1343_v24, %v1321_v26  ;;  %v1344_v46 = vmul.f32 0.044715, %v1341_v43  ;;  %3296 = vmatprep.subr.bf16.mxu0 %v3528_v23  ;;  %v2989_v24 = vld [vmem:[%s4532_s5 + $0x1] ss:$0 sm:$0xff] }
 0xc6c   :  { %v1351_v47 = vmul.f32 0.7978846, %v1348_v44  ;;  %3297 = vmatpush3.bf16.msra.mxu0 %v3528_v23  ;;  %v4271_v23 = vld [vmem:[%s4576_s23 + $0x10] sm:$0xf] }
 0xc6d   :  { %v1349_v48 = vmul.f32 0.7978846, %v1346_v45  ;;  %v1347_v50 = vadd.f32 %v1344_v46, %v1324_v40  ;;  %3298 = vmatprep.subr.bf16.mxu0 %v3529_v25 }
 0xc6e   :  { %3604 = vtanh.f32 %v1351_v47 }
 0xc6f   :  { %3606 = vtanh.f32 %v1349_v48  ;;  %v1350_v51 = vmul.f32 0.7978846, %v1347_v50  ;;  %v2990_v48 = vld [vmem:[%s4533_s6 + $0x1] ss:$0 sm:$0xff] }
 0xc70   :  { %3299 = vmatpush3.bf16.msra.mxu0 %v3529_v25 }
 0xc71   :  { %3608 = vtanh.f32 %v1350_v51 }
 0xc78   :  { %v3605_v52 = vpop.eup %3604 }
 0xc79   :  { %v3607_v49 = vpop.eup %3606  ;;  %v1357_v53 = vadd.f32 1.0, %v3605_v52 }
 0xc7a   :  { %v1355_v54 = vadd.f32 1.0, %v3607_v49 }
 0xc7b   :  { %v3609_v55 = vpop.eup %3608  ;;  %v1360_v60 = vmul.f32 %v1357_v53, %v1336_v56 }
 0xc7c   :  { %v1356_v59 = vadd.f32 1.0, %v3609_v55  ;;  %v1358_v61 = vmul.f32 %v1355_v54, %v1334_v57 }
 0xc7d   :  { %v1362_v0 = vpack.c.bf16 %v1360_v60, %v1360_v60 }
 0xc7e   :  { %v1359_v62 = vmul.f32 %v1356_v59, %v1335_v58 }
 0xc80   :  { %v1361_v63 = vpack.c.bf16 %v1359_v62, %v1358_v61 }
 0xc82   :  { %3292 = vmatprep.mubr.bf16.mxu1 %v1361_v63 }
 0xc83   :  { %3293 = vmatmul.mubr.bf16.vlgmr.msra.gmra.mrb[36].mxu1 %v1362_v0 }
 0xd56   :  { %v3294_v1 = vpop.f32.mrb[36].mxu1 }
 0xd57   :  { %v1461_v3 = vpop.f32.mrb[37].mxu1  ;;  %v1477_v4 = vadd.f32 %v3294_v1, %v4130_v37 }
 0xd58   :  { %v1475_v5 = vadd.f32 %v1461_v3, %v4127_v29  ;;  %v3295_v6 = vpop.f32.mrb[38].mxu1 }
 0xd59   :  { %v1464_v7 = vpop.f32.mrb[39].mxu1  ;;  %v4195_v18 = vadd.f32 %v2986_v2, %v1477_v4 }
 0xd5a   :  { %v4192_v8 = vadd.f32 %v2986_v2, %v1475_v5  ;;  %v1476_v9 = vadd.f32 %v1464_v7, %v4132_v38 }
 0xd5b   :  { %v1498_v29 = vsel %vm251_vm2, %v4195_v18, 0.0 }
 0xd5c   :  { %v4197_v10 = vadd.f32 %v2986_v2, %v1476_v9  ;;  %v1492_v14 = vsel %vm244_vm1, %v4192_v8, 0.0 }
 0xd5d   :  { %1493 = vadd.xlane.f32.xlu0 %v1492_v14 }
 0xd5e   :  { %v1495_v11 = vsel %vm244_vm1, %v4197_v10, 0.0 }
 0xd5f   :  { %1496 = vadd.xlane.f32.xlu1 %v1495_v11 }
 0xd61   :  { %1499 = vadd.xlane.f32.xlu0 %v1498_v29 }
 0xdea   :  { %v1494_v37 = vpop.xlane.xlu0 %1493 }
 0xdeb   :  { %v1501_v12 = vmul.f32 0.03125, %v1494_v37 }
 0xdec   :  { %v1497_v13 = vpop.xlane.xlu1 %1496 }
 0xded   :  { %v1504_v38 = vsub.f32 %v4192_v8, %v1501_v12  ;;  %v1502_v15 = vmul.f32 0.03125, %v1497_v13 }
 0xdee   :  { %v1500_v16 = vpop.xlane.xlu0 %1499 }
 0xdef   :  { %v1505_v17 = vsub.f32 %v4197_v10, %v1502_v15  ;;  %v1503_v32 = vmul.f32 0.03125, %v1500_v16  ;;  %v1507_v19 = vmul.f32 %v1504_v38, %v1504_v38 }
 0xdf1   :  { %v1506_v27 = vsub.f32 %v4195_v18, %v1503_v32  ;;  %v1510_v31 = vsel %vm244_vm1, %v1507_v19, 0.0  ;;  %v1508_v20 = vmul.f32 %v1505_v17, %v1505_v17 }
 0xdf2   :  { %1511 = vadd.xlane.f32.xlu1 %v1510_v31 }
 0xdf3   :  { %v1513_v35 = vsel %vm244_vm1, %v1508_v20, 0.0  ;;  %v1509_v33 = vmul.f32 %v1506_v27, %v1506_v27 }
 0xdf4   :  { %1514 = vadd.xlane.f32.xlu0 %v1513_v35 }
 0xdf5   :  { %v1516_v22 = vsel %vm251_vm2, %v1509_v33, 0.0  ;;  %v4265_v33 = vld [vmem:[%s4576_s23 + $0x8] sm:$0xff] }
 0xdf6   :  { %1517 = vadd.xlane.f32.xlu1 %v1516_v22 }
 0xe7f   :  { %v1512_v26 = vpop.xlane.xlu1 %1511 }
 0xe80   :  { %v1519_v36 = vmul.f32 0.03125, %v1512_v26 }
 0xe81   :  { %v1515_v28 = vpop.xlane.xlu0 %1514 }
 0xe82   :  { %v1522_v34 = vadd.f32 1e-05, %v1519_v36  ;;  %v1520_v39 = vmul.f32 0.03125, %v1515_v28 }
 0xe83   :  { %v1518_v40 = vpop.xlane.xlu1 %1517 }
 0xe84   :  { %3610 = vrsqrt.f32 %v1522_v34  ;;  %v1523_v21 = vadd.f32 1e-05, %v1520_v39  ;;  %v1521_v30 = vmul.f32 0.03125, %v1518_v40 }
 0xe86   :  { %3612 = vrsqrt.f32 %v1523_v21  ;;  %v1524_v41 = vadd.f32 1e-05, %v1521_v30 }
 0xe88   :  { %3614 = vrsqrt.f32 %v1524_v41 }
 0xe8e   :  { %v3611_v42 = vpop.eup %3610 }
 0xe8f   :  { %v1528_v43 = vmul.f32 %v3611_v42, %v1504_v38 }
 0xe90   :  { %v3613_v44 = vpop.eup %3612 }
 0xe91   :  { %v1529_v45 = vmul.f32 %v3613_v44, %v1505_v17  ;;  %v1537_v46 = vmul.f32 %v2989_v24, %v1528_v43 }
 0xe92   :  { %v3615_v47 = vpop.eup %3614 }
 0xe93   :  { %v1530_v50 = vmul.f32 %v3615_v47, %v1506_v27  ;;  %v1538_v51 = vmul.f32 %v2989_v24, %v1529_v45  ;;  %v1546_v52 = vadd.f32 %v2990_v48, %v1537_v46  ;;  %v4258_v27 = vld [vmem:[%s4576_s23] sm:$0xff]  ;;  %s4577_s23 = smov 112  }
 0xe95   :  { %v1547_v49 = vadd.f32 %v2990_v48, %v1538_v51  ;;  %v1539_v53 = vmul.f32 %v2989_v24, %v1530_v50 }
 0xe97   :  { %v1549_v54 = vpack.c.bf16 %v1547_v49, %v1546_v52  ;;  %v1548_v55 = vadd.f32 %v2990_v48, %v1539_v53 }
 0xe99   :  { %3300 = vmatprep.mubr.msk.bf16.mxu0 %vm244_vm1, %v1549_v54  ;;  %v1550_v56 = vpack.c.bf16 %v1548_v55, %v1548_v55 }
 0xe9b   :  { %3301 = vmatmul.mubr.msk.bf16.vlgmr.msra.gmra.mrb[16].mxu0 %vm244_vm1, %v1550_v56 }
 0xf6e   :  { %v3302_v57 = vpop.f32.mrb[16].mxu0 }
 0xf6f   :  { %v4225_v58 = vpack.c.bf16 %v3302_v57, %v3302_v57  ;;  %v1608_v59 = vpop.f32.mrb[17].mxu0 }
 0xf70   :  { %v3303_v60 = vpop.f32.mrb[18].mxu0 }
 0xf71   :  { %1628 = vrot.lane.b32.xlu1 %v4225_v58, %s3706_s25  ;;  %v1611_v61 = vpop.f32.mrb[19].mxu0 }
 0xf72   :  { %v4229_v62 = vpack.c.bf16 %v1611_v61, %v1608_v59 }
 0xf74   :  { %1626 = vrot.lane.b32.xlu0 %v4229_v62, %s3706_s25  ;;  %3308 = vmatprep.mubr.msk.bf16.mxu0 %vm384_vm3, %v4229_v62 }
 0xf75   :  { %1797 = vrot.lane.b32.xlu1 %v4229_v62, %s3708_s30 }
 0xf78   :  { %1793 = vrot.lane.b32.xlu0 %v4229_v62, %s3709_s21 }
 0xf79   :  { %1799 = vrot.lane.b32.xlu1 %v4225_v58, %s3708_s30 }
 0xf7d   :  { %1795 = vrot.lane.b32.xlu1 %v4225_v58, %s3709_s21 }
 0xfe3   :  { %v1629_v63 = vpop.permute.xlu1 %1628 }
 0xfe4   :  { %v1640_v6 = vsel %vm384_vm3, %v1629_v63, 0 }
 0xfe6   :  { %v1627_v0 = vpop.permute.xlu0 %1626 }
 0xfe7   :  { %v1637_v1 = vsel %vm384_vm3, %v1627_v0, 0  ;;  %v1798_v2 = vpop.permute.xlu1 %1797  ;;  %3436 = vmatprep.subr.msk.bf16.mxu0 %vm384_vm3, %v1627_v0 }
 0xfe8   :  { %v1808_v3 = vsel %vm384_vm3, %v1798_v2, 0  ;;  %3305 = vmatpush3.bf16.xpose.msra.mxu0 %v1637_v1  ;;  %3439 = vmatprep.subr.msk.bf16.mxu1 %vm384_vm3, %v1798_v2 }
 0xfe9   :  { %3437 = vmatprep.subr.msk.bf16.mxu0 %vm384_vm3, %v1629_v63  ;;  %3321 = vmatpush3.bf16.xpose.msra.mxu1 %v1808_v3 }
 0xfea   :  { %v1794_v4 = vpop.permute.xlu0 %1793 }
 0xfeb   :  { %v1800_v5 = vpop.permute.xlu1 %1799  ;;  %3324 = vmatprep.mubr.msk.bf16.mxu1 %vm384_vm3, %v1794_v4 }
 0xfec   :  { %3440 = vmatprep.subr.msk.bf16.mxu1 %vm384_vm3, %v1800_v5  ;;  %v1811_v7 = vsel %vm384_vm3, %v1800_v5, 0 }
 0xfef   :  { %v1796_v9 = vpop.permute.xlu1 %1795 }
 0xff0   :  { %3307 = vmatpush3.bf16.xpose.msra.mxu0 %v1640_v6 }
 0xff1   :  { %3323 = vmatpush3.bf16.xpose.msra.mxu1 %v1811_v7 }
 0xff7   :  { %3309 = vmatmul.mubr.msk.bf16.vlgmr.msra.gmra.mrb[20].mxu0 %vm384_vm3, %v4225_v58 }
 0xff8   :  { %3325 = vmatmul.mubr.msk.bf16.vlgmr.msra.gmra.mrb[40].mxu1 %vm384_vm3, %v1796_v9 }
0x10ca   :  { %v3310_v14 = vpop.f32.mrb[20].mxu0 }
0x10cb   :  { %v1676_v11 = vpop.f32.mrb[21].mxu0  ;;  %v3326_v29 = vpop.f32.mrb[40].mxu1  ;;  %v1692_v37 = vmul.f32 0.35355338, %v3310_v14 }
0x10cc   :  { %v1690_v12 = vmul.f32 0.35355338, %v1676_v11  ;;  %v3311_v13 = vpop.f32.mrb[22].mxu0  ;;  %v1847_v38 = vpop.f32.mrb[41].mxu1  ;;  %v1863_v17 = vmul.f32 0.35355338, %v3326_v29 }
0x10cd   :  { %v1679_v15 = vpop.f32.mrb[23].mxu0  ;;  %v3327_v16 = vpop.f32.mrb[42].mxu1  ;;  %v1861_v20 = vmul.f32 0.35355338, %v1847_v38  ;;  %v1695_v25 = vadd.f32 %v4271_v23, %v1692_v37 }
0x10ce   :  { %v1691_v32 = vmul.f32 0.35355338, %v1679_v15  ;;  %v1850_v19 = vpop.f32.mrb[43].mxu1  ;;  %v1693_v31 = vadd.f32 %v4258_v27, %v1690_v12  ;;  %v1866_v36 = vadd.f32 %v4271_v23, %v1863_v17 }
0x10cf   :  { %v1862_v28 = vmul.f32 0.35355338, %v1850_v19  ;;  %v1702_v34 = vsel %vm458_vm5, %v1695_v25, -inf  ;;  %v1864_v39 = vadd.f32 %v4258_v27, %v1861_v20 }
0x10d0   :  { %v1696_v35 = vsel %vm451_vm4, %v1693_v31, -inf  ;;  %v1694_v22 = vadd.f32 %v4265_v33, %v1691_v32  ;;  %v1873_v40 = vsel %vm458_vm5, %v1866_v36, -inf }
0x10d1   :  { %1697 = vmax.xlane.f32.xlu0 %v1696_v35  ;;  %v1867_v21 = vsel %vm451_vm4, %v1864_v39, -inf  ;;  %v1865_v30 = vadd.f32 %v4265_v33, %v1862_v28 }
0x10d2   :  { %v1699_v26 = vsel %vm451_vm4, %v1694_v22, -inf }
0x10d3   :  { %1700 = vmax.xlane.f32.xlu1 %v1699_v26  ;;  %v1870_v41 = vsel %vm451_vm4, %v1865_v30, -inf }
0x10d5   :  { %1703 = vmax.xlane.f32.xlu0 %v1702_v34 }
0x10d7   :  { %1874 = vmax.xlane.f32.xlu1 %v1873_v40 }
0x10d9   :  { %1868 = vmax.xlane.f32.xlu0 %v1867_v21 }
0x10dd   :  { %1871 = vmax.xlane.f32.xlu0 %v1870_v41 }
0x115e   :  { %v1698_v42 = vpop.xlane.xlu0 %1697 }
0x115f   :  { %v1705_v24 = vsub.f32 %v1693_v31, %v1698_v42 }
0x1160   :  { %v1701_v43 = vpop.xlane.xlu1 %1700 }
0x1161   :  { %v1708_v46 = vmul.f32 1.442695, %v1705_v24  ;;  %v1706_v0 = vsub.f32 %v1694_v22, %v1701_v43 }
0x1162   :  { %v1704_v44 = vpop.xlane.xlu0 %1703 }
0x1163   :  { %v1707_v45 = vsub.f32 %v1695_v25, %v1704_v44  ;;  %v1710_v2 = vmul.f32 1.442695, %v1706_v0 }
0x1164   :  { %v1875_v47 = vpop.xlane.xlu1 %1874 }
0x1165   :  { %v1712_v48 = vmul.f32 1.442695, %v1707_v45  ;;  %v1878_v50 = vsub.f32 %v1866_v36, %v1875_v47 }
0x1166   :  { %v1869_v57 = vpop.xlane.xlu0 %1868 }
0x1167   :  { %3616 = vpow2.f32 %v1712_v48  ;;  %v1883_v51 = vmul.f32 1.442695, %v1878_v50  ;;  %v1876_v61 = vsub.f32 %v1864_v39, %v1869_v57 }
0x1168   :  { %3618 = vpow2.f32 %v1708_v46 }
0x1169   :  { %3620 = vpow2.f32 %v1883_v51  ;;  %v1879_v1 = vmul.f32 1.442695, %v1876_v61 }
0x116a   :  { %v1872_v59 = vpop.xlane.xlu0 %1871 }
0x116b   :  { %v1877_v60 = vsub.f32 %v1865_v30, %v1872_v59 }
0x116d   :  { %v1881_v63 = vmul.f32 1.442695, %v1877_v60 }
0x116f   :  { %3622 = vpow2.f32 %v1881_v63 }
0x1170   :  { %3624 = vpow2.f32 %v1879_v1 }
0x1171   :  { %v4282_v52 = vpop.eup %3616  ;;  %3626 = vpow2.f32 %v1710_v2 }
0x1172   :  { %v4284_v49 = vpop.eup %3618  ;;  %v1720_v53 = vsel %vm458_vm5, %v4282_v52, 0.0 }
0x1173   :  { %v4288_v54 = vpop.eup %3620  ;;  %1721 = vadd.xlane.f32.xlu0 %v1720_v53  ;;  %v1714_v56 = vsel %vm451_vm4, %v4284_v49, 0.0 }
0x1174   :  { %v1891_v55 = vsel %vm458_vm5, %v4288_v54, 0.0 }
0x1175   :  { %1892 = vadd.xlane.f32.xlu1 %v1891_v55 }
0x1177   :  { %1715 = vadd.xlane.f32.xlu0 %v1714_v56 }
0x1179   :  { %v3623_v3 = vpop.eup %3622 }
0x117a   :  { %v3625_v4 = vpop.eup %3624  ;;  %v1888_v5 = vsel %vm451_vm4, %v3623_v3, 0.0 }
0x117b   :  { %v1885_v6 = vsel %vm451_vm4, %v3625_v4, 0.0  ;;  %v3627_v7 = vpop.eup %3626 }
0x117c   :  { %v1717_v9 = vsel %vm451_vm4, %v3627_v7, 0.0 }
0x1186   :  { %1733 = vrot.lane.b32.xlu1 %v4225_v58, %s3707_s29 }
0x118a   :  { %1902 = vrot.lane.b32.xlu1 %v4229_v62, %s3714_s3 }
0x118d   :  { %1731 = vrot.lane.b32.xlu0 %v4229_v62, %s3707_s29  ;;  %s4578_s29 = smov 48  }
0x11ac   :  { %1889 = vadd.xlane.f32.xlu0 %v1888_v5 }
0x11ae   :  { %1886 = vadd.xlane.f32.xlu1 %v1885_v6 }
0x11b2   :  { %1718 = vadd.xlane.f32.xlu1 %v1717_v9 }
0x11c2   :  { %1968 = vrot.lane.b32.xlu0 %v4229_v62, %s3710_s1 }
0x11c3   :  { %1904 = vrot.lane.b32.xlu1 %v4225_v58, %s3714_s3  ;;  %s4580_s3 = smov 104  }
0x11c6   :  { %1964 = vrot.lane.b32.xlu0 %v4229_v62, %s4577_s23 }
0x11c7   :  { %1970 = vrot.lane.b32.xlu1 %v4225_v58, %s3710_s1  ;;  %s4579_s1 = smov 72  }
0x11cb   :  { %1966 = vrot.lane.b32.xlu1 %v4225_v58, %s4577_s23 }
0x1200   :  { %v1722_v14 = vpop.xlane.xlu0 %1721 }
0x1201   :  { %3628 = vrcp.f32 %v1722_v14 }
0x1202   :  { %v1893_v11 = vpop.xlane.xlu1 %1892 }
0x1204   :  { %v1716_v29 = vpop.xlane.xlu0 %1715 }
0x1205   :  { %3630 = vrcp.f32 %v1716_v29 }
0x1206   :  { %v1734_v37 = vpop.permute.xlu1 %1733 }
0x1207   :  { %v1743_v13 = vsel %vm499_vm6, %v1734_v37, 0 }
0x1208   :  { %v1732_v12 = vpop.permute.xlu0 %1731 }
0x1209   :  { %3312 = vmatprep.subr.bf16.mxu0 %v1732_v12 }
0x120a   :  { %3313 = vmatpush3.bf16.msra.mxu0 %v1732_v12  ;;  %v1903_v38 = vpop.permute.xlu1 %1902 }
0x120b   :  { %3438 = vmatprep.subr.msk.bf16.mxu0 %vm499_vm6, %v1734_v37  ;;  %v3629_v32 = vpop.eup %3628 }
0x120c   :  { %v1728_v22 = vmul.f32 %v3629_v32, %v4282_v52 }
0x120e   :  { %3315 = vmatpush3.bf16.msra.mxu0 %v1743_v13  ;;  %v1730_v39 = vpack.c.bf16 %v1728_v22, %v1728_v22 }
0x120f   :  { %3328 = vmatprep.subr.bf16.mxu0 %v1903_v38  ;;  %v3631_v19 = vpop.eup %3630 }
0x1210   :  { %v1726_v25 = vmul.f32 %v3631_v19, %v4284_v49 }
0x1239   :  { %v1890_v16 = vpop.xlane.xlu0 %1889 }
0x123b   :  { %v1887_v15 = vpop.xlane.xlu1 %1886 }
0x123c   :  { %3632 = vrcp.f32 %v1887_v15 }
0x123d   :  { %3634 = vrcp.f32 %v1890_v16  ;;  %v1969_v42 = vpop.permute.xlu0 %1968 }
0x123e   :  { %v1979_v45 = vsel %vm384_vm3, %v1969_v42, 0 }
0x123f   :  { %v1719_v17 = vpop.xlane.xlu1 %1718 }
0x1240   :  { %3636 = vrcp.f32 %v1719_v17 }
0x1241   :  { %3638 = vrcp.f32 %v1893_v11  ;;  %v1965_v44 = vpop.permute.xlu0 %1964 }
0x1243   :  { %v1905_v30 = vpop.permute.xlu1 %1904 }
0x1244   :  { %v1914_v24 = vsel %vm499_vm6, %v1905_v30, 0 }
0x1246   :  { %v3633_v31 = vpop.eup %3632 }
0x1247   :  { %v3635_v20 = vpop.eup %3634  ;;  %v1897_v36 = vmul.f32 %v3633_v31, %v3625_v4  ;;  %v1971_v46 = vpop.permute.xlu1 %1970 }
0x1248   :  { %v1898_v34 = vmul.f32 %v3635_v20, %v3623_v3  ;;  %v1982_v47 = vsel %vm384_vm3, %v1971_v46, 0 }
0x124a   :  { %v3637_v35 = vpop.eup %3636  ;;  %v1900_v21 = vpack.c.bf16 %v1898_v34, %v1897_v36 }
0x124b   :  { %v1727_v26 = vmul.f32 %v3637_v35, %v3627_v7  ;;  %v3639_v40 = vpop.eup %3638  ;;  %v1967_v48 = vpop.permute.xlu1 %1966 }
0x124c   :  { %v1899_v41 = vmul.f32 %v3639_v40, %v4288_v54 }
0x124d   :  { %v1729_v28 = vpack.c.bf16 %v1727_v26, %v1726_v25 }
0x124e   :  { %v1901_v43 = vpack.c.bf16 %v1899_v41, %v1899_v41 }
0x124f   :  { %3316 = vmatprep.mubr.msk.bf16.mxu0 %vm451_vm4, %v1729_v28 }
0x1250   :  { %3317 = vmatmul.mubr.msk.bf16.vlgmr.msra.gmra.mrb[24].mxu0 %vm451_vm4, %v1730_v39 }
0x1251   :  { %3329 = vmatpush3.bf16.msra.mxu0 %v1903_v38  ;;  %3332 = vmatprep.mubr.msk.bf16.mxu0 %vm451_vm4, %v1900_v21 }
0x1252   :  { %3441 = vmatprep.subr.msk.bf16.mxu0 %vm499_vm6, %v1905_v30 }
0x1255   :  { %3331 = vmatpush3.bf16.msra.mxu0 %v1914_v24 }
0x1256   :  { %3442 = vmatprep.subr.msk.bf16.mxu0 %vm384_vm3, %v1969_v42 }
0x1258   :  { %3333 = vmatmul.mubr.msk.bf16.vlgmr.msra.gmra.mrb[28].mxu0 %vm451_vm4, %v1901_v43 }
0x1259   :  { %3340 = vmatprep.mubr.msk.bf16.mxu0 %vm384_vm3, %v1965_v44 }
0x125e   :  { %3337 = vmatpush3.bf16.xpose.msra.mxu0 %v1979_v45 }
0x125f   :  { %3443 = vmatprep.subr.msk.bf16.mxu0 %vm384_vm3, %v1971_v46 }
0x1266   :  { %3339 = vmatpush3.bf16.xpose.msra.mxu0 %v1982_v47 }
0x126d   :  { %3341 = vmatmul.mubr.msk.bf16.vlgmr.msra.gmra.mrb[32].mxu0 %vm384_vm3, %v1967_v48 }
0x1323   :  { %v4330_v50 = vpop.f32.mrb[24].mxu0 }
0x1324   :  { %v4332_v51 = vpop.f32.mrb[25].mxu0 }
0x1325   :  { %v3319_v52 = vpop.f32.mrb[26].mxu0 }
0x1326   :  { %v4334_v49 = vpop.f32.mrb[27].mxu0 }
0x132b   :  { %v4336_v53 = vpop.f32.mrb[28].mxu0 }
0x132c   :  { %v4338_v54 = vpop.f32.mrb[29].mxu0 }
0x132d   :  { %v3335_v55 = vpop.f32.mrb[30].mxu0 }
0x132e   :  { %v4340_v56 = vpop.f32.mrb[31].mxu0 }
0x132f   :  { %v3482_v57 = vpack.i.bf16 %v4340_v56, %v4338_v54 }
0x1340   :  { %v3342_v59 = vpop.f32.mrb[32].mxu0 }
0x1341   :  { %v2018_v60 = vpop.f32.mrb[33].mxu0  ;;  %v2034_v61 = vmul.f32 0.35355338, %v3342_v59 }
0x1342   :  { %v2032_v63 = vmul.f32 0.35355338, %v2018_v60  ;;  %v3343_v0 = vpop.f32.mrb[34].mxu0 }
0x1343   :  { %v2021_v1 = vpop.f32.mrb[35].mxu0  ;;  %v2037_v6 = vadd.f32 %v4271_v23, %v2034_v61 }
0x1344   :  { %v2033_v2 = vmul.f32 0.35355338, %v2021_v1  ;;  %v2035_v3 = vadd.f32 %v4258_v27, %v2032_v63 }
0x1345   :  { %v2044_v9 = vsel %vm458_vm5, %v2037_v6, -inf }
0x1346   :  { %v2036_v4 = vadd.f32 %v4265_v33, %v2033_v2  ;;  %v2038_v5 = vsel %vm451_vm4, %v2035_v3, -inf }
0x1347   :  { %2039 = vmax.xlane.f32.xlu0 %v2038_v5 }
0x1348   :  { %v2041_v7 = vsel %vm451_vm4, %v2036_v4, -inf }
0x1349   :  { %2042 = vmax.xlane.f32.xlu1 %v2041_v7 }
0x134b   :  { %2045 = vmax.xlane.f32.xlu0 %v2044_v9 }
0x13d4   :  { %v2040_v14 = vpop.xlane.xlu0 %2039 }
0x13d5   :  { %v2047_v11 = vsub.f32 %v2035_v3, %v2040_v14 }
0x13d6   :  { %v2043_v29 = vpop.xlane.xlu1 %2042 }
0x13d7   :  { %v2050_v37 = vmul.f32 1.442695, %v2047_v11  ;;  %v2048_v12 = vsub.f32 %v2036_v4, %v2043_v29 }
0x13d8   :  { %v2046_v13 = vpop.xlane.xlu0 %2045 }
0x13d9   :  { %3640 = vpow2.f32 %v2050_v37  ;;  %v2052_v38 = vmul.f32 1.442695, %v2048_v12  ;;  %v2049_v15 = vsub.f32 %v2037_v6, %v2046_v13 }
0x13db   :  { %3642 = vpow2.f32 %v2052_v38  ;;  %v2054_v16 = vmul.f32 1.442695, %v2049_v15 }
0x13dd   :  { %3644 = vpow2.f32 %v2054_v16 }
0x13e3   :  { %v3641_v17 = vpop.eup %3640 }
0x13e4   :  { %v2056_v32 = vsel %vm451_vm4, %v3641_v17, 0.0 }
0x13e5   :  { %v3643_v19 = vpop.eup %3642  ;;  %2057 = vadd.xlane.f32.xlu0 %v2056_v32 }
0x13e6   :  { %v2059_v35 = vsel %vm451_vm4, %v3643_v19, 0.0 }
0x13e7   :  { %v3645_v31 = vpop.eup %3644 }
0x13e8   :  { %v2062_v20 = vsel %vm458_vm5, %v3645_v31, 0.0 }
0x13e9   :  { %2063 = vadd.xlane.f32.xlu1 %v2062_v20  ;;  %2060 = vadd.xlane.f32.xlu0 %v2059_v35 }
0x13fa   :  { %2075 = vrot.lane.b32.xlu1 %v4225_v58, %s4578_s29 }
0x13fe   :  { %2139 = vrot.lane.b32.xlu1 %v4229_v62, %s4579_s1 }
0x13ff   :  { %2073 = vrot.lane.b32.xlu0 %v4229_v62, %s4578_s29 }
0x1402   :  { %2141 = vrot.lane.b32.xlu1 %v4225_v58, %s4579_s1 }
0x1403   :  { %2135 = vrot.lane.b32.xlu0 %v4229_v62, %s4580_s3 }
0x1406   :  { %2137 = vrot.lane.b32.xlu1 %v4225_v58, %s4580_s3 }
0x1472   :  { %v2058_v22 = vpop.xlane.xlu0 %2057 }
0x1473   :  { %3646 = vrcp.f32 %v2058_v22 }
0x1476   :  { %v2061_v25 = vpop.xlane.xlu0 %2060  ;;  %v2064_v26 = vpop.xlane.xlu1 %2063 }
0x1477   :  { %3648 = vrcp.f32 %v2061_v25 }
0x1478   :  { %3650 = vrcp.f32 %v2064_v26 }
0x147a   :  { %v2074_v36 = vpop.permute.xlu0 %2073  ;;  %v2076_v28 = vpop.permute.xlu1 %2075 }
0x147b   :  { %3344 = vmatprep.subr.bf16.mxu1 %v2074_v36  ;;  %v2085_v39 = vsel %vm499_vm6, %v2076_v28, 0 }
0x147c   :  { %3345 = vmatpush3.bf16.msra.mxu1 %v2074_v36 }
0x147d   :  { %3444 = vmatprep.subr.msk.bf16.mxu1 %vm499_vm6, %v2076_v28  ;;  %v3647_v34 = vpop.eup %3646 }
0x147e   :  { %v2140_v40 = vpop.permute.xlu1 %2139  ;;  %v2068_v41 = vmul.f32 %v3647_v34, %v3641_v17  ;;  %v2136_v45 = vpop.permute.xlu0 %2135 }
0x147f   :  { %v2150_v46 = vsel %vm384_vm3, %v2140_v40, 0 }
0x1480   :  { %3347 = vmatpush3.bf16.msra.mxu1 %v2085_v39 }
0x1481   :  { %v3649_v21 = vpop.eup %3648  ;;  %3445 = vmatprep.subr.msk.bf16.mxu1 %vm384_vm3, %v2140_v40 }
0x1482   :  { %v3651_v30 = vpop.eup %3650  ;;  %v2069_v42 = vmul.f32 %v3649_v21, %v3643_v19  ;;  %v2142_v47 = vpop.permute.xlu1 %2141 }
0x1483   :  { %v2070_v24 = vmul.f32 %v3651_v30, %v3645_v31  ;;  %v2153_v48 = vsel %vm384_vm3, %v2142_v47, 0  ;;  %v3530_v30 = vld [vmem:[%s4535_s8 + $0x10] sm:$0xff]  }
0x1484   :  { %v2071_v43 = vpack.c.bf16 %v2069_v42, %v2068_v41  ;;  %v3531_v41 = vld [vmem:[%s4535_s8 + $0x18] sm:$0xff]  }
0x1485   :  { %v2072_v44 = vpack.c.bf16 %v2070_v24, %v2070_v24 }
0x1486   :  { %3348 = vmatprep.mubr.msk.bf16.mxu1 %vm451_vm4, %v2071_v43  ;;  %v2138_v52 = vpop.permute.xlu1 %2137 }
0x1487   :  { %3349 = vmatmul.mubr.msk.bf16.vlgmr.msra.gmra.mrb[44].mxu1 %vm451_vm4, %v2072_v44 }
0x1488   :  { %3356 = vmatprep.mubr.msk.bf16.mxu1 %vm384_vm3, %v2136_v45 }
0x1489   :  { %3353 = vmatpush3.bf16.xpose.msra.mxu1 %v2150_v46 }
0x148a   :  { %3446 = vmatprep.subr.msk.bf16.mxu1 %vm384_vm3, %v2142_v47 }
0x1491   :  { %3355 = vmatpush3.bf16.xpose.msra.mxu1 %v2153_v48 }
0x1498   :  { %3357 = vmatmul.mubr.msk.bf16.vlgmr.msra.gmra.mrb[48].mxu1 %vm384_vm3, %v2138_v52 }
0x155a   :  { %v3350_v55 = vpop.f32.mrb[44].mxu1 }
0x155b   :  { %v2121_v59 = vpop.f32.mrb[45].mxu1 }
0x155c   :  { %v3351_v60 = vpop.f32.mrb[46].mxu1 }
0x155d   :  { %v2124_v61 = vpop.f32.mrb[47].mxu1 }
0x155e   :  { %v3487_v63 = vpack.i.bf16 %v2124_v61, %v2121_v59 }
0x156b   :  { %v3358_v0 = vpop.f32.mrb[48].mxu1 }
0x156c   :  { %v2189_v1 = vpop.f32.mrb[49].mxu1  ;;  %v2205_v2 = vmul.f32 0.35355338, %v3358_v0 }
0x156d   :  { %v2203_v3 = vmul.f32 0.35355338, %v2189_v1  ;;  %v3359_v4 = vpop.f32.mrb[50].mxu1 }
0x156e   :  { %v2192_v5 = vpop.f32.mrb[51].mxu1  ;;  %v2208_v9 = vadd.f32 %v4271_v23, %v2205_v2 }
0x156f   :  { %v2206_v6 = vadd.f32 %v4258_v27, %v2203_v3  ;;  %v2204_v7 = vmul.f32 0.35355338, %v2192_v5 }
0x1570   :  { %v2215_v37 = vsel %vm458_vm5, %v2208_v9, -inf }
0x1571   :  { %v2207_v14 = vadd.f32 %v4265_v33, %v2204_v7  ;;  %v2209_v11 = vsel %vm451_vm4, %v2206_v6, -inf }
0x1572   :  { %2210 = vmax.xlane.f32.xlu0 %v2209_v11 }
0x1573   :  { %v2212_v29 = vsel %vm451_vm4, %v2207_v14, -inf }
0x1574   :  { %2213 = vmax.xlane.f32.xlu1 %v2212_v29 }
0x1576   :  { %2216 = vmax.xlane.f32.xlu0 %v2215_v37  ;;  %v3024_v37 = vld [vmem:[%s4536_s9 + $0x1] ss:$0 sm:$0xff] }
0x15ff   :  { %v2211_v12 = vpop.xlane.xlu0 %2210 }
0x1600   :  { %v2218_v13 = vsub.f32 %v2206_v6, %v2211_v12 }
0x1601   :  { %v2214_v38 = vpop.xlane.xlu1 %2213 }
0x1602   :  { %v2221_v15 = vmul.f32 1.442695, %v2218_v13  ;;  %v2219_v16 = vsub.f32 %v2207_v14, %v2214_v38 }
0x1603   :  { %v2217_v27 = vpop.xlane.xlu0 %2216 }
0x1604   :  { %3652 = vpow2.f32 %v2221_v15  ;;  %v2223_v17 = vmul.f32 1.442695, %v2219_v16  ;;  %v2220_v23 = vsub.f32 %v2208_v9, %v2217_v27 }
0x1606   :  { %3654 = vpow2.f32 %v2223_v17  ;;  %v2225_v33 = vmul.f32 1.442695, %v2220_v23 }
0x1608   :  { %3656 = vpow2.f32 %v2225_v33 }
0x160e   :  { %v3653_v32 = vpop.eup %3652 }
0x160f   :  { %v2227_v19 = vsel %vm451_vm4, %v3653_v32, 0.0 }
0x1610   :  { %v3655_v31 = vpop.eup %3654  ;;  %2228 = vadd.xlane.f32.xlu0 %v2227_v19 }
0x1611   :  { %v2230_v22 = vsel %vm451_vm4, %v3655_v31, 0.0 }
0x1612   :  { %v3657_v20 = vpop.eup %3656 }
0x1613   :  { %v2233_v35 = vsel %vm458_vm5, %v3657_v20, 0.0 }
0x1614   :  { %2234 = vadd.xlane.f32.xlu1 %v2233_v35  ;;  %2231 = vadd.xlane.f32.xlu0 %v2230_v22 }
0x1625   :  { %2246 = vrot.lane.b32.xlu1 %v4225_v58, %s4581_s0 }
0x1629   :  { %3483 = vrot.lane.b32.xlu1 %v3482_v57, %s4582_s2 }
0x162a   :  { %2244 = vrot.lane.b32.xlu0 %v4229_v62, %s4581_s0 }
0x162d   :  { %2313 = vrot.lane.b32.xlu1 %v4336_v53, %s4582_s2  ;;  %s3723_s2 = smov [#allocation2]  }
0x162e   :  { %3488 = vrot.lane.b32.xlu0 %v3487_v63, %s4583_s22 }
0x1631   :  { %2325 = vrot.lane.b32.xlu1 %v3350_v55, %s4583_s22  ;;  %s2918_s22 = sshll.u32 %s3723_s2, 4  ;;  %s2919_s22 = int_to_ptr.vmem [resolvable:$true] %s2918_s22 }
0x1632   :  { %p3686_p1 = scmp.lt.s32.totalorder %s2919_s22, %s2919_s22 }
0x169d   :  { %v2229_v25 = vpop.xlane.xlu0 %2228 }
0x169e   :  { %3658 = vrcp.f32 %v2229_v25 }
0x16a1   :  { %v2232_v26 = vpop.xlane.xlu0 %2231  ;;  %v2235_v36 = vpop.xlane.xlu1 %2234 }
0x16a2   :  { %3660 = vrcp.f32 %v2232_v26 }
0x16a3   :  { %3662 = vrcp.f32 %v2235_v36 }
0x16a5   :  { %v2245_v58 = vpop.permute.xlu0 %2244  ;;  %v2247_v54 = vpop.permute.xlu1 %2246 }
0x16a6   :  { %3360 = vmatprep.subr.bf16.mxu0 %v2245_v58  ;;  %v2256_v56 = vsel %vm499_vm6, %v2247_v54, 0 }
0x16a7   :  { %3361 = vmatpush3.bf16.msra.mxu0 %v2245_v58 }
0x16a8   :  { %3447 = vmatprep.subr.msk.bf16.mxu0 %vm499_vm6, %v2247_v54  ;;  %v3659_v62 = vpop.eup %3658 }
0x16a9   :  { %v2239_v28 = vmul.f32 %v3659_v62, %v3653_v32  ;;  %v3484_v46 = vpop.permute.xlu1 %3483  ;;  %v3489_v48 = vpop.permute.xlu0 %3488 }
0x16aa   :  { %v3486_v52 = vunpack.i.h.bf16 %v3484_v46  ;;  %v3485_v55 = vunpack.i.l.bf16 %v3484_v46  ;;  %v3491_v60 = vunpack.i.h.bf16 %v3489_v48  ;;  %v3490_v61 = vunpack.i.l.bf16 %v3489_v48 }
0x16ab   :  { %3363 = vmatpush3.bf16.msra.mxu0 %v2256_v56 }
0x16ac   :  { %v3661_v53 = vpop.eup %3660  ;;  %3368 = vmatprep.subr.bf16.mxu0 %v3530_v30  ;;  %v2343_v63 = vsel %vm384_vm3, %v4334_v49, %v3486_v52  ;;  %v2342_v0 = vsel %vm384_vm3, %v4332_v51, %v3485_v55 }
0x16ad   :  { %v3663_v57 = vpop.eup %3662  ;;  %v2240_v34 = vmul.f32 %v3661_v53, %v3655_v31  ;;  %v2314_v47 = vpop.permute.xlu1 %2313  ;;  %v2345_v9 = vsel %vm1103_vm7, %v2342_v0, %v3490_v61  ;;  %v2346_v14 = vsel %vm1103_vm7, %v2343_v63, %v3491_v60  ;;  %v3028_v61 = vld [vmem:[%s4538_s11 + $0x1] ss:$0 sm:$0xff] }
0x16ae   :  { %v2241_v39 = vmul.f32 %v3663_v57, %v3657_v20  ;;  %v2344_v2 = vsel %vm384_vm3, %v4330_v50, %v2314_v47  ;;  %v3027_v47 = vld [vmem:[%s4537_s10 + $0x1] ss:$0 sm:$0xff] }
0x16af   :  { %v2242_v40 = vpack.c.bf16 %v2240_v34, %v2239_v28  ;;  %v3532_v28 = vld [vmem:[%s4539_s12 + $0x10] sm:$0xff]   ;;  %v3533_v34 = vld [vmem:[%s4539_s12 + $0x18] sm:$0xff]   ;;  %s4585_s12 = sld [smem:[#allocation9_spill]] }
0x16b0   :  { %v2243_v21 = vpack.c.bf16 %v2241_v39, %v2241_v39  ;;  %3376 = vmatprep.subr.bf16.mxu1 %v3532_v28 }
0x16b1   :  { %3364 = vmatprep.mubr.msk.bf16.mxu0 %vm451_vm4, %v2242_v40  ;;  %v2326_v59 = vpop.permute.xlu1 %2325  ;;  %3377 = vmatpush3.bf16.msra.mxu1 %v3532_v28 }
0x16b2   :  { %3365 = vmatmul.mubr.msk.bf16.vlgmr.msra.gmra.mrb[36].mxu0 %vm451_vm4, %v2243_v21  ;;  %v2347_v4 = vsel %vm1103_vm7, %v2344_v2, %v2326_v59  ;;  %3378 = vmatprep.subr.bf16.mxu1 %v3533_v34 }
0x16b3   :  { %3369 = vmatpush3.bf16.msra.mxu0 %v3530_v30 }
0x16b4   :  { %3370 = vmatprep.subr.bf16.mxu0 %v3531_v41 }
0x16b5   :  { %3379 = vmatpush3.bf16.msra.mxu1 %v3533_v34 }
0x16b7   :  { %3371 = vmatpush3.bf16.msra.mxu0 %v3531_v41 }
0x1785   :  { %v3366_v42 = vpop.f32.mrb[36].mxu0 }
0x1786   :  { %2337 = vrot.lane.b32.xlu1 %v3366_v42, %s4584_s26  ;;  %v2292_v24 = vpop.f32.mrb[37].mxu0 }
0x1787   :  { %v3367_v43 = vpop.f32.mrb[38].mxu0 }
0x1788   :  { %v2295_v44 = vpop.f32.mrb[39].mxu0 }
0x1789   :  { %v3492_v45 = vpack.i.bf16 %v2295_v44, %v2292_v24 }
0x178b   :  { %3493 = vrot.lane.b32.xlu0 %v3492_v45, %s4584_s26 }
0x17f8   :  { %v2338_v1 = vpop.permute.xlu1 %2337 }
0x17f9   :  { %v2350_v7 = vsel %vm1107_vm8, %v2347_v4, %v2338_v1 }
0x17fa   :  { %v2352_v29 = vpack.c.bf16 %v2350_v7, %v2350_v7  ;;  %v3535_v7 = vld [vmem:[%s4541_s14 + $0x48] sm:$0xff]  }
0x17fd   :  { %v3494_v3 = vpop.permute.xlu0 %3493 }
0x17fe   :  { %v3496_v5 = vunpack.i.h.bf16 %v3494_v3  ;;  %v3495_v6 = vunpack.i.l.bf16 %v3494_v3 }
0x1800   :  { %v2348_v49 = vsel %vm1107_vm8, %v2345_v9, %v3495_v6  ;;  %v2349_v11 = vsel %vm1107_vm8, %v2346_v14, %v3496_v5  ;;  %v3534_v6 = vld [vmem:[%s4541_s14 + $0x40] sm:$0xff]   ;;  %v3536_v9 = vld [vmem:[%s4541_s14 + $0x50] sm:$0xff]   ;;  %v3537_v14 = vld [vmem:[%s4541_s14 + $0x58] sm:$0xff]  }
0x1801   :  { %v2351_v51 = vpack.c.bf16 %v2349_v11, %v2348_v49  ;;  %3384 = vmatprep.subr.bf16.mxu0 %v3534_v6  ;;  %v3538_v49 = vld [vmem:[%s4541_s14 + $0x60] sm:$0xff]   ;;  %v3539_v11 = vld [vmem:[%s4541_s14 + $0x68] sm:$0xff]  }
0x1803   :  { %3372 = vmatprep.mubr.msk.bf16.mxu0 %vm244_vm1, %v2351_v51  ;;  %v3540_v51 = vld [vmem:[%s4541_s14 + $0x70] sm:$0xff]  }
0x1804   :  { %3373 = vmatmul.mubr.msk.bf16.vlgmr.msra.gmra.mrb[40].mxu0 %vm244_vm1, %v2352_v29  ;;  %v3541_v29 = vld [vmem:[%s4541_s14 + $0x78] sm:$0xff]  }
0x1805   :  { %3385 = vmatpush3.bf16.msra.mxu0 %v3534_v6 }
0x1806   :  { %3386 = vmatprep.subr.bf16.mxu0 %v3535_v7 }
0x1809   :  { %3387 = vmatpush3.bf16.msra.mxu0 %v3535_v7 }
0x180a   :  { %3388 = vmatprep.subr.bf16.mxu0 %v3536_v9 }
0x180d   :  { %3389 = vmatpush3.bf16.msra.mxu0 %v3536_v9 }
0x180e   :  { %3390 = vmatprep.subr.bf16.mxu0 %v3537_v14 }
0x1811   :  { %3391 = vmatpush3.bf16.msra.mxu0 %v3537_v14 }
0x1812   :  { %3392 = vmatprep.subr.bf16.mxu0 %v3538_v49 }
0x1815   :  { %3393 = vmatpush3.bf16.msra.mxu0 %v3538_v49  ;;  %v3542_v49 = vld [vmem:[%s4545_s18] sm:$0xff]  }
0x1816   :  { %3394 = vmatprep.subr.bf16.mxu0 %v3539_v11 }
0x1819   :  { %3395 = vmatpush3.bf16.msra.mxu0 %v3539_v11  ;;  %v3543_v11 = vld [vmem:[%s4545_s18 + $0x8] sm:$0xff]  }
0x181a   :  { %3396 = vmatprep.subr.bf16.mxu0 %v3540_v51 }
0x181d   :  { %3397 = vmatpush3.bf16.msra.mxu0 %v3540_v51 }
0x181e   :  { %3398 = vmatprep.subr.bf16.mxu0 %v3541_v29 }
0x1821   :  { %3399 = vmatpush3.bf16.msra.mxu0 %v3541_v29 }
0x18d7   :  { %v3374_v50 = vpop.f32.mrb[40].mxu0 }
0x18d8   :  { %v2410_v12 = vpop.f32.mrb[41].mxu0  ;;  %v2426_v13 = vadd.f32 %v3374_v50, %v4195_v18  ;;  %v3034_v50 = vld [vmem:[%s4540_s13 + $0x1] ss:$0 sm:$0xff] }
0x18d9   :  { %v2424_v38 = vadd.f32 %v2410_v12, %v4192_v8  ;;  %v3375_v15 = vpop.f32.mrb[42].mxu0 }
0x18da   :  { %v2413_v16 = vpop.f32.mrb[43].mxu0  ;;  %v4430_v23 = vadd.f32 %v3024_v37, %v2426_v13 }
0x18db   :  { %v4427_v27 = vadd.f32 %v3024_v37, %v2424_v38  ;;  %v2425_v17 = vadd.f32 %v2413_v16, %v4197_v10 }
0x18dc   :  { %v2448_v8 = vsel %vm251_vm2, %v4430_v23, 0.0 }
0x18dd   :  { %v4432_v33 = vadd.f32 %v3024_v37, %v2425_v17  ;;  %v2442_v32 = vsel %vm244_vm1, %v4427_v27, 0.0 }
0x18de   :  { %2443 = vadd.xlane.f32.xlu0 %v2442_v32 }
0x18df   :  { %v2445_v19 = vsel %vm244_vm1, %v4432_v33, 0.0 }
0x18e0   :  { %2446 = vadd.xlane.f32.xlu1 %v2445_v19 }
0x18e2   :  { %2449 = vadd.xlane.f32.xlu0 %v2448_v8 }
0x196b   :  { %v2444_v18 = vpop.xlane.xlu0 %2443 }
0x196c   :  { %v2451_v31 = vmul.f32 0.03125, %v2444_v18 }
0x196d   :  { %v2447_v20 = vpop.xlane.xlu1 %2446 }
0x196e   :  { %v2454_v10 = vsub.f32 %v4427_v27, %v2451_v31  ;;  %v2452_v35 = vmul.f32 0.03125, %v2447_v20 }
0x196f   :  { %v2450_v22 = vpop.xlane.xlu0 %2449 }
0x1970   :  { %v2455_v25 = vsub.f32 %v4432_v33, %v2452_v35  ;;  %v2453_v26 = vmul.f32 0.03125, %v2450_v22  ;;  %v2457_v36 = vmul.f32 %v2454_v10, %v2454_v10 }
0x1972   :  { %v2456_v58 = vsub.f32 %v4430_v23, %v2453_v26  ;;  %v2460_v54 = vsel %vm244_vm1, %v2457_v36, 0.0  ;;  %v2458_v62 = vmul.f32 %v2455_v25, %v2455_v25 }
0x1973   :  { %2461 = vadd.xlane.f32.xlu0 %v2460_v54 }
0x1974   :  { %v2459_v56 = vmul.f32 %v2456_v58, %v2456_v58  ;;  %v2463_v57 = vsel %vm244_vm1, %v2458_v62, 0.0 }
0x1976   :  { %v2466_v53 = vsel %vm251_vm2, %v2459_v56, 0.0 }
0x1977   :  { %2467 = vadd.xlane.f32.xlu1 %v2466_v53  ;;  %2464 = vadd.xlane.f32.xlu0 %v2463_v57 }
0x1a00   :  { %v2462_v39 = vpop.xlane.xlu0 %2461 }
0x1a01   :  { %v2469_v40 = vmul.f32 0.03125, %v2462_v39 }
0x1a03   :  { %v2472_v21 = vadd.f32 1e-05, %v2469_v40 }
0x1a04   :  { %v2465_v30 = vpop.xlane.xlu0 %2464  ;;  %v2468_v41 = vpop.xlane.xlu1 %2467 }
0x1a05   :  { %3664 = vrsqrt.f32 %v2472_v21  ;;  %v2470_v42 = vmul.f32 0.03125, %v2465_v30  ;;  %v2471_v24 = vmul.f32 0.03125, %v2468_v41 }
0x1a07   :  { %v2473_v43 = vadd.f32 1e-05, %v2470_v42  ;;  %v2474_v44 = vadd.f32 1e-05, %v2471_v24 }
0x1a09   :  { %3666 = vrsqrt.f32 %v2473_v43 }
0x1a0a   :  { %3668 = vrsqrt.f32 %v2474_v44 }
0x1a0f   :  { %v3665_v45 = vpop.eup %3664 }
0x1a10   :  { %v2478_v46 = vmul.f32 %v3665_v45, %v2454_v10  ;;  %v3720_v45 = vmov 0.0|0.0  }
0x1a11   :  { %3421 = vmatprep.subr.bf16.mxu1 %v3720_v45 }
0x1a12   :  { %v2487_v59 = vmul.f32 %v3027_v47, %v2478_v46  ;;  %v3722_v46 = vmov 0.0  }
0x1a13   :  { %v3667_v48 = vpop.eup %3666 }
0x1a14   :  { %v3669_v52 = vpop.eup %3668  ;;  %v2479_v55 = vmul.f32 %v3667_v48, %v2455_v25  ;;  %v2496_v1 = vadd.f32 %v3028_v61, %v2487_v59  ;;  %v3064_v59 = vld [vmem:[%s4542_s15 + $0x1] ss:$0 sm:$0xff] }
0x1a15   :  { %v2480_v60 = vmul.f32 %v3669_v52, %v2456_v58 }
0x1a16   :  { %v2488_v63 = vmul.f32 %v3027_v47, %v2479_v55 }
0x1a17   :  { %v2489_v0 = vmul.f32 %v3027_v47, %v2480_v60 }
0x1a18   :  { %v2497_v2 = vadd.f32 %v3028_v61, %v2488_v63 }
0x1a19   :  { %v2498_v3 = vadd.f32 %v3028_v61, %v2489_v0 }
0x1a1a   :  { %v2499_v4 = vpack.c.bf16 %v2497_v2, %v2496_v1 }
0x1a1b   :  { %v2500_v5 = vpack.c.bf16 %v2498_v3, %v2498_v3 }
0x1a1c   :  { %3380 = vmatprep.mubr.msk.bf16.mxu1 %vm244_vm1, %v2499_v4 }
0x1a1d   :  { %3381 = vmatmul.mubr.msk.bf16.vlgmr.msra.gmra.mrb[52].mxu1 %vm244_vm1, %v2500_v5 }
0x1a1e   :  { %3410 = vmatprep.mubr.msk.f32.mxu1 %vm3721_vm9, %v3722_v46 }
0x1af0   :  { %v3382_v37 = vpop.f32.mrb[52].mxu1 }
0x1af1   :  { %v2575_v12 = vadd.f32 %v3382_v37, %v3034_v50  ;;  %v2566_v13 = vpop.f32.mrb[53].mxu1 }
0x1af2   :  { %v2567_v38 = vadd.f32 %v3034_v50, %v2566_v13  ;;  %v3383_v15 = vpop.f32.mrb[54].mxu1 }
0x1af3   :  { %v2585_v16 = vmul.f32 %v2575_v12, %v2575_v12  ;;  %v2569_v17 = vpop.f32.mrb[55].mxu1  ;;  %v2582_v39 = vmul.f32 0.5, %v2575_v12 }
0x1af4   :  { %v2583_v32 = vmul.f32 %v2567_v38, %v2567_v38  ;;  %v2570_v19 = vadd.f32 %v3034_v50, %v2569_v17  ;;  %v2580_v40 = vmul.f32 0.5, %v2567_v38 }
0x1af5   :  { %v2588_v8 = vmul.f32 %v2585_v16, %v2575_v12 }
0x1af6   :  { %v2586_v18 = vmul.f32 %v2583_v32, %v2567_v38  ;;  %v2584_v31 = vmul.f32 %v2570_v19, %v2570_v19  ;;  %v2581_v21 = vmul.f32 0.5, %v2570_v19  ;;  %v3069_v32 = vld [vmem:[%s4546_s19] ss:$0 sm:$0xff] }
0x1af7   :  { %v2591_v20 = vmul.f32 0.044715, %v2588_v8 }
0x1af8   :  { %v2589_v10 = vmul.f32 0.044715, %v2586_v18  ;;  %v2587_v35 = vmul.f32 %v2584_v31, %v2570_v19 }
0x1af9   :  { %v2594_v22 = vadd.f32 %v2591_v20, %v2575_v12  ;;  %v3067_v12 = vld [vmem:[%s4543_s16] ss:$0 sm:$0xff]  ;;  %s3681_s16 = scalar_lea.vmem %s2919_s22, 32 }
0x1afa   :  { %v2592_v25 = vadd.f32 %v2589_v10, %v2567_v38  ;;  %v2590_v26 = vmul.f32 0.044715, %v2587_v35  ;;  %v3068_v38 = vld [vmem:[%s4544_s17] ss:$0 sm:$0xff]  ;;  %p3682_p0 = scmp.ne.s32.totalorder %s2919_s22, %s3681_s16  ;;  %p3687_p2 = scmp.lt.s32.totalorder %s3681_s16, %s3681_s16 }
0x1afb   :  { %v2597_v36 = vmul.f32 0.7978846, %v2594_v22 }
0x1afc   :  { %v2595_v58 = vmul.f32 0.7978846, %v2592_v25  ;;  %v2593_v54 = vadd.f32 %v2590_v26, %v2570_v19  ;;  %p3688_p3 = por %p3687_p2, %p3686_p1 }
0x1afd   :  { %3670 = vtanh.f32 %v2597_v36 }
0x1afe   :  { %3672 = vtanh.f32 %v2595_v58  ;;  %v2596_v62 = vmul.f32 0.7978846, %v2593_v54  ;;  %p3689_p4 = pnand %p3688_p3, %p3682_p0 }
0x1b00   :  { %3674 = vtanh.f32 %v2596_v62 }
0x1b07   :  { %v3671_v56 = vpop.eup %3670 }
0x1b08   :  { %v3673_v53 = vpop.eup %3672  ;;  %v2603_v57 = vadd.f32 1.0, %v3671_v56 }
0x1b09   :  { %v2601_v28 = vadd.f32 1.0, %v3673_v53 }
0x1b0a   :  { %v3675_v34 = vpop.eup %3674  ;;  %v2606_v41 = vmul.f32 %v2603_v57, %v2582_v39 }
0x1b0b   :  { %v2602_v30 = vadd.f32 1.0, %v3675_v34  ;;  %v2604_v42 = vmul.f32 %v2601_v28, %v2580_v40 }
0x1b0c   :  { %v2608_v44 = vpack.c.bf16 %v2606_v41, %v2606_v41 }
0x1b0d   :  { %v2605_v24 = vmul.f32 %v2602_v30, %v2581_v21 }
0x1b0f   :  { %v2607_v43 = vpack.c.bf16 %v2605_v24, %v2604_v42 }
0x1b11   :  { %3400 = vmatprep.mubr.bf16.mxu0 %v2607_v43 }
0x1b12   :  { %3401 = vmatmul.mubr.bf16.vlgmr.msra.gmra.mrb[44].mxu0 %v2608_v44 }
0x1be5   :  { %v3402_v47 = vpop.f32.mrb[44].mxu0 }
0x1be6   :  { %v2708_v48 = vpop.f32.mrb[45].mxu0  ;;  %v2724_v1 = vadd.f32 %v3402_v47, %v4430_v23 }
0x1be7   :  { %v2722_v52 = vadd.f32 %v2708_v48, %v4427_v27  ;;  %v3403_v55 = vpop.f32.mrb[46].mxu0  ;;  %v2736_v27 = vld [vmem:[%s4585_s12] sm:$0x3] }
0x1be8   :  { %v2711_v60 = vpop.f32.mrb[47].mxu0  ;;  %v2735_v3 = vadd.f32 %v3064_v59, %v2724_v1 }
0x1be9   :  { %v2723_v61 = vadd.f32 %v2711_v60, %v4432_v33  ;;  %v2733_v63 = vadd.f32 %v3064_v59, %v2722_v52 }
0x1beb   :  { %v2734_v0 = vadd.f32 %v3064_v59, %v2723_v61 }
0x1bed   :  { %v3422_v2 = vpack.c.bf16 %v2734_v0, %v2733_v63 }
0x1bef   :  { %3423 = vmatpush3.bf16.msra.mxu1 %v3422_v2 }
0x1bf0   :  { %3408 = vmatprep.subr.mxu1 %v3722_v46 }
0x1bf3   :  { %3409 = vmatpush3.msk.msra.mxu1 %vm2740_vm10, %v2735_v3 }
0x1bf4   :  { %3411 = vmatmul.mubr.msk.f32.vlgmr.msra.gmra.mrb[56].mxu1 %vm451_vm4, %v2736_v27  ;;  %3413 = vmatprep.subr.bf16.mxu1 %v3722_v46 }
0x1bf5   :  { %3417 = vmatprep.mubr.msk.bf16.mxu1 %vm3721_vm9, %v3722_v46  ;;  %3414 = vmatpush3.bf16.msra.mxu1 %v3542_v49 }
0x1bf6   :  { %3415 = vmatprep.subr.bf16.mxu1 %v3722_v46 }
0x1bf9   :  { %3416 = vmatpush3.bf16.msra.mxu1 %v3543_v11 }
0x1cc7   :  { %v2810_v33 = vpop.f32.mrb[56].mxu1 }
0x1cc8   :  { %v2817_v4 = vsel %vm2816_vm11, %v2810_v33, 0.0  ;;  %v3412_v5 = vpop.f32.mrb[57].mxu1 }
0x1cc9   :  { %2818 = vadd.xlane.f32.xlu0 %v2817_v4 }
0x1d56   :  { %v2819_v23 = vpop.xlane.xlu0 %2818 }
0x1d57   :  { %v2820_v6 = vmul.f32 0.03125, %v2819_v23 }
0x1d59   :  { %v2821_v7 = vsub.f32 %v2810_v33, %v2820_v6 }
0x1d5b   :  { %v2822_v9 = vmul.f32 %v2821_v7, %v2821_v7 }
0x1d5d   :  { %v2823_v14 = vsel %vm2816_vm11, %v2822_v9, 0.0 }
0x1d5e   :  { %2824 = vadd.xlane.f32.xlu1 %v2823_v14 }
0x1deb   :  { %v2825_v51 = vpop.xlane.xlu1 %2824 }
0x1dec   :  { %v2826_v29 = vmul.f32 0.03125, %v2825_v51 }
0x1dee   :  { %v2827_v50 = vadd.f32 1e-05, %v2826_v29 }
0x1df0   :  { %3676 = vrsqrt.f32 %v2827_v50 }
0x1dfa   :  { %v3677_v37 = vpop.eup %3676 }
0x1dfb   :  { %v2829_v13 = vmul.f32 %v3677_v37, %v2821_v7 }
0x1dfd   :  { %v2836_v15 = vmul.f32 %v3067_v12, %v2829_v13 }
0x1dff   :  { %v2843_v16 = vadd.f32 %v3068_v38, %v2836_v15 }
0x1e01   :  { %v2844_v17 = vpack.c.bf16 %v2843_v16, %v2843_v16 }
0x1e03   :  { %3418 = vmatmul.mubr.msk.bf16.vlgmr.msra.gmra.mrb[60].mxu1 %vm244_vm1, %v2844_v17 }
0x1ed6   :  { %v2905_v19 = vpop.f32.mrb[60].mxu1 }
0x1ed7   :  { %v2906_v8 = vadd.f32 %v3069_v32, %v2905_v19  ;;  %v3419_v18 = vpop.f32.mrb[61].mxu1 }
0x1ed8   :  { %v2908_v31 = vpop.f32.mrb[62].mxu1 }
0x1ed9   :  { %2911 = vst [vmem:[#allocation2] sm:$0x3] %v2906_v8  ;;  %v3420_v20 = vpop.f32.mrb[63].mxu1 }
0x1eda   :  { %3692 = shalt.err (!%p3689_p4)
}
0x1edb   :  { %s3693_s19 = scalar_lea.hbm %s4547_s20, 32 }
0x1edc   :  { %p3694_p5 = scmp.ne.s32.totalorder %s4547_s20, %s3693_s19  ;;  %p3697_p6 = scmp.lt.u32.totalorder %s3693_s19, %s4547_s20 }
0x1ede   :  { %p3699_p7 = pnand %p3697_p6, %p3694_p5 }
0x1ee0   :  { %3702 = shalt.err (!%p3699_p7)
}
0x1ee1   :  { %2921 = dma.vmem_to_hbm [thread:$0]  %s2919_s22, 32, %s4547_s20, [#allocation3]  }
0x1ee2   :  { %3703 = dma.done.wait [#allocation3], 32  }
0x1ee3   :  { %3704 = vsyncadd [#allocation3], 4294967264 }
0x1ee4   :  { %2925 = vsyncpa [#allocation3], 1 }

</bundles_post_ra>
